<compile_context>
chip_gen: v5e
topology: v5e:2x2
jax: 0.10.0
libtpu: 0.0.40
codegen_flags: <defaults>
</compile_context>

<pallas_src>
import functools

import jax
import jax.numpy as jnp
from jax.experimental import pallas as pl
from jax.experimental.pallas import tpu as pltpu


def _round_up(x, m):
    return ((x + m - 1) // m) * m


def textcnn_kernel(ids_ref, t_ref, bconv_ref, wfc_ref, bfc_ref, out_ref, *,
                   seq_len, ks, f_pad):
    """ids_ref: (tb*S, 1) int32; t_ref: (V_pad, sum_k k*F_pad) bf16 (emb folded
    into conv weights); bconv_ref: (1, len(ks)*F_pad) f32; wfc_ref:
    (len(ks)*F_pad, C_pad) bf16; bfc_ref: (1, C_pad) f32; out_ref: (tb, C_pad)."""
    nr = ids_ref.shape[0]                    # tb * seq_len
    v_pad = t_ref.shape[0]
    tb = nr // seq_len

    # ---- Fused gather + all conv projections: one long-N MXU matmul --------
    ids = ids_ref[...]                                             # (nr, 1) int32
    iota_v = jax.lax.broadcasted_iota(jnp.int32, (nr, v_pad), 1)
    onehot = (ids == iota_v).astype(t_ref.dtype)                   # (nr, V_pad) bf16
    proj = jnp.dot(onehot, t_ref[...],
                   preferred_element_type=jnp.float32)             # (nr, sum_k k*F_pad)

    # ---- Per-kernel-size shifted adds (XLU roll) + max-over-time -----------
    pooled = []
    off = 0
    for k in ks:
        L = seq_len - k + 1
        acc = proj[:, off:off + f_pad]                             # offset j = 0
        for j in range(1, k):
            sl = proj[:, off + j * f_pad: off + (j + 1) * f_pad]   # lane-dense slice
            # roll by -j (== nr - j): row r picks up proj_j[r + j]; rows that
            # wrap land on time positions >= L and are masked below.
            acc = acc + pltpu.roll(sl, nr - j, axis=0)
        off += k * f_pad

        acc = acc.reshape(tb, seq_len, f_pad)                      # tile-aligned reshape
        t_pos = jax.lax.broadcasted_iota(jnp.int32, (tb, seq_len, f_pad), 1)
        acc = jnp.where(t_pos < L, acc, -jnp.inf)                  # mask invalid windows
        pooled.append(jnp.max(acc, axis=1))                        # (tb, F_pad)

    feats = jnp.concatenate(pooled, axis=-1)                       # (tb, len(ks)*F_pad)
    # Deferred bias + ReLU (exact: relu(x + b) is monotone, commutes with max).
    feats = jnp.maximum(feats + bconv_ref[...], 0.0)

    # TODO(synk): dropout(0.5) omitted — eval-mode identity (no RNG mask modeled).

    logits = jnp.dot(feats.astype(wfc_ref.dtype), wfc_ref[...],
                     preferred_element_type=jnp.float32) + bfc_ref[...]
    out_ref[...] = logits                                          # (tb, C_pad)


def textcnn_forward(x_ids, emb_table, conv_ws, conv_bs, fc_w, fc_b,
                    ks=(3, 4, 5), tb=16):
    """x_ids: (B, S) int32.  conv_ws[i]: (F, k_i, E), conv_bs[i]: (F,),
    fc_w: (C, len(ks)*F), fc_b: (C,).  Returns (B, C) float32 logits."""
    B, S = x_ids.shape
    V, E = emb_table.shape
    F = conv_bs[0].shape[0]
    C = fc_b.shape[0]

    F_pad = _round_up(F, 128)
    C_pad = _round_up(C, 128)
    V_pad = _round_up(V, 128)
    KF = len(ks) * F_pad
    N_total = sum(ks) * F_pad

    # >= 2 grid steps so "parallel" can actually split across v7x's two TCs.
    num_tiles = max(2, pl.cdiv(B, tb))
    B_pad = num_tiles * tb

    # Token ids: batch-pad with id 0, pre-flatten to (B_pad*S, 1) so the
    # kernel's one-hot compare is already 2-D (no in-kernel ids relayout).
    ids = jnp.zeros((B_pad, S), jnp.int32).at[:B].set(x_ids)
    ids_flat = ids.reshape(B_pad * S, 1)

    # Constant-fold the embedding table into the conv weights (done once by
    # XLA in f32):  T[v, (k, j, f)] = emb[v] . w_k[f, j, :].  Padded vocab
    # rows / filter columns are zero, so results are exact.
    emb_pad = jnp.zeros((V_pad, E), jnp.float32).at[:V].set(emb_table)
    w_blocks = []
    for k, w in zip(ks, conv_ws):
        for j in range(k):
            blk = jnp.zeros((E, F_pad), jnp.float32).at[:, :F].set(w[:, j, :].T)
            w_blocks.append(blk)
    w_all = jnp.concatenate(w_blocks, axis=1)                      # (E, N_total)
    t_all = jnp.dot(emb_pad, w_all).astype(jnp.bfloat16)           # (V_pad, N_total)

    # Concatenated conv biases (applied after pooling inside the kernel).
    b_all = jnp.zeros((1, KF), jnp.float32)
    for i, b in enumerate(conv_bs):
        b_all = b_all.at[0, i * F_pad:i * F_pad + F].set(b)

    # FC: (C, len(ks)*F) -> (len(ks)*F_pad, C_pad), keeping the concat order;
    # padded rows/cols are zero so padded filters contribute nothing.
    fc_w_t = fc_w.T                                                # (len(ks)*F, C)
    wfc = jnp.zeros((KF, C_pad), jnp.float32)
    for i in range(len(ks)):
        wfc = wfc.at[i * F_pad:i * F_pad + F, :C].set(fc_w_t[i * F:(i + 1) * F])
    wfc = wfc.astype(jnp.bfloat16)
    bfc = jnp.zeros((1, C_pad), jnp.float32).at[0, :C].set(fc_b)

    const = lambda i: (0, 0)
    kernel = functools.partial(textcnn_kernel, seq_len=S, ks=tuple(ks), f_pad=F_pad)

    out = pl.pallas_call(
        kernel,
        out_shape=jax.ShapeDtypeStruct((B_pad, C_pad), jnp.float32),
        grid=(num_tiles,),
        in_specs=[
            pl.BlockSpec((tb * S, 1), lambda i: (i, 0)),           # ids tile
            pl.BlockSpec((V_pad, N_total), const),                 # folded emb@conv (resident)
            pl.BlockSpec((1, KF), const),                          # conv biases
            pl.BlockSpec((KF, C_pad), const),                      # fc weights
            pl.BlockSpec((1, C_pad), const),                       # fc bias
        ],
        out_specs=pl.BlockSpec((tb, C_pad), lambda i: (i, 0)),
        compiler_params=pltpu.CompilerParams(
            dimension_semantics=("parallel",),
            vmem_limit_bytes=32 * 1024 * 1024,
        ),
    )(ids_flat, t_all, b_all, wfc, bfc)

    return out[:B, :C]


def _reference(x_ids, emb_table, conv_ws, conv_bs, fc_w, fc_b, ks=(3, 4, 5)):
    emb = emb_table[x_ids]                                         # (B, S, E)
    pooled = []
    for k, w, b in zip(ks, conv_ws, conv_bs):
        L = emb.shape[1] - k + 1
        win = jnp.stack([emb[:, j:j + L, :] for j in range(k)], axis=2)  # (B,L,k,E)
        conv = jnp.einsum('blke,fke->blf', win, w) + b
        pooled.append(jnp.max(jnp.maximum(conv, 0.0), axis=1))
    feats = jnp.concatenate(pooled, axis=-1)                       # (B, 300)
    return feats @ fc_w.T + fc_b


if __name__ == "__main__":
    vocab_size = 50
    embed_dim = 128          # module default
    num_filters = 100
    num_classes = 2
    ks = (3, 4, 5)
    B, S = 2, 16

    key = jax.random.PRNGKey(0)
    k_emb, k_ids, k_fc_w, k_fc_b, *k_conv = jax.random.split(key, 4 + 2 * len(ks))

    # Embedding table, padding_idx=0 row zeroed.
    emb_table = jax.random.normal(k_emb, (vocab_size, embed_dim), jnp.float32)
    emb_table = emb_table.at[0].set(0.0)

    # Conv weights (F, k, E) (PyTorch (F, 1, k, E) squeezed) + biases.
    conv_ws, conv_bs = [], []
    for i, k in enumerate(ks):
        lim = 1.0 / (k * embed_dim) ** 0.5
        conv_ws.append(jax.random.uniform(
            k_conv[2 * i], (num_filters, k, embed_dim), jnp.float32, -lim, lim))
        conv_bs.append(jax.random.uniform(
            k_conv[2 * i + 1], (num_filters,), jnp.float32, -lim, lim))

    lim_fc = 1.0 / (len(ks) * num_filters) ** 0.5
    fc_w = jax.random.uniform(k_fc_w, (num_classes, len(ks) * num_filters),
                              jnp.float32, -lim_fc, lim_fc)
    fc_b = jax.random.uniform(k_fc_b, (num_classes,), jnp.float32, -lim_fc, lim_fc)

    # Token ids with padded tails (id 0).
    x_ids = jax.random.randint(k_ids, (B, S), 1, vocab_size, jnp.int32)
    x_ids = x_ids.at[0, 12:].set(0)
    x_ids = x_ids.at[1, 10:].set(0)

    logits = textcnn_forward(x_ids, emb_table, conv_ws, conv_bs, fc_w, fc_b, ks=ks)
    jax.block_until_ready(logits)

    ref = _reference(x_ids, emb_table, conv_ws, conv_bs, fc_w, fc_b, ks=ks)
    assert logits.shape == (B, num_classes)
    assert jnp.allclose(logits, ref, atol=5e-2, rtol=5e-2), (logits, ref)

    print("KERNEL_OK")
</pallas_src>

<mosaic_0001>
module attributes {stable_mosaic.version = 11 : i64} {
  func.func @textcnn_kernel(%arg0: i32, %arg1: memref<256x1xi32, #tpu.memory_space<vmem>>, %arg2: memref<128x1536xbf16, #tpu.memory_space<vmem>>, %arg3: memref<1x384xf32, #tpu.memory_space<vmem>>, %arg4: memref<384x128xbf16, #tpu.memory_space<vmem>>, %arg5: memref<1x128xf32, #tpu.memory_space<vmem>>, %arg6: memref<16x128xf32, #tpu.memory_space<vmem>>) attributes {dimension_semantics = [#tpu.dimension_semantics<parallel>], iteration_bounds = array<i64: 2>, scalar_prefetch = 0 : i64, scratch_operands = 0 : i64, tpu.core_type = #tpu.core_type<tc>, window_params = [{transform_indices = @transform_0, window_bounds = array<i64: 256, 1>}, {pipeline_mode = #tpu.pipeline_mode<synchronous>, transform_indices = @transform_1, window_bounds = array<i64: 128, 1536>}, {pipeline_mode = #tpu.pipeline_mode<synchronous>, transform_indices = @transform_2, window_bounds = array<i64: 1, 384>}, {pipeline_mode = #tpu.pipeline_mode<synchronous>, transform_indices = @transform_3, window_bounds = array<i64: 384, 128>}, {pipeline_mode = #tpu.pipeline_mode<synchronous>, transform_indices = @transform_4, window_bounds = array<i64: 1, 128>}, {transform_indices = @transform_5, window_bounds = array<i64: 16, 128>}]} {
    %c0 = arith.constant 0 : index
    %c0_0 = arith.constant 0 : index
    %0 = vector.load %arg1[%c0, %c0_0] : memref<256x1xi32, #tpu.memory_space<vmem>>, vector<256x1xi32>
    %1 = tpu.iota {dimensions = array<i32: 1>} : vector<256x128xi32>
    %2 = vector.broadcast %0 : vector<256x1xi32> to vector<256x128xi32>
    %3 = arith.cmpi eq, %2, %1 : vector<256x128xi32>
    %4 = arith.extui %3 : vector<256x128xi1> to vector<256x128xi32>
    %5 = arith.sitofp %4 : vector<256x128xi32> to vector<256x128xf32>
    %6 = arith.truncf %5 : vector<256x128xf32> to vector<256x128xbf16>
    %c0_1 = arith.constant 0 : index
    %c0_2 = arith.constant 0 : index
    %7 = vector.load %arg2[%c0_1, %c0_2] : memref<128x1536xbf16, #tpu.memory_space<vmem>>, vector<128x1536xbf16>
    %cst = arith.constant dense<0.000000e+00> : vector<256x1536xf32>
    %8 = tpu.matmul %6, %7, %cst {dimension_numbers = #tpu.dot_dimension_numbers<[1], [0], [0], [1], [0, 0, 1, 1], [], []>} : vector<256x128xbf16>, vector<128x1536xbf16>, vector<256x1536xf32> -> vector<256x1536xf32>
    %9 = vector.extract_strided_slice %8 {offsets = [0, 0], sizes = [256, 128], strides = [1, 1]} : vector<256x1536xf32> to vector<256x128xf32>
    %10 = vector.extract_strided_slice %8 {offsets = [0, 128], sizes = [256, 128], strides = [1, 1]} : vector<256x1536xf32> to vector<256x128xf32>
    %c255_i32 = arith.constant 255 : i32
    %11 = tpu.dynamic_rotate %10 by %c255_i32 dim 0 : vector<256x128xf32>, i32 -> vector<256x128xf32>
    %12 = arith.addf %9, %11 : vector<256x128xf32>
    %13 = vector.extract_strided_slice %8 {offsets = [0, 256], sizes = [256, 128], strides = [1, 1]} : vector<256x1536xf32> to vector<256x128xf32>
    %c254_i32 = arith.constant 254 : i32
    %14 = tpu.dynamic_rotate %13 by %c254_i32 dim 0 : vector<256x128xf32>, i32 -> vector<256x128xf32>
    %15 = arith.addf %12, %14 : vector<256x128xf32>
    %16 = vector.shape_cast %15 : vector<256x128xf32> to vector<16x16x128xf32>
    %17 = tpu.iota {dimensions = array<i32: 1>} : vector<16x16x128xi32>
    %c14_i32 = arith.constant 14 : i32
    %18 = vector.broadcast %c14_i32 : i32 to vector<16x16x128xi32>
    %19 = arith.cmpi slt, %17, %18 : vector<16x16x128xi32>
    %cst_3 = arith.constant 0xFF800000 : f32
    %20 = vector.broadcast %cst_3 : f32 to vector<16x16x128xf32>
    %21 = arith.select %19, %16, %20 : vector<16x16x128xi1>, vector<16x16x128xf32>
    %cst_4 = arith.constant dense<0xFF800000> : vector<16x128xf32>
    %22 = vector.multi_reduction <maximumf>, %21, %cst_4 [1] : vector<16x16x128xf32> to vector<16x128xf32>
    %23 = vector.extract_strided_slice %8 {offsets = [0, 384], sizes = [256, 128], strides = [1, 1]} : vector<256x1536xf32> to vector<256x128xf32>
    %24 = vector.extract_strided_slice %8 {offsets = [0, 512], sizes = [256, 128], strides = [1, 1]} : vector<256x1536xf32> to vector<256x128xf32>
    %c255_i32_5 = arith.constant 255 : i32
    %25 = tpu.dynamic_rotate %24 by %c255_i32_5 dim 0 : vector<256x128xf32>, i32 -> vector<256x128xf32>
    %26 = arith.addf %23, %25 : vector<256x128xf32>
    %27 = vector.extract_strided_slice %8 {offsets = [0, 640], sizes = [256, 128], strides = [1, 1]} : vector<256x1536xf32> to vector<256x128xf32>
    %c254_i32_6 = arith.constant 254 : i32
    %28 = tpu.dynamic_rotate %27 by %c254_i32_6 dim 0 : vector<256x128xf32>, i32 -> vector<256x128xf32>
    %29 = arith.addf %26, %28 : vector<256x128xf32>
    %30 = vector.extract_strided_slice %8 {offsets = [0, 768], sizes = [256, 128], strides = [1, 1]} : vector<256x1536xf32> to vector<256x128xf32>
    %c253_i32 = arith.constant 253 : i32
    %31 = tpu.dynamic_rotate %30 by %c253_i32 dim 0 : vector<256x128xf32>, i32 -> vector<256x128xf32>
    %32 = arith.addf %29, %31 : vector<256x128xf32>
    %33 = vector.shape_cast %32 : vector<256x128xf32> to vector<16x16x128xf32>
    %34 = tpu.iota {dimensions = array<i32: 1>} : vector<16x16x128xi32>
    %c13_i32 = arith.constant 13 : i32
    %35 = vector.broadcast %c13_i32 : i32 to vector<16x16x128xi32>
    %36 = arith.cmpi slt, %34, %35 : vector<16x16x128xi32>
    %cst_7 = arith.constant 0xFF800000 : f32
    %37 = vector.broadcast %cst_7 : f32 to vector<16x16x128xf32>
    %38 = arith.select %36, %33, %37 : vector<16x16x128xi1>, vector<16x16x128xf32>
    %cst_8 = arith.constant dense<0xFF800000> : vector<16x128xf32>
    %39 = vector.multi_reduction <maximumf>, %38, %cst_8 [1] : vector<16x16x128xf32> to vector<16x128xf32>
    %40 = vector.extract_strided_slice %8 {offsets = [0, 896], sizes = [256, 128], strides = [1, 1]} : vector<256x1536xf32> to vector<256x128xf32>
    %41 = vector.extract_strided_slice %8 {offsets = [0, 1024], sizes = [256, 128], strides = [1, 1]} : vector<256x1536xf32> to vector<256x128xf32>
    %c255_i32_9 = arith.constant 255 : i32
    %42 = tpu.dynamic_rotate %41 by %c255_i32_9 dim 0 : vector<256x128xf32>, i32 -> vector<256x128xf32>
    %43 = arith.addf %40, %42 : vector<256x128xf32>
    %44 = vector.extract_strided_slice %8 {offsets = [0, 1152], sizes = [256, 128], strides = [1, 1]} : vector<256x1536xf32> to vector<256x128xf32>
    %c254_i32_10 = arith.constant 254 : i32
    %45 = tpu.dynamic_rotate %44 by %c254_i32_10 dim 0 : vector<256x128xf32>, i32 -> vector<256x128xf32>
    %46 = arith.addf %43, %45 : vector<256x128xf32>
    %47 = vector.extract_strided_slice %8 {offsets = [0, 1280], sizes = [256, 128], strides = [1, 1]} : vector<256x1536xf32> to vector<256x128xf32>
    %c253_i32_11 = arith.constant 253 : i32
    %48 = tpu.dynamic_rotate %47 by %c253_i32_11 dim 0 : vector<256x128xf32>, i32 -> vector<256x128xf32>
    %49 = arith.addf %46, %48 : vector<256x128xf32>
    %50 = vector.extract_strided_slice %8 {offsets = [0, 1408], sizes = [256, 128], strides = [1, 1]} : vector<256x1536xf32> to vector<256x128xf32>
    %c252_i32 = arith.constant 252 : i32
    %51 = tpu.dynamic_rotate %50 by %c252_i32 dim 0 : vector<256x128xf32>, i32 -> vector<256x128xf32>
    %52 = arith.addf %49, %51 : vector<256x128xf32>
    %53 = vector.shape_cast %52 : vector<256x128xf32> to vector<16x16x128xf32>
    %54 = tpu.iota {dimensions = array<i32: 1>} : vector<16x16x128xi32>
    %c12_i32 = arith.constant 12 : i32
    %55 = vector.broadcast %c12_i32 : i32 to vector<16x16x128xi32>
    %56 = arith.cmpi slt, %54, %55 : vector<16x16x128xi32>
    %cst_12 = arith.constant 0xFF800000 : f32
    %57 = vector.broadcast %cst_12 : f32 to vector<16x16x128xf32>
    %58 = arith.select %56, %53, %57 : vector<16x16x128xi1>, vector<16x16x128xf32>
    %cst_13 = arith.constant dense<0xFF800000> : vector<16x128xf32>
    %59 = vector.multi_reduction <maximumf>, %58, %cst_13 [1] : vector<16x16x128xf32> to vector<16x128xf32>
    %60 = tpu.concatenate %22, %39, %59 in 1 : vector<16x128xf32>, vector<16x128xf32>, vector<16x128xf32> -> vector<16x384xf32>
    %c0_14 = arith.constant 0 : index
    %c0_15 = arith.constant 0 : index
    %61 = vector.load %arg3[%c0_14, %c0_15] : memref<1x384xf32, #tpu.memory_space<vmem>>, vector<1x384xf32>
    %62 = vector.broadcast %61 : vector<1x384xf32> to vector<16x384xf32>
    %63 = arith.addf %60, %62 : vector<16x384xf32>
    %cst_16 = arith.constant 0.000000e+00 : f32
    %64 = vector.broadcast %cst_16 : f32 to vector<16x384xf32>
    %65 = arith.maximumf %63, %64 : vector<16x384xf32>
    %66 = arith.truncf %65 : vector<16x384xf32> to vector<16x384xbf16>
    %c0_17 = arith.constant 0 : index
    %c0_18 = arith.constant 0 : index
    %67 = vector.load %arg4[%c0_17, %c0_18] : memref<384x128xbf16, #tpu.memory_space<vmem>>, vector<384x128xbf16>
    %cst_19 = arith.constant dense<0.000000e+00> : vector<16x128xf32>
    %68 = tpu.matmul %66, %67, %cst_19 {dimension_numbers = #tpu.dot_dimension_numbers<[1], [0], [0], [1], [0, 0, 1, 1], [], []>} : vector<16x384xbf16>, vector<384x128xbf16>, vector<16x128xf32> -> vector<16x128xf32>
    %c0_20 = arith.constant 0 : index
    %c0_21 = arith.constant 0 : index
    %69 = vector.load %arg5[%c0_20, %c0_21] : memref<1x128xf32, #tpu.memory_space<vmem>>, vector<1x128xf32>
    %70 = vector.broadcast %69 : vector<1x128xf32> to vector<16x128xf32>
    %71 = arith.addf %68, %70 : vector<16x128xf32>
    %c0_22 = arith.constant 0 : index
    %c0_23 = arith.constant 0 : index
    %72 = vector.load %arg6[%c0_22, %c0_23] : memref<16x128xf32, #tpu.memory_space<vmem>>, vector<16x128xf32>
    tpu.vector_store %arg6[%c0_22, %c0_23], %71 {strides = array<i32>} : memref<16x128xf32, #tpu.memory_space<vmem>>, vector<16x128xf32>,
    return
  }
  func.func @transform_0(%arg0: i32) -> (i32, i32) {
    %c0_i32 = arith.constant 0 : i32
    %c0_i32_0 = arith.constant 0 : i32
    return %arg0, %c0_i32 : i32, i32
  }
  func.func @transform_1(%arg0: i32) -> (i32, i32) {
    %c0_i32 = arith.constant 0 : i32
    %c0_i32_0 = arith.constant 0 : i32
    %c0_i32_1 = arith.constant 0 : i32
    return %c0_i32, %c0_i32_0 : i32, i32
  }
  func.func @transform_2(%arg0: i32) -> (i32, i32) {
    %c0_i32 = arith.constant 0 : i32
    %c0_i32_0 = arith.constant 0 : i32
    %c0_i32_1 = arith.constant 0 : i32
    return %c0_i32, %c0_i32_0 : i32, i32
  }
  func.func @transform_3(%arg0: i32) -> (i32, i32) {
    %c0_i32 = arith.constant 0 : i32
    %c0_i32_0 = arith.constant 0 : i32
    %c0_i32_1 = arith.constant 0 : i32
    return %c0_i32, %c0_i32_0 : i32, i32
  }
  func.func @transform_4(%arg0: i32) -> (i32, i32) {
    %c0_i32 = arith.constant 0 : i32
    %c0_i32_0 = arith.constant 0 : i32
    %c0_i32_1 = arith.constant 0 : i32
    return %c0_i32, %c0_i32_0 : i32, i32
  }
  func.func @transform_5(%arg0: i32) -> (i32, i32) {
    %c0_i32 = arith.constant 0 : i32
    %c0_i32_0 = arith.constant 0 : i32
    return %arg0, %c0_i32 : i32, i32
  }
}

</mosaic_0001>

<bundles_post_ra>
// kernel: tpu_custom_call.1
= control target key start
LH: loop header
LB: loop body
LE: loop exit
PB: predicated region body
PF: predicated region fallthrough
CT: control target
= control target key end

     0   :  { %10 = vsyncpa [#allocation3], 0  ;;  %s7048_s0 = inlined_call_operand.vmem [shape: s32[512,1], index: 0, kind: input, shape index: {}]   ;;  %s7049_s1 = inlined_call_operand.hbm [shape: bf16[128,1536], index: 1, kind: input, shape index: {}]   ;;  %s7050_s2 = inlined_call_operand.vmem [shape: f32[1,384], index: 2, kind: input, shape index: {}]   ;;  %s7051_s3 = inlined_call_operand.vmem [shape: bf16[384,128], index: 3, kind: input, shape index: {}]   ;;  %s7052_s4 = inlined_call_operand.vmem [shape: f32[1,128], index: 4, kind: input, shape index: {}]   ;;  %s7053_s5 = inlined_call_operand.hbm [shape: f32[32,128], index: 5, kind: output, shape index: {}]  }
   0x1   :  { %11 = vsyncpa [#allocation4], 0 }
   0x2   :  { %13 = vsyncpa [#allocation4 + $0x1], 0  ;;  %s5122_s18 = smov 0   ;;  %s5124_s19 = smov 0  }
   0x3   :  { %s5126_s20 = smov 0   ;;  %s5128_s21 = smov 0  }
   0x4 LB: > { %s5143_s22 = sadd.s32 4294967295, %s5083_s21   ;;  %s3894_s23 = sadd.s32 4294967294, %s5083_s21   ;;  %s5083_s21 = sphi %s5128_s21, %s7412_s21   ;;  %s5079_s20 = sphi %s5126_s20, %s7411_s20   ;;  %s5075_s19 = sphi %s5124_s19, %s7410_s19   ;;  %s5071_s18 = sphi %s5122_s18, %s7409_s18  }
   0x5   : > { %s5147_s24 = sadd.s32 1, %s5083_s21   ;;  %s136_s25 = sadd.s32 1, %s5079_s20 }
   0x6   : > { %s133_s26 = ssub.s32 %s5083_s21, %s5147_s24  ;;  %p146_p0 = scmp.ne.s32.totalorder %s5079_s20, %s5075_s19 }
   0x7   : > { %p134_p1 = scmp.eq.s32.totalorder %s133_s26, 0  ;;  %p147_p2 = scmp.eq.s32.totalorder %s5143_s22, 1 }
   0x8   : > { %p152_p3 = scmp.ne.s32.totalorder %s5075_s19, %s5071_s18  ;;  %p153_p4 = scmp.eq.s32.totalorder %s3894_s23, 1 }
   0x9   : > { %s5158_s27 = scalar_select %p134_p1, %s5079_s20, %s136_s25  }
   0xa   : > { %p5160_p5 = por %p147_p2, %p146_p0  ;;  %p5164_p6 = por %p153_p4, %p152_p3 }
   0xb   : > { %p3895_p7 = scmp.ge.s32.totalorder %s5083_s21, 1  ;;  %p160_p8 = scmp.lt.s32.totalorder %s5083_s21, 3 }
   0xc   : > { %p4939_p9 = scmp.eq.s32.totalorder %s5143_s22, 0  ;;  %s171_s7 = sshll.u32 %s7049_s1, 4  ;;  %s172_s7 = int_to_ptr.hbm [resolvable:$true] %s171_s7 }
   0xd   : > { %p161_p10 = pnand %p3895_p7, %p160_p8  ;;  %s5085_s8 = smov [#allocation2]  }
   0xe   : > { %s173_s9 = sshll.u32 %s5085_s8, 4  ;;  %s5086_s10 = smov 768   ;;  %s174_s9 = int_to_ptr.vmem [resolvable:$true] %s173_s9 }
   0xf   : > { %p4931_p11 = pneg %p161_p10  ;;  %s5087_s11 = smov 48  }
  0x10   : > { %207 = sbr.rel (%p161_p10) target bundleno = 1223 (0x4c7), region = 40 }
  0x11   : > { %p4932_p12 = pnand %p4939_p9, %p4931_p11 }
  0x13   : > { %4934 = dma.hbm_to_vmem [thread:$0]  (!%p4932_p12), %s172_s7, 12288, %s174_s9, [#allocation3], %s5086_s10, %s5086_s10, %s5087_s11  }
  0x15   : > { %5062 = dma.done.wait (%p4939_p9), [#allocation3], 12288  }
  0x16   : > { %5064 = vsyncadd (%p4939_p9), [#allocation3], 4294955008  ;;  %s3901_s12 = sshll.u32 %s5143_s22, 5  ;;  %v5088_v0 = vmov 0   ;;  %v4273_v27 = vld [vmem:[#allocation2 + $0x2a0] sm:$0xf] }
  0x17   : > { %4983 = vset.pattern.permute.xlu2 %v5088_v0  ;;  %4982 = vset.pattern.permute.xlu1 %v5088_v0  ;;  %p237_p13 = scmp.lt.s32.totalorder %s3901_s12, 63  ;;  %v4894_v28 = vld [vmem:[#allocation2 + $0x2cc] sm:$0xf0]  ;;  %v4888_v29 = vld [vmem:[#allocation2 + $0x2a4] sm:$0xf]  ;;  %s233_s9 = sand.u32 1, %s5075_s19  }
  0x18   : > { %4981 = vset.pattern.permute.xlu0 %v5088_v0  ;;  %v4274_v31 = vor.u32 %v4894_v28, %v4273_v27  ;;  %v4275_v32 = vld [vmem:[#allocation2 + $0x2d0] sm:$0xf0]  ;;  %v4281_v33 = vld [vmem:[#allocation2 + $0x2a8] sm:$0xf]  ;;  %v4895_v34 = vld [vmem:[#allocation2 + $0x2d4] sm:$0xf0] }
  0x19   : > { %s7414_s12 = smov (!%p237_p13, %s3901_s12), 63  ;;  %v4278_v35 = vor.u32 %v4888_v29, %v4275_v32  ;;  %v4282_v36 = vor.u32 %v4895_v34, %v4281_v33  ;;  %v4889_v37 = vld [vmem:[#allocation2 + $0x2ac] sm:$0xf]  ;;  %v4283_v38 = vld [vmem:[#allocation2 + $0x2d8] sm:$0xf0]  ;;  %s3900_s10 = sshll.u32 %s233_s9, 4 }
  0x1a   : > { %s3902_s13 = sshll.u32 %s7414_s12, 3  ;;  %v4225_v39 = vld [vmem:[#allocation2 + $0x240] sm:$0xf]  ;;  %1061 = vmatpush.bf16.msra.mxu0 %v4274_v31  ;;  %v4286_v40 = vor.u32 %v4889_v37, %v4283_v38  ;;  %v4882_v41 = vld [vmem:[#allocation2 + $0x26c] sm:$0xf0]  ;;  %s4924_s11 = sshll.u32 %s5143_s22, 4 }
  0x1b   : > { %s5184_s16 = scalar_lea.vmem %s7048_s0, %s3902_s13  ;;  %v4876_v42 = vld [vmem:[#allocation2 + $0x244] sm:$0xf]  ;;  %v4227_v43 = vld [vmem:[#allocation2 + $0x270] sm:$0xf0]  ;;  %1150 = vmatpush.bf16.msra.mxu1 %v4278_v35  ;;  %1239 = vmatpush.bf16.msra.mxu2 %v4282_v36  ;;  %v4226_v44 = vor.u32 %v4882_v41, %v4225_v39  ;;  %v4233_v46 = vld [vmem:[#allocation2 + $0x248] sm:$0xf]  ;;  %s3816_s15 = scalar_lea.hbm %s7053_s5, %s4924_s11 }
  0x1c   : > { %v247_v1 = vld [vmem:[%s5184_s16 + $0x20] sm:$0xff]  ;;  %v245_v2 = vld [vmem:[%s5184_s16 + $0x10] sm:$0xff]  ;;  %v248_v4 = vld [vmem:[%s5184_s16 + $0x28] sm:$0xff]  ;;  %v4230_v45 = vor.u32 %v4876_v42, %v4227_v43  ;;  %1328 = vmatpush.bf16.msra.mxu3 %v4286_v40  ;;  %s235_s12 = scalar_lea.vmem [#allocation5], %s3900_s10  ;;  %s3819_s17 = sshll.u32 %s3816_s15, 4  ;;  %s3820_s17 = int_to_ptr.hbm [resolvable:$true] %s3819_s17 }
  0x1d   : > { %v243_v3 = vld [vmem:[%s5184_s16] sm:$0xff]  ;;  %290 = vperm.xlu2 %4983, %v247_v1   ;;  %284 = vperm.xlu1 %4982, %v245_v2   ;;  %v246_v5 = vld [vmem:[%s5184_s16 + $0x18] sm:$0xff]  ;;  %v244_v6 = vld [vmem:[%s5184_s16 + $0x8] sm:$0xff]  ;;  %s3805_s23 = scalar_lea.sflag [#allocation4], %s233_s9  ;;  %s5031_s22 = sshra.s32 %s3820_s17, 4  ;;  %s5032_s22 = int_to_ptr.hbm [resolvable:$true] %s5031_s22 }
  0x1e   : > { %278 = vperm.xlu0 %4981, %v243_v3   ;;  %v251_v7 = vld [vmem:[%s5184_s16 + $0x40] sm:$0xff]  ;;  %v250_v8 = vld [vmem:[%s5184_s16 + $0x38] sm:$0xff]  ;;  %v249_v9 = vld [vmem:[%s5184_s16 + $0x30] sm:$0xff]  ;;  %1062 = vmatpush.bf16.msra.mxu0 %v4226_v44  ;;  %s5033_s25 = scalar_lea.hbm %s5032_s22, 16  ;;  %s5037_s6 = scalar_lea.hbm %s7053_s5, 32 }
  0x1f   : > { %v254_v10 = vld [vmem:[%s5184_s16 + $0x58] sm:$0xff]  ;;  %v253_v11 = vld [vmem:[%s5184_s16 + $0x50] sm:$0xff]  ;;  %v252_v12 = vld [vmem:[%s5184_s16 + $0x48] sm:$0xff]  ;;  %1151 = vmatpush.bf16.msra.mxu1 %v4230_v45  ;;  %p5034_p0 = scmp.ne.s32.totalorder %s5032_s22, %s5033_s25  ;;  %p5038_p3 = scmp.lt.s32.totalorder %s5032_s22, %s7053_s5 }
  0x20   : > { %v257_v13 = vld [vmem:[%s5184_s16 + $0x70] sm:$0xff]  ;;  %v256_v14 = vld [vmem:[%s5184_s16 + $0x68] sm:$0xff]  ;;  %v255_v15 = vld [vmem:[%s5184_s16 + $0x60] sm:$0xff]  ;;  %p5039_p4 = scmp.lt.s32.totalorder %s5037_s6, %s5033_s25 }
  0x21   : > { %v260_v16 = vld [vmem:[%s5184_s16 + $0x88] sm:$0xff]  ;;  %v259_v17 = vld [vmem:[%s5184_s16 + $0x80] sm:$0xff]  ;;  %v258_v18 = vld [vmem:[%s5184_s16 + $0x78] sm:$0xff]  ;;  %p5035_p1 = pnand %p5034_p0, %p5160_p5 }
  0x22   : > { %v263_v19 = vld [vmem:[%s5184_s16 + $0xa0] sm:$0xff]  ;;  %v262_v20 = vld [vmem:[%s5184_s16 + $0x98] sm:$0xff]  ;;  %v261_v21 = vld [vmem:[%s5184_s16 + $0x90] sm:$0xff]  ;;  %p5040_p7 = por %p5039_p4, %p5038_p3 }
  0x23   : > { %v266_v22 = vld [vmem:[%s5184_s16 + $0xb8] sm:$0xff]  ;;  %v265_v23 = vld [vmem:[%s5184_s16 + $0xb0] sm:$0xff]  ;;  %v264_v24 = vld [vmem:[%s5184_s16 + $0xa8] sm:$0xff]  ;;  %p5036_p2 = pneg %p5035_p1 }
  0x24   : > { %v269_v25 = vld [vmem:[%s5184_s16 + $0xd0] sm:$0xff]  ;;  %v268_v26 = vld [vmem:[%s5184_s16 + $0xc8] sm:$0xff]  ;;  %v267_v30 = vld [vmem:[%s5184_s16 + $0xc0] sm:$0xff] }
  0x25   : > { %293 = vperm.xlu2 %4983, %v248_v4   ;;  %287 = vperm.xlu1 %4982, %v246_v5   ;;  %v4883_v47 = vld [vmem:[#allocation2 + $0x274] sm:$0xf0]  ;;  %v4877_v48 = vld [vmem:[#allocation2 + $0x24c] sm:$0xf]  ;;  %v4235_v50 = vld [vmem:[#allocation2 + $0x278] sm:$0xf0]  ;;  %p5041_p8 = pnand %p5040_p7, %p5036_p2 }
  0x26   : > { %281 = vperm.xlu0 %4981, %v244_v6   ;;  %v4234_v49 = vor.u32 %v4883_v47, %v4233_v46  ;;  %v4238_v51 = vor.u32 %v4877_v48, %v4235_v50  ;;  %v272_v52 = vld [vmem:[%s5184_s16 + $0xe8] sm:$0xff]  ;;  %v271_v53 = vld [vmem:[%s5184_s16 + $0xe0] sm:$0xff]  ;;  %v270_v54 = vld [vmem:[%s5184_s16 + $0xd8] sm:$0xff] }
  0x27   : > { %v4177_v55 = vld [vmem:[#allocation2 + $0x1e0] sm:$0xf]  ;;  %v4870_v56 = vld [vmem:[#allocation2 + $0x20c] sm:$0xf0]  ;;  %v4864_v57 = vld [vmem:[#allocation2 + $0x1e4] sm:$0xf] }
  0x28   : > { %1240 = vmatpush.bf16.msra.mxu2 %v4234_v49  ;;  %1329 = vmatpush.bf16.msra.mxu3 %v4238_v51  ;;  %v4178_v58 = vor.u32 %v4870_v56, %v4177_v55  ;;  %v4179_v59 = vld [vmem:[#allocation2 + $0x210] sm:$0xf0]  ;;  %v4185_v60 = vld [vmem:[#allocation2 + $0x1e8] sm:$0xf]  ;;  %v4871_v61 = vld [vmem:[#allocation2 + $0x214] sm:$0xf0] }
  0x29   : > { %v4182_v62 = vor.u32 %v4864_v57, %v4179_v59  ;;  %v4186_v63 = vor.u32 %v4871_v61, %v4185_v60  ;;  %v4865_v0 = vld [vmem:[#allocation2 + $0x1ec] sm:$0xf]  ;;  %v4187_v1 = vld [vmem:[#allocation2 + $0x218] sm:$0xf0]  ;;  %v4129_v2 = vld [vmem:[#allocation2 + $0x180] sm:$0xf] }
  0x2a   : > { %1063 = vmatpush.bf16.msra.mxu0 %v4178_v58  ;;  %v4190_v3 = vor.u32 %v4865_v0, %v4187_v1  ;;  %v4858_v4 = vld [vmem:[#allocation2 + $0x1ac] sm:$0xf0]  ;;  %v4852_v5 = vld [vmem:[#allocation2 + $0x184] sm:$0xf]  ;;  %v4131_v6 = vld [vmem:[#allocation2 + $0x1b0] sm:$0xf0] }
  0x2b   : > { %1152 = vmatpush.bf16.msra.mxu1 %v4182_v62  ;;  %v4033_v27 = vld [vmem:[#allocation2 + $0xc0] sm:$0xf]  ;;  %v4828_v31 = vld [vmem:[#allocation2 + $0xc4] sm:$0xf]  ;;  %v4035_v32 = vld [vmem:[#allocation2 + $0xf0] sm:$0xf0] }
  0x2c   : > { %1241 = vmatpush.bf16.msra.mxu2 %v4186_v63  ;;  %1330 = vmatpush.bf16.msra.mxu3 %v4190_v3  ;;  %v4041_v34 = vld [vmem:[#allocation2 + $0xc8] sm:$0xf]  ;;  %v4835_v35 = vld [vmem:[#allocation2 + $0xf4] sm:$0xf0]  ;;  %v4829_v36 = vld [vmem:[#allocation2 + $0xcc] sm:$0xf]  ;;  %v4038_v38 = vor.u32 %v4828_v31, %v4035_v32 }
  0x2d   : > { %302 = vperm.xlu2 %4983, %v251_v7   ;;  %299 = vperm.xlu1 %4982, %v250_v8   ;;  %v4130_v7 = vor.u32 %v4858_v4, %v4129_v2  ;;  %v4137_v8 = vld [vmem:[#allocation2 + $0x188] sm:$0xf]  ;;  %v4043_v37 = vld [vmem:[#allocation2 + $0xf8] sm:$0xf0]  ;;  %v4042_v39 = vor.u32 %v4835_v35, %v4041_v34  ;;  %v3985_v41 = vld [vmem:[#allocation2 + $0x60] sm:$0xf] }
  0x2e   : > { %296 = vperm.xlu0 %4981, %v249_v9   ;;  %v4859_v9 = vld [vmem:[#allocation2 + $0x1b4] sm:$0xf0]  ;;  %v4046_v40 = vor.u32 %v4829_v36, %v4043_v37  ;;  %v4822_v42 = vld [vmem:[#allocation2 + $0x8c] sm:$0xf0]  ;;  %v4816_v43 = vld [vmem:[#allocation2 + $0x64] sm:$0xf] }
  0x2f   : > { %1064 = vmatpush.bf16.msra.mxu0 %v4130_v7  ;;  %v3986_v44 = vor.u32 %v4822_v42, %v3985_v41  ;;  %v3987_v45 = vld [vmem:[#allocation2 + $0x90] sm:$0xf0]  ;;  %v3993_v46 = vld [vmem:[#allocation2 + $0x68] sm:$0xf]  ;;  %v4823_v47 = vld [vmem:[#allocation2 + $0x94] sm:$0xf0] }
  0x30   : > { %v3990_v48 = vor.u32 %v4816_v43, %v3987_v45  ;;  %v3994_v49 = vor.u32 %v4823_v47, %v3993_v46  ;;  %v4817_v50 = vld [vmem:[#allocation2 + $0x6c] sm:$0xf]  ;;  %v3995_v51 = vld [vmem:[#allocation2 + $0x98] sm:$0xf0]  ;;  %v4804_v55 = vld [vmem:[#allocation2 + $0x4] sm:$0xf] }
  0x31   : > { %v3939_v56 = vld [vmem:[#allocation2 + $0x30] sm:$0xf0]  ;;  %v3945_v58 = vld [vmem:[#allocation2 + $0x8] sm:$0xf]  ;;  %v4811_v59 = vld [vmem:[#allocation2 + $0x34] sm:$0xf0] }
  0x32   : > { %v4805_v60 = vld [vmem:[#allocation2 + $0xc] sm:$0xf]  ;;  %v3942_v61 = vor.u32 %v4804_v55, %v3939_v56  ;;  %v3947_v62 = vld [vmem:[#allocation2 + $0x38] sm:$0xf0]  ;;  %v3946_v63 = vor.u32 %v4811_v59, %v3945_v58  ;;  %v4297_v1 = vld [vmem:[#allocation2 + $0x2b8] sm:$0xf] }
  0x33   : > { %v3950_v0 = vor.u32 %v4805_v60, %v3947_v62  ;;  %v4897_v2 = vld [vmem:[#allocation2 + $0x2e4] sm:$0xf0]  ;;  %v4289_v3 = vld [vmem:[#allocation2 + $0x2b0] sm:$0xf]  ;;  %v4299_v7 = vld [vmem:[#allocation2 + $0x2e8] sm:$0xf0] }
  0x34   : > { %v4298_v4 = vor.u32 %v4897_v2, %v4297_v1  ;;  %v7110_v36 = vmov 0  ;;  %v4201_v37 = vld [vmem:[#allocation2 + $0x1f8] sm:$0xf]  ;;  %v4872_v41 = vld [vmem:[#allocation2 + $0x21c] sm:$0xf0] }
  0x35   : > { %311 = vperm.xlu2 %4983, %v254_v10   ;;  %308 = vperm.xlu1 %4982, %v253_v11   ;;  %v4853_v10 = vld [vmem:[#allocation2 + $0x18c] sm:$0xf]  ;;  %v4134_v11 = vor.u32 %v4852_v5, %v4131_v6  ;;  %v4896_v5 = vld [vmem:[#allocation2 + $0x2dc] sm:$0xf0]  ;;  %v4891_v6 = vld [vmem:[#allocation2 + $0x2bc] sm:$0xf] }
  0x36   : > { %305 = vperm.xlu0 %4981, %v252_v12   ;;  %v4139_v12 = vld [vmem:[#allocation2 + $0x1b8] sm:$0xf0]  ;;  %v4203_v43 = vld [vmem:[#allocation2 + $0x228] sm:$0xf0]  ;;  %v4866_v46 = vld [vmem:[#allocation2 + $0x1f4] sm:$0xf] }
  0x37   : > { %1153 = vmatpush.bf16.msra.mxu1 %v4134_v11  ;;  %v4291_v11 = vld [vmem:[#allocation2 + $0x2e0] sm:$0xf0]  ;;  %v4867_v42 = vld [vmem:[#allocation2 + $0x1fc] sm:$0xf]  ;;  %v4153_v55 = vld [vmem:[#allocation2 + $0x198] sm:$0xf] }
  0x38   : > { %v4206_v45 = vor.u32 %v4867_v42, %v4203_v43  ;;  %v4195_v47 = vld [vmem:[#allocation2 + $0x220] sm:$0xf0]  ;;  %v4861_v56 = vld [vmem:[#allocation2 + $0x1c4] sm:$0xf0]  ;;  %v4860_v59 = vld [vmem:[#allocation2 + $0x1bc] sm:$0xf0] }
  0x39   : > { %v4154_v58 = vor.u32 %v4861_v56, %v4153_v55  ;;  %v4855_v60 = vld [vmem:[#allocation2 + $0x19c] sm:$0xf]  ;;  %v4147_v1 = vld [vmem:[#allocation2 + $0x1c0] sm:$0xf0]  ;;  %v4057_v42 = vld [vmem:[#allocation2 + $0xd8] sm:$0xf] }
  0x3a   : > { %v4837_v43 = vld [vmem:[#allocation2 + $0x104] sm:$0xf0] }
  0x3d   : > { %320 = vperm.xlu2 %4983, %v257_v13   ;;  %317 = vperm.xlu1 %4982, %v256_v14   ;;  %v4138_v13 = vor.u32 %v4859_v9, %v4137_v8  ;;  %v4142_v14 = vor.u32 %v4853_v10, %v4139_v12  ;;  %v4290_v8 = vor.u32 %v4896_v5, %v4289_v3  ;;  %v4890_v10 = vld [vmem:[#allocation2 + $0x2b4] sm:$0xf] }
  0x3e   : > { %314 = vperm.xlu0 %4981, %v255_v15   ;;  %v274_v15 = vld [vmem:[%s5184_s16 + $0xf8] sm:$0xff]  ;;  %v4302_v9 = vor.u32 %v4891_v6, %v4299_v7  ;;  %v4294_v12 = vor.u32 %v4890_v10, %v4291_v11  ;;  %v4849_v10 = vld [vmem:[#allocation2 + $0x164] sm:$0xf0]  ;;  %v4097_v11 = vld [vmem:[#allocation2 + $0x130] sm:$0xf] }
  0x3f   : > { %1242 = vmatpush.bf16.msra.mxu2 %v4138_v13  ;;  %1331 = vmatpush.bf16.msra.mxu3 %v4142_v14  ;;  %v275_v14 = vlaneseq }
  0x45   : > { %329 = vperm.xlu2 %4983, %v260_v16   ;;  %326 = vperm.xlu1 %4982, %v259_v17   ;;  %v4081_v16 = vld [vmem:[#allocation2 + $0x120] sm:$0xf]  ;;  %v4846_v17 = vld [vmem:[#allocation2 + $0x14c] sm:$0xf0] }
  0x46   : > { %323 = vperm.xlu0 %4981, %v258_v18   ;;  %v4840_v18 = vld [vmem:[#allocation2 + $0x124] sm:$0xf] }
  0x4d   : > { %338 = vperm.xlu2 %4983, %v263_v19   ;;  %335 = vperm.xlu1 %4982, %v262_v20   ;;  %v273_v19 = vld [vmem:[%s5184_s16 + $0xf0] sm:$0xff]  ;;  %v4082_v20 = vor.u32 %v4846_v17, %v4081_v16  ;;  %s3817_s16 = sshll.u32 %s235_s12, 4  ;;  %s3818_s16 = int_to_ptr.vmem [resolvable:$true] %s3817_s16 }
  0x4e   : > { %332 = vperm.xlu0 %4981, %v261_v21   ;;  %v4083_v21 = vld [vmem:[#allocation2 + $0x150] sm:$0xf0] }
  0x4f   : > { %1065 = vmatpush.bf16.msra.mxu0 %v4082_v20  ;;  %v4249_v20 = vld [vmem:[#allocation2 + $0x258] sm:$0xf] }
  0x55   : > { %347 = vperm.xlu2 %4983, %v266_v22   ;;  %344 = vperm.xlu1 %4982, %v265_v23   ;;  %v4089_v22 = vld [vmem:[#allocation2 + $0x128] sm:$0xf]  ;;  %v4847_v23 = vld [vmem:[#allocation2 + $0x154] sm:$0xf0] }
  0x56   : > { %341 = vperm.xlu0 %4981, %v264_v24   ;;  %v4086_v24 = vor.u32 %v4840_v18, %v4083_v21  ;;  %v4090_v28 = vor.u32 %v4847_v23, %v4089_v22  ;;  %v7072_v18 = vmov 1.0|1.0   ;;  %v4885_v21 = vld [vmem:[#allocation2 + $0x284] sm:$0xf0]  ;;  %v4241_v22 = vld [vmem:[#allocation2 + $0x250] sm:$0xf] }
  0x57   : > { %v4250_v23 = vor.u32 %v4885_v21, %v4249_v20 }
  0x58   : > { %1154 = vmatpush.bf16.msra.mxu1 %v4086_v24  ;;  %1243 = vmatpush.bf16.msra.mxu2 %v4090_v28  ;;  %v4884_v24 = vld [vmem:[#allocation2 + $0x27c] sm:$0xf0] }
  0x5c   : > { %1155 = vmatpush.bf16.msra.mxu1 %v4038_v38  ;;  %1244 = vmatpush.bf16.msra.mxu2 %v4042_v39  ;;  %v4873_v38 = vld [vmem:[#allocation2 + $0x224] sm:$0xf0]  ;;  %v4193_v39 = vld [vmem:[#allocation2 + $0x1f0] sm:$0xf] }
  0x5d   : > { %356 = vperm.xlu2 %4983, %v269_v25   ;;  %353 = vperm.xlu1 %4982, %v268_v26   ;;  %v4841_v25 = vld [vmem:[#allocation2 + $0x12c] sm:$0xf]  ;;  %v4091_v26 = vld [vmem:[#allocation2 + $0x158] sm:$0xf0] }
  0x5e   : > { %350 = vperm.xlu0 %4981, %v267_v30   ;;  %v4094_v29 = vor.u32 %v4841_v25, %v4091_v26  ;;  %v4834_v30 = vld [vmem:[#allocation2 + $0xec] sm:$0xf0]  ;;  %v4879_v25 = vld [vmem:[#allocation2 + $0x25c] sm:$0xf]  ;;  %v4251_v26 = vld [vmem:[#allocation2 + $0x288] sm:$0xf0] }
  0x5f   : > { %v4034_v33 = vor.u32 %v4834_v30, %v4033_v27  ;;  %v4242_v27 = vor.u32 %v4884_v24, %v4241_v22  ;;  %v4254_v28 = vor.u32 %v4879_v25, %v4251_v26  ;;  %v4243_v30 = vld [vmem:[#allocation2 + $0x280] sm:$0xf0]  ;;  %v4842_v22 = vld [vmem:[#allocation2 + $0x134] sm:$0xf] }
  0x60   : > { %1332 = vmatpush.bf16.msra.mxu3 %v4094_v29  ;;  %1156 = vmatpush.bf16.msra.mxu1 %v3990_v48  ;;  %v4878_v29 = vld [vmem:[#allocation2 + $0x254] sm:$0xf]  ;;  %v4198_v48 = vor.u32 %v4866_v46, %v4195_v47  ;;  %v4836_v46 = vld [vmem:[#allocation2 + $0xfc] sm:$0xf0]  ;;  %v4831_v47 = vld [vmem:[#allocation2 + $0xdc] sm:$0xf] }
  0x61   : > { %1066 = vmatpush.bf16.msra.mxu0 %v4034_v33  ;;  %1245 = vmatpush.bf16.msra.mxu2 %v3994_v49  ;;  %v4246_v31 = vor.u32 %v4878_v29, %v4243_v30 }
  0x64   : > { %1333 = vmatpush.bf16.msra.mxu3 %v4046_v40  ;;  %1157 = vmatpush.bf16.msra.mxu1 %v3942_v61  ;;  %v4202_v40 = vor.u32 %v4873_v38, %v4201_v37  ;;  %v4155_v61 = vld [vmem:[#allocation2 + $0x1c8] sm:$0xf0] }
  0x65   : > { %365 = vperm.xlu2 %4983, %v272_v52   ;;  %362 = vperm.xlu1 %4982, %v271_v53   ;;  %v3937_v52 = vld [vmem:[#allocation2] sm:$0xf]  ;;  %v3998_v53 = vor.u32 %v4817_v50, %v3995_v51 }
  0x66   : > { %359 = vperm.xlu0 %4981, %v270_v54   ;;  %1067 = vmatpush.bf16.msra.mxu0 %v3986_v44  ;;  %v4810_v54 = vld [vmem:[#allocation2 + $0x2c] sm:$0xf0]  ;;  %v4194_v44 = vor.u32 %v4872_v41, %v4193_v39 }
  0x67   : > { %v3938_v57 = vor.u32 %v4810_v54, %v3937_v52  ;;  %1246 = vmatpush.bf16.msra.mxu2 %v3946_v63  ;;  %v7115_v54 = vmov 0  ;;  %v4158_v63 = vor.u32 %v4855_v60, %v4155_v61 }
  0x68   : > { %1334 = vmatpush.bf16.msra.mxu3 %v3998_v53  ;;  %1506 = vmatpush.bf16.msrb.mxu1 %v4294_v12 }
  0x6a   : > { %1068 = vmatpush.bf16.msra.mxu0 %v3938_v57  ;;  %v4145_v57 = vld [vmem:[#allocation2 + $0x190] sm:$0xf] }
  0x6b   : > { %1595 = vmatpush.bf16.msrb.mxu2 %v4298_v4  ;;  %v4146_v62 = vor.u32 %v4860_v59, %v4145_v57 }
  0x6c   : > { %1335 = vmatpush.bf16.msra.mxu3 %v3950_v0  ;;  %1507 = vmatpush.bf16.msrb.mxu1 %v4246_v31  ;;  %v4854_v0 = vld [vmem:[#allocation2 + $0x194] sm:$0xf] }
  0x6d   : > { %371 = vperm.xlu1 %4982, %v274_v15   ;;  %v5219_v15 = vand.u32 127, %v275_v14  ;;  %v4150_v2 = vor.u32 %v4854_v0, %v4147_v1 }
  0x6e   : > { %368 = vperm.xlu0 %4981, %v273_v19   ;;  %1417 = vmatpush.bf16.msrb.mxu0 %v4290_v8  ;;  %v7120_v8 = vmov 0 }
  0x6f   : > { %1596 = vmatpush.bf16.msrb.mxu2 %v4250_v23  ;;  %v4099_v23 = vld [vmem:[#allocation2 + $0x160] sm:$0xf0] }
  0x70   : > { %1684 = vmatpush.bf16.msrb.mxu3 %v4302_v9  ;;  %1508 = vmatpush.bf16.msrb.mxu1 %v4198_v48  ;;  %v4105_v9 = vld [vmem:[#allocation2 + $0x138] sm:$0xf]  ;;  %v4102_v24 = vor.u32 %v4842_v22, %v4099_v23  ;;  %v4059_v48 = vld [vmem:[#allocation2 + $0x108] sm:$0xf0]  ;;  %v4830_v22 = vld [vmem:[#allocation2 + $0xd4] sm:$0xf] }
  0x71   : > { %v4106_v12 = vor.u32 %v4849_v10, %v4105_v9  ;;  %v4062_v55 = vor.u32 %v4831_v47, %v4059_v48  ;;  %v4051_v23 = vld [vmem:[#allocation2 + $0x100] sm:$0xf0] }
  0x72   : > { %1418 = vmatpush.bf16.msrb.mxu0 %v4242_v27  ;;  %v7123_v27 = vmov 0 }
  0x73   : > { %1597 = vmatpush.bf16.msrb.mxu2 %v4202_v40 }
  0x74   : > { %1685 = vmatpush.bf16.msrb.mxu3 %v4254_v28  ;;  %1509 = vmatpush.bf16.msrb.mxu1 %v4150_v2 }
  0x76   : > { %1419 = vmatpush.bf16.msrb.mxu0 %v4194_v44  ;;  %v4049_v44 = vld [vmem:[#allocation2 + $0xd0] sm:$0xf] }
  0x77   : > { %v291_v34 = vpop.permute.xlu2 %290  ;;  %1598 = vmatpush.bf16.msrb.mxu2 %v4154_v58 }
  0x78   : > { %vm377_vm6 = vcmp.eq.s32.totalorder %v291_v34, %v5219_v15  ;;  %1686 = vmatpush.bf16.msrb.mxu3 %v4206_v45  ;;  %1510 = vmatpush.bf16.msrb.mxu1 %v4102_v24  ;;  %v5386_v34 = vshrl.u32 %v275_v14, 7  ;;  %v4058_v45 = vor.u32 %v4837_v43, %v4057_v42 }
  0x7a   : > { %1420 = vmatpush.bf16.msrb.mxu0 %v4146_v62 }
  0x7b   : > { %1599 = vmatpush.bf16.msrb.mxu2 %v4106_v12 }
  0x7c   : > { %1687 = vmatpush.bf16.msrb.mxu3 %v4158_v63 }
  0x7f   : > { %v294_v35 = vpop.permute.xlu2 %293  ;;  %1600 = vmatpush.bf16.msrb.mxu2 %v4058_v45 }
  0x80   : > { %vm378_vm7 = vcmp.eq.s32.totalorder %v294_v35, %v5219_v15 }
  0x81   : > { %vm5259_vm8 = vmpackc.low %vm378_vm7, %vm377_vm6 }
  0x82   : > { %v7111_v36 = vsel %vm5259_vm8, 4294967295, %v7110_v36 }
  0x83   : > { %7112 = vst [vmem:[#allocation8_spill] sm:$0xff] %v7111_v36 }
  0x87   : > { %v303_v53 = vpop.permute.xlu2 %302 }
  0x88   : > { %vm381_vm12 = vcmp.eq.s32.totalorder %v303_v53, %v5219_v15  ;;  %v4050_v53 = vor.u32 %v4836_v46, %v4049_v44 }
  0x8f   : > { %v285_v19 = vpop.permute.xlu1 %284  ;;  %v312_v4 = vpop.permute.xlu2 %311 }
  0x90   : > { %v279_v13 = vpop.permute.xlu0 %278  ;;  %vm375_vm3 = vcmp.eq.s32.totalorder %v285_v19, %v5219_v15  ;;  %vm384_vm15 = vcmp.eq.s32.totalorder %v312_v4, %v5219_v15  ;;  %v4107_v19 = vld [vmem:[#allocation2 + $0x168] sm:$0xf0]  ;;  %v5427_v4 = vadd.s32 8, %v5386_v34 }
  0x91   : > { %vm373_vm0 = vcmp.eq.s32.totalorder %v279_v13, %v5219_v15  ;;  %v4848_v13 = vld [vmem:[#allocation2 + $0x15c] sm:$0xf0] }
  0x92   : > { %v4098_v20 = vor.u32 %v4848_v13, %v4097_v11 }
  0x94   : > { %1421 = vmatpush.bf16.msrb.mxu0 %v4098_v20 }
  0x97   : > { %v288_v32 = vpop.permute.xlu1 %287  ;;  %v321_v26 = vpop.permute.xlu2 %320 }
  0x98   : > { %v282_v16 = vpop.permute.xlu0 %281  ;;  %vm376_vm4 = vcmp.eq.s32.totalorder %v288_v32, %v5219_v15  ;;  %v7126_v32 = vmov 0  ;;  %1422 = vmatpush.bf16.msrb.mxu0 %v4050_v53 }
  0x99   : > { %vm374_vm1 = vcmp.eq.s32.totalorder %v282_v16, %v5219_v15  ;;  %vm5241_vm5 = vmpackc.low %vm376_vm4, %vm375_vm3  ;;  %v4843_v16 = vld [vmem:[#allocation2 + $0x13c] sm:$0xf] }
  0x9a   : > { %vm5223_vm2 = vmpackc.low %vm374_vm1, %vm373_vm0  ;;  %v4110_v21 = vor.u32 %v4843_v16, %v4107_v19 }
  0x9b   : > { %4320 = vmatmul.msk.bf16.vlgmr.msra.gmra.mxu0 %vm5223_vm2, %v7072_v18  ;;  %4352 = vmatmul.msk.bf16.vlgmr.msra.gmra.mxu1 %vm5223_vm2, %v7072_v18 }
  0x9c   : > { %4384 = vmatmul.msk.bf16.vlgmr.msra.gmra.mxu2 %vm5223_vm2, %v7072_v18  ;;  %4416 = vmatmul.msk.bf16.vlgmr.msra.gmra.mxu3 %vm5223_vm2, %v7072_v18 }
  0x9d   : > { %1688 = vmatpush.bf16.msrb.mxu3 %v4110_v21 }
  0x9f   : > { %v300_v49 = vpop.permute.xlu1 %299  ;;  %v330_v29 = vpop.permute.xlu2 %329 }
  0xa0   : > { %v297_v50 = vpop.permute.xlu0 %296  ;;  %vm380_vm9 = vcmp.eq.s32.totalorder %v300_v49, %v5219_v15 }
  0xa1   : > { %vm379_vm10 = vcmp.eq.s32.totalorder %v297_v50, %v5219_v15  ;;  %1689 = vmatpush.bf16.msrb.mxu3 %v4062_v55 }
  0xa2   : > { %vm5277_vm11 = vmpackc.low %vm380_vm9, %vm379_vm10  ;;  %vm387_vm9 = vcmp.eq.s32.totalorder %v321_v26, %v5219_v15 }
  0xa7   : > { %v309_v3 = vpop.permute.xlu1 %308  ;;  %v339_v26 = vpop.permute.xlu2 %338 }
  0xa8   : > { %v306_v52 = vpop.permute.xlu0 %305  ;;  %vm383_vm0 = vcmp.eq.s32.totalorder %v309_v3, %v5219_v15 }
  0xa9   : > { %vm382_vm13 = vcmp.eq.s32.totalorder %v306_v52, %v5219_v15  ;;  %vm5313_vm1 = vmpackc.low %vm384_vm15, %vm383_vm0  ;;  %vm7060_vm0 = vcmp.lt.s32.totalorder %v5386_v34, 7 }
  0xaa   : > { %vm5295_vm14 = vmpackc.low %vm382_vm13, %vm381_vm12  ;;  %vm390_vm13 = vcmp.eq.s32.totalorder %v330_v29, %v5219_v15 }
  0xab   : > { %4322 = vmatmul.msk.bf16.gmra.mxu0 %vm5241_vm5, %v7072_v18  ;;  %4354 = vmatmul.msk.bf16.gmra.mxu1 %vm5241_vm5, %v7072_v18  ;;  %v7116_v54 = vsel %vm5295_vm14, 4294967295, %v7115_v54 }
  0xac   : > { %4386 = vmatmul.msk.bf16.gmra.mxu2 %vm5241_vm5, %v7072_v18  ;;  %4418 = vmatmul.msk.bf16.gmra.mxu3 %vm5241_vm5, %v7072_v18  ;;  %7117 = vst [vmem:[#allocation9_spill] sm:$0xff] %v7116_v54 }
  0xaf   : > { %v318_v6 = vpop.permute.xlu1 %317 }
  0xb0   : > { %v315_v7 = vpop.permute.xlu0 %314  ;;  %vm386_vm3 = vcmp.eq.s32.totalorder %v318_v6, %v5219_v15 }
  0xb1   : > { %vm385_vm4 = vcmp.eq.s32.totalorder %v315_v7, %v5219_v15 }
  0xb2   : > { %vm5331_vm6 = vmpackc.low %vm386_vm3, %vm385_vm4 }
  0xb3   : > { %v7121_v8 = vsel %vm5331_vm6, 4294967295, %v7120_v8 }
  0xb4   : > { %7122 = vst [vmem:[#allocation10_spill] sm:$0xff] %v7121_v8 }
  0xb7   : > { %v327_v28 = vpop.permute.xlu1 %326 }
  0xb8   : > { %v324_v25 = vpop.permute.xlu0 %323  ;;  %vm389_vm12 = vcmp.eq.s32.totalorder %v327_v28, %v5219_v15 }
  0xb9   : > { %vm388_vm7 = vcmp.eq.s32.totalorder %v324_v25, %v5219_v15  ;;  %vm5369_vm15 = vmpackc.low %vm390_vm13, %vm389_vm12  ;;  %vm7054_vm12 = vcmp.lt.s32.totalorder %v5427_v4, 14  ;;  %v4054_v25 = vor.u32 %v4830_v22, %v4051_v23 }
  0xba   : > { %vm5349_vm10 = vmpackc.low %vm388_vm7, %vm387_vm9  ;;  %v7127_v32 = vsel %vm5369_vm15, 4294967295, %v7126_v32  ;;  %vm7057_vm7 = vcmp.lt.s32.totalorder %v5386_v34, 6 }
  0xbb   : > { %4324 = vmatmul.msk.bf16.gmra.mxu0 %vm5259_vm8, %v7072_v18  ;;  %4356 = vmatmul.msk.bf16.gmra.mxu1 %vm5259_vm8, %v7072_v18  ;;  %v7124_v27 = vsel %vm5349_vm10, 4294967295, %v7123_v27  ;;  %7128 = vst [vmem:[#allocation12_spill] sm:$0xff] %v7127_v32 }
  0xbc   : > { %4388 = vmatmul.msk.bf16.gmra.mxu2 %vm5259_vm8, %v7072_v18  ;;  %4420 = vmatmul.msk.bf16.gmra.mxu3 %vm5259_vm8, %v7072_v18  ;;  %7125 = vst [vmem:[#allocation11_spill] sm:$0xff] %v7124_v27 }
  0xbd   : > { %1511 = vmatpush.bf16.msrb.mxu1 %v4054_v25 }
  0xbf   : > { %v336_v49 = vpop.permute.xlu1 %335 }
  0xc0   : > { %v333_v50 = vpop.permute.xlu0 %332  ;;  %vm392_vm3 = vcmp.eq.s32.totalorder %v336_v49, %v5219_v15 }
  0xc1   : > { %vm391_vm4 = vcmp.eq.s32.totalorder %v333_v50, %v5219_v15 }
  0xc2   : > { %vm5404_vm9 = vmpackc.low %vm392_vm3, %vm391_vm4  ;;  %vm393_vm3 = vcmp.eq.s32.totalorder %v339_v26, %v5219_v15 }
  0xc8   : > { %v342_v20 = vpop.permute.xlu0 %341 }
  0xc9   : > { %vm394_vm13 = vcmp.eq.s32.totalorder %v342_v20, %v5219_v15  ;;  %v4011_v20 = vld [vmem:[#allocation2 + $0xa8] sm:$0xf0] }
  0xca   : > { %vm5442_vm4 = vmpackc.low %vm394_vm13, %vm393_vm3 }
  0xcb   : > { %4326 = vmatmul.msk.bf16.gmra.mxu0 %vm5277_vm11, %v7072_v18  ;;  %4358 = vmatmul.msk.bf16.gmra.mxu1 %vm5277_vm11, %v7072_v18 }
  0xcc   : > { %4390 = vmatmul.msk.bf16.gmra.mxu2 %vm5277_vm11, %v7072_v18  ;;  %4422 = vmatmul.msk.bf16.gmra.mxu3 %vm5277_vm11, %v7072_v18 }
  0xdb   : > { %4328 = vmatmul.msk.bf16.gmra.mxu0 %vm5295_vm14, %v7072_v18  ;;  %4360 = vmatmul.msk.bf16.gmra.mxu1 %vm5295_vm14, %v7072_v18 }
  0xdc   : > { %4392 = vmatmul.msk.bf16.gmra.mxu2 %vm5295_vm14, %v7072_v18  ;;  %4424 = vmatmul.msk.bf16.gmra.mxu3 %vm5295_vm14, %v7072_v18 }
  0xeb   : > { %4330 = vmatmul.msk.bf16.gmra.mxu0 %vm5313_vm1, %v7072_v18  ;;  %4362 = vmatmul.msk.bf16.gmra.mxu1 %vm5313_vm1, %v7072_v18 }
  0xec   : > { %4394 = vmatmul.msk.bf16.gmra.mxu2 %vm5313_vm1, %v7072_v18  ;;  %4426 = vmatmul.msk.bf16.gmra.mxu3 %vm5313_vm1, %v7072_v18 }
  0xfb   : > { %4332 = vmatmul.msk.bf16.gmra.mxu0 %vm5331_vm6, %v7072_v18  ;;  %4364 = vmatmul.msk.bf16.gmra.mxu1 %vm5331_vm6, %v7072_v18 }
  0xfc   : > { %4396 = vmatmul.msk.bf16.gmra.mxu2 %vm5331_vm6, %v7072_v18  ;;  %4428 = vmatmul.msk.bf16.gmra.mxu3 %vm5331_vm6, %v7072_v18 }
 0x10b   : > { %4334 = vmatmul.msk.bf16.gmra.mxu0 %vm5349_vm10, %v7072_v18  ;;  %4366 = vmatmul.msk.bf16.gmra.mxu1 %vm5349_vm10, %v7072_v18 }
 0x10c   : > { %4398 = vmatmul.msk.bf16.gmra.mxu2 %vm5349_vm10, %v7072_v18  ;;  %4430 = vmatmul.msk.bf16.gmra.mxu3 %vm5349_vm10, %v7072_v18 }
 0x118   : > { %v1070_v30 = vpop.f32.mrf.mxu0  ;;  %v5366_v31 = vpop.f32.mrf.mxu1 }
 0x119   : > { %v7070_v40 = vrot.slane %v5366_v31, 1 }
 0x11b   : > { %4336 = vmatmul.msk.bf16.gmra.mxu0 %vm5369_vm15, %v7072_v18  ;;  %4368 = vmatmul.msk.bf16.gmra.mxu1 %vm5369_vm15, %v7072_v18 }
 0x11c   : > { %4400 = vmatmul.msk.bf16.gmra.mxu2 %vm5369_vm15, %v7072_v18  ;;  %4432 = vmatmul.msk.bf16.gmra.mxu3 %vm5369_vm15, %v7072_v18 }
 0x11f   : > { %v5388_v35 = vpop.f32.mrf.mxu2  ;;  %v5390_v37 = vpop.f32.mrf.mxu3 }
 0x120   : > { %v1072_v38 = vpop.f32.mrf.mxu0  ;;  %v1161_v39 = vpop.f32.mrf.mxu1  ;;  %v7069_v58 = vrot.slane %v5388_v35, 2 }
 0x121   : > { %v2130_v41 = vrot.slane %v1161_v39, 1 }
 0x123   : > { %v2194_v14 = vsel %vm7060_vm0, %v7070_v40, %v2130_v41 }
 0x124   : > { %v2196_v52 = vadd.f32 %v2194_v14, %v1070_v30 }
 0x127   : > { %v1250_v56 = vpop.f32.mrf.mxu2  ;;  %v5401_v57 = vpop.f32.mrf.mxu3 }
 0x128   : > { %v2229_v59 = vrot.slane %v1250_v56, 2  ;;  %v1075_v60 = vpop.f32.mrf.mxu0  ;;  %v1164_v61 = vpop.f32.mrf.mxu1 }
 0x129   : > { %v2131_v62 = vrot.slane %v1164_v61, 1 }
 0x12a   : > { %v2291_v0 = vsel %vm7057_vm7, %v7069_v58, %v2229_v59 }
 0x12b   : > { %v2293_v1 = vadd.f32 %v2291_v0, %v2196_v52  ;;  %v2193_v2 = vsel %vm7060_vm0, %v2130_v41, %v2131_v62  ;;  %4338 = vmatmul.msk.bf16.gmra.mxu0 %vm5404_vm9, %v7072_v18  ;;  %4370 = vmatmul.msk.bf16.gmra.mxu1 %vm5404_vm9, %v7072_v18 }
 0x12c   : > { %v2197_v3 = vadd.f32 %v2193_v2, %v1072_v38  ;;  %4402 = vmatmul.msk.bf16.gmra.mxu2 %vm5404_vm9, %v7072_v18  ;;  %4434 = vmatmul.msk.bf16.gmra.mxu3 %vm5404_vm9, %v7072_v18  ;;  %v4825_v2 = vld [vmem:[#allocation2 + $0xa4] sm:$0xf0] }
 0x12f   : > { %v1253_v6 = vpop.f32.mrf.mxu2  ;;  %v5429_v7 = vpop.f32.mrf.mxu3 }
 0x130   : > { %v2230_v9 = vrot.slane %v1253_v6, 2  ;;  %v1077_v10 = vpop.f32.mrf.mxu0  ;;  %v1166_v11 = vpop.f32.mrf.mxu1 }
 0x131   : > { %v2132_v12 = vrot.slane %v1166_v11, 1  ;;  %v4819_v11 = vld [vmem:[#allocation2 + $0x7c] sm:$0xf] }
 0x132   : > { %v2290_v13 = vsel %vm7057_vm7, %v2229_v59, %v2230_v9  ;;  %v4014_v23 = vor.u32 %v4819_v11, %v4011_v20  ;;  %v4818_v11 = vld [vmem:[#allocation2 + $0x74] sm:$0xf] }
 0x133   : > { %v2294_v16 = vadd.f32 %v2290_v13, %v2197_v3  ;;  %v2192_v19 = vsel %vm7060_vm0, %v2131_v62, %v2132_v12  ;;  %v345_v62 = vpop.permute.xlu1 %344  ;;  %v4001_v3 = vld [vmem:[#allocation2 + $0x70] sm:$0xf] }
 0x134   : > { %v2198_v21 = vadd.f32 %v2192_v19, %v1075_v60  ;;  %vm395_vm13 = vcmp.eq.s32.totalorder %v345_v62, %v5219_v15  ;;  %1690 = vmatpush.bf16.msrb.mxu3 %v4014_v23 }
 0x135   : > { %v2329_v24 = vsel %vm7054_vm12, %v2294_v16, -inf }
 0x136   : > { %v2360_v28 = vmax.f32 %v2293_v1, %v2329_v24  ;;  %v4009_v1 = vld [vmem:[#allocation2 + $0x78] sm:$0xf] }
 0x137   : > { %v1255_v29 = vpop.f32.mrf.mxu2  ;;  %v5439_v30 = vpop.f32.mrf.mxu3 }
 0x138   : > { %v2231_v38 = vrot.slane %v1255_v29, 2  ;;  %v1080_v39 = vpop.f32.mrf.mxu0  ;;  %v1169_v41 = vpop.f32.mrf.mxu1  ;;  %v2361_v47 = vrot.slane %v2360_v28, 4 }
 0x139   : > { %v2133_v42 = vrot.slane %v1169_v41, 1 }
 0x13a   : > { %v2289_v44 = vsel %vm7057_vm7, %v2230_v9, %v2231_v38  ;;  %v2362_v56 = vmax.f32 %v2360_v28, %v2361_v47  ;;  %v4010_v9 = vor.u32 %v4825_v2, %v4009_v1 }
 0x13b   : > { %v2295_v14 = vadd.f32 %v2289_v44, %v2198_v21  ;;  %v2191_v45 = vsel %vm7060_vm0, %v2132_v12, %v2133_v42  ;;  %4340 = vmatmul.msk.bf16.gmra.mxu0 %vm5442_vm4, %v7072_v18  ;;  %4372 = vmatmul.msk.bf16.gmra.mxu1 %vm5442_vm4, %v7072_v18  ;;  %v348_v12 = vpop.permute.xlu2 %347 }
 0x13c   : > { %v2199_v46 = vadd.f32 %v2191_v45, %v1077_v10  ;;  %4404 = vmatmul.msk.bf16.gmra.mxu2 %vm5442_vm4, %v7072_v18  ;;  %4436 = vmatmul.msk.bf16.gmra.mxu3 %vm5442_vm4, %v7072_v18  ;;  %v4824_v10 = vld [vmem:[#allocation2 + $0x9c] sm:$0xf0]  ;;  %v2363_v13 = vrot.slane %v2362_v56, 2  ;;  %vm396_vm3 = vcmp.eq.s32.totalorder %v348_v12, %v5219_v15  ;;  %v4003_v12 = vld [vmem:[#allocation2 + $0xa0] sm:$0xf0] }
 0x13d   : > { %v4002_v19 = vor.u32 %v4824_v10, %v4001_v3  ;;  %1601 = vmatpush.bf16.msrb.mxu2 %v4010_v9  ;;  %v354_v3 = vpop.permute.xlu1 %353 }
 0x13f   : > { %v1258_v48 = vpop.f32.mrf.mxu2  ;;  %v5462_v49 = vpop.f32.mrf.mxu3  ;;  %1423 = vmatpush.bf16.msrb.mxu0 %v4002_v19 }
 0x140   : > { %v2232_v50 = vrot.slane %v1258_v48, 2  ;;  %v1082_v52 = vpop.f32.mrf.mxu0  ;;  %v1171_v53 = vpop.f32.mrf.mxu1 }
 0x141   : > { %v2134_v55 = vrot.slane %v1171_v53, 1 }
 0x142   : > { %v2288_v59 = vsel %vm7057_vm7, %v2231_v38, %v2232_v50  ;;  %v7133_v38 = vmov 0 }
 0x143   : > { %v2296_v60 = vadd.f32 %v2288_v59, %v2199_v46  ;;  %v2190_v61 = vsel %vm7060_vm0, %v2133_v42, %v2134_v55 }
 0x144   : > { %v2200_v0 = vadd.f32 %v2190_v61, %v1080_v39  ;;  %v2364_v39 = vmax.f32 %v2362_v56, %v2363_v13 }
 0x145   : > { %v2331_v6 = vsel %vm7054_vm12, %v2296_v60, -inf  ;;  %vm5474_vm12 = vmpackc.low %vm396_vm3, %vm395_vm13  ;;  %vm7058_vm13 = vcmask 1041409   ;;  %vm7135_vm3 = vcmp.lt.s32.totalorder %v5427_v4, 14 }
 0x146   : > { %v2367_v16 = vmax.f32 %v2295_v14, %v2331_v6  ;;  %v7134_v38 = vsel %vm5474_vm12, 4294967295, %v7133_v38  ;;  %v2365_v47 = vrot.slane %v2364_v39, 1  ;;  %v351_v6 = vpop.permute.xlu0 %350 }
 0x147   : > { %v1260_v21 = vpop.f32.mrf.mxu2  ;;  %v5471_v22 = vpop.f32.mrf.mxu3 }
 0x148   : > { %v2368_v24 = vrot.slane %v2367_v16, 4  ;;  %v2233_v25 = vrot.slane %v1260_v21, 2  ;;  %v1085_v26 = vpop.f32.mrf.mxu0  ;;  %v1174_v28 = vpop.f32.mrf.mxu1 }
 0x149   : > { %v2135_v29 = vrot.slane %v1174_v28, 1 }
 0x14a   : > { %v2369_v41 = vmax.f32 %v2367_v16, %v2368_v24  ;;  %v2287_v42 = vsel %vm7057_vm7, %v2232_v50, %v2233_v25  ;;  %v4006_v16 = vor.u32 %v4818_v11, %v4003_v12  ;;  %v3953_v11 = vld [vmem:[#allocation2 + $0x10] sm:$0xf] }
 0x14b   : > { %v2297_v44 = vadd.f32 %v2287_v42, %v2200_v0  ;;  %v2189_v14 = vsel %vm7060_vm0, %v2134_v55, %v2135_v29  ;;  %4342 = vmatmul.msk.bf16.gmra.mxu0 %vm5474_vm12, %v7072_v18  ;;  %4374 = vmatmul.msk.bf16.gmra.mxu1 %vm5474_vm12, %v7072_v18 }
 0x14c   : > { %v2370_v45 = vrot.slane %v2369_v41, 2  ;;  %v2201_v46 = vadd.f32 %v2189_v14, %v1082_v52  ;;  %4406 = vmatmul.msk.bf16.gmra.mxu2 %vm5474_vm12, %v7072_v18  ;;  %4438 = vmatmul.msk.bf16.gmra.mxu3 %vm5474_vm12, %v7072_v18  ;;  %v2366_v52 = vmax.f32 %v2364_v39, %v2365_v47  ;;  %vm398_vm12 = vcmp.eq.s32.totalorder %v354_v3, %v5219_v15 }
 0x14d   : > { %1512 = vmatpush.bf16.msrb.mxu1 %v4006_v16  ;;  %v4812_v16 = vld [vmem:[#allocation2 + $0x3c] sm:$0xf0] }
 0x14e   : > { %v2371_v48 = vmax.f32 %v2369_v41, %v2370_v45 }
 0x14f   : > { %v1263_v50 = vpop.f32.mrf.mxu2  ;;  %v5494_v53 = vpop.f32.mrf.mxu3 }
 0x150   : > { %v2372_v55 = vrot.slane %v2371_v48, 1  ;;  %v2234_v56 = vrot.slane %v1263_v50, 2  ;;  %v1087_v59 = vpop.f32.mrf.mxu0  ;;  %v1176_v60 = vpop.f32.mrf.mxu1 }
 0x151   : > { %v2136_v61 = vrot.slane %v1176_v60, 1 }
 0x152   : > { %v2373_v62 = vmax.f32 %v2371_v48, %v2372_v55  ;;  %v2286_v0 = vsel %vm7057_vm7, %v2233_v25, %v2234_v56  ;;  %vm397_vm7 = vcmp.eq.s32.totalorder %v351_v6, %v5219_v15  ;;  %v3961_v6 = vld [vmem:[#allocation2 + $0x18] sm:$0xf] }
 0x153   : > { %v2298_v1 = vadd.f32 %v2286_v0, %v2201_v46  ;;  %v2188_v2 = vsel %vm7060_vm0, %v2135_v29, %v2136_v61  ;;  %v7136_v29 = vmov 0 }
 0x154   : > { %v3455_v9 = vsel %vm7058_vm13, %v2373_v62, %v2366_v52  ;;  %v2202_v10 = vadd.f32 %v2188_v2, %v1085_v26  ;;  %vm5507_vm13 = vmpackc.low %vm398_vm12, %vm397_vm7  ;;  %vm7059_vm7 = vcmask 1042434  }
 0x155   : > { %v2333_v13 = vsel %vm7135_vm3, %v2298_v1, -inf  ;;  %v7137_v29 = vsel %vm5507_vm13, 4294967295, %v7136_v29  ;;  %vm7138_vm3 = vcmp.lt.s32.totalorder %v5386_v34, 6  ;;  %v360_v1 = vpop.permute.xlu0 %359 }
 0x156   : > { %v2374_v19 = vmax.f32 %v2297_v44, %v2333_v13  ;;  %vm7139_vm12 = vmmov %vm7138_vm3 }
 0x157   : > { %v1265_v20 = vpop.f32.mrf.mxu2  ;;  %v5505_v21 = vpop.f32.mrf.mxu3 }
 0x158   : > { %v2375_v23 = vrot.slane %v2374_v19, 4  ;;  %v2235_v24 = vrot.slane %v1265_v20, 2  ;;  %v1090_v25 = vpop.f32.mrf.mxu0  ;;  %v1179_v28 = vpop.f32.mrf.mxu1 }
 0x159   : > { %v2137_v26 = vrot.slane %v1179_v28, 1  ;;  %v357_v20 = vpop.permute.xlu2 %356  ;;  %v3963_v28 = vld [vmem:[#allocation2 + $0x48] sm:$0xf0] }
 0x15a   : > { %v2376_v39 = vmax.f32 %v2374_v19, %v2375_v23  ;;  %v2285_v41 = vsel %vm7138_vm3, %v2234_v56, %v2235_v24  ;;  %vm7140_vm3 = vcmp.lt.s32.totalorder %v5427_v4, 14  ;;  %v4807_v19 = vld [vmem:[#allocation2 + $0x1c] sm:$0xf] }
 0x15b   : > { %v2299_v42 = vadd.f32 %v2285_v41, %v2202_v10  ;;  %v2187_v44 = vsel %vm7060_vm0, %v2136_v61, %v2137_v26  ;;  %4344 = vmatmul.msk.bf16.gmra.mxu0 %vm5507_vm13, %v7072_v18  ;;  %4376 = vmatmul.msk.bf16.gmra.mxu1 %vm5507_vm13, %v7072_v18  ;;  %v4813_v10 = vld [vmem:[#allocation2 + $0x44] sm:$0xf0] }
 0x15c   : > { %v2377_v14 = vrot.slane %v2376_v39, 2  ;;  %v2203_v45 = vadd.f32 %v2187_v44, %v1087_v59  ;;  %4408 = vmatmul.msk.bf16.gmra.mxu2 %vm5507_vm13, %v7072_v18  ;;  %4440 = vmatmul.msk.bf16.gmra.mxu3 %vm5507_vm13, %v7072_v18  ;;  %v3962_v13 = vor.u32 %v4813_v10, %v3961_v6  ;;  %vm7144_vm13 = vcmp.lt.s32.totalorder %v5386_v34, 7 }
 0x15e   : > { %v2378_v46 = vmax.f32 %v2376_v39, %v2377_v14  ;;  %1602 = vmatpush.bf16.msrb.mxu2 %v3962_v13 }
 0x15f   : > { %v1268_v47 = vpop.f32.mrf.mxu2  ;;  %v5527_v48 = vpop.f32.mrf.mxu3 }
 0x160   : > { %v2379_v50 = vrot.slane %v2378_v46, 1  ;;  %v2236_v55 = vrot.slane %v1268_v47, 2  ;;  %v1092_v56 = vpop.f32.mrf.mxu0  ;;  %v1181_v60 = vpop.f32.mrf.mxu1 }
 0x161   : > { %v2138_v61 = vrot.slane %v1181_v60, 1 }
 0x162   : > { %v2380_v52 = vmax.f32 %v2378_v46, %v2379_v50  ;;  %v2284_v59 = vsel %vm7139_vm12, %v2235_v24, %v2236_v55  ;;  %v3954_v24 = vor.u32 %v4812_v16, %v3953_v11  ;;  %vm400_vm12 = vcmp.eq.s32.totalorder %v360_v1, %v5219_v15  ;;  %v363_v16 = vpop.permute.xlu1 %362 }
 0x163   : > { %v2300_v62 = vadd.f32 %v2284_v59, %v2203_v45  ;;  %v2186_v0 = vsel %vm7060_vm0, %v2137_v26, %v2138_v61  ;;  %vm7143_vm0 = vcmp.lt.s32.totalorder %v5386_v34, 6 }
 0x164   : > { %v3457_v2 = vsel %vm7059_vm7, %v2380_v52, %v3455_v9  ;;  %v2204_v3 = vadd.f32 %v2186_v0, %v1090_v25  ;;  %v3966_v9 = vor.u32 %v4807_v19, %v3963_v28  ;;  %1424 = vmatpush.bf16.msrb.mxu0 %v3954_v24  ;;  %v3955_v24 = vld [vmem:[#allocation2 + $0x40] sm:$0xf0] }
 0x165   : > { %v2335_v12 = vsel %vm7140_vm3, %v2300_v62, -inf  ;;  %vm399_vm3 = vcmp.eq.s32.totalorder %v357_v20, %v5219_v15 }
 0x166   : > { %v2381_v23 = vmax.f32 %v2299_v42, %v2335_v12  ;;  %1691 = vmatpush.bf16.msrb.mxu3 %v3966_v9  ;;  %vm5540_vm7 = vmpackc.low %vm400_vm12, %vm399_vm3  ;;  %v7141_v42 = vmov 0  ;;  %vm7146_vm12 = vcmp.lt.s32.totalorder %v5386_v34, 7  ;;  %vm7147_vm3 = vcmp.lt.s32.totalorder %v5427_v4, 14  ;;  %v366_v9 = vpop.permute.xlu2 %365 }
 0x167   : > { %v1270_v26 = vpop.f32.mrf.mxu2  ;;  %v5537_v39 = vpop.f32.mrf.mxu3  ;;  %v7142_v42 = vsel %vm5540_vm7, 4294967295, %v7141_v42 }
 0x168   : > { %v2382_v25 = vrot.slane %v2381_v23, 4  ;;  %v2237_v41 = vrot.slane %v1270_v26, 2  ;;  %v1095_v44 = vpop.f32.mrf.mxu0  ;;  %v1184_v14 = vpop.f32.mrf.mxu1 }
 0x169   : > { %v2139_v45 = vrot.slane %v1184_v14, 1 }
 0x16a   : > { %v2383_v46 = vmax.f32 %v2381_v23, %v2382_v25  ;;  %v2283_v47 = vsel %vm7143_vm0, %v2236_v55, %v2237_v41  ;;  %vm7065_vm0 = vcmask 1043459   ;;  %v4806_v23 = vld [vmem:[#allocation2 + $0x14] sm:$0xf] }
 0x16b   : > { %v2301_v50 = vadd.f32 %v2283_v47, %v2204_v3  ;;  %v2185_v60 = vsel %vm7144_vm13, %v2138_v61, %v2139_v45  ;;  %4346 = vmatmul.msk.bf16.gmra.mxu0 %vm5540_vm7, %v7072_v18  ;;  %4378 = vmatmul.msk.bf16.gmra.mxu1 %vm5540_vm7, %v7072_v18  ;;  %vm7145_vm13 = vcmp.lt.s32.totalorder %v5386_v34, 6  ;;  %v3958_v26 = vor.u32 %v4806_v23, %v3955_v24  ;;  %v4313_v23 = vld [vmem:[#allocation2 + $0x2c8] sm:$0xf]  ;;  %v4899_v24 = vld [vmem:[#allocation2 + $0x2f4] sm:$0xf0] }
 0x16c   : > { %v2384_v52 = vrot.slane %v2383_v46, 2  ;;  %v2205_v59 = vadd.f32 %v2185_v60, %v1092_v56  ;;  %4410 = vmatmul.msk.bf16.gmra.mxu2 %vm5540_vm7, %v7072_v18  ;;  %4442 = vmatmul.msk.bf16.gmra.mxu3 %vm5540_vm7, %v7072_v18  ;;  %vm401_vm7 = vcmp.eq.s32.totalorder %v363_v16, %v5219_v15 }
 0x16d   : > { %1513 = vmatpush.bf16.msrb.mxu1 %v3958_v26 }
 0x16e   : > { %v2385_v55 = vmax.f32 %v2383_v46, %v2384_v52 }
 0x16f   : > { %v1273_v61 = vpop.f32.mrf.mxu2  ;;  %v5560_v62 = vpop.f32.mrf.mxu3 }
 0x170   : > { %v2386_v0 = vrot.slane %v2385_v55, 1  ;;  %v2238_v1 = vrot.slane %v1273_v61, 2  ;;  %v1097_v3 = vpop.f32.mrf.mxu0  ;;  %v1186_v6 = vpop.f32.mrf.mxu1 }
 0x171   : > { %v2140_v10 = vrot.slane %v1186_v6, 1 }
 0x172   : > { %v2387_v11 = vmax.f32 %v2385_v55, %v2386_v0  ;;  %v2282_v56 = vsel %vm7145_vm13, %v2237_v41, %v2238_v1  ;;  %vm402_vm13 = vcmp.eq.s32.totalorder %v366_v9, %v5219_v15 }
 0x173   : > { %v2302_v12 = vadd.f32 %v2282_v56, %v2205_v59  ;;  %v2184_v13 = vsel %vm7146_vm12, %v2139_v45, %v2140_v10  ;;  %vm5573_vm12 = vmpackc.low %vm402_vm13, %vm401_vm7  ;;  %vm7066_vm7 = vcmask 1044484   ;;  %vm7153_vm13 = vcmp.lt.s32.totalorder %v5386_v34, 7 }
 0x174   : > { %v3459_v19 = vsel %vm7065_vm0, %v2387_v11, %v3457_v2  ;;  %v2206_v20 = vadd.f32 %v2184_v13, %v1095_v44  ;;  %v7148_v44 = vmov 0  ;;  %vm7151_vm0 = vcmp.lt.s32.totalorder %v5386_v34, 7 }
 0x175   : > { %v2337_v28 = vsel %vm7147_vm3, %v2302_v12, -inf  ;;  %v7149_v44 = vsel %vm5573_vm12, 4294967295, %v7148_v44  ;;  %vm7150_vm3 = vcmp.lt.s32.totalorder %v5386_v34, 6 }
 0x176   : > { %v2388_v25 = vmax.f32 %v2301_v50, %v2337_v28  ;;  %v4305_v28 = vld [vmem:[#allocation2 + $0x2c0] sm:$0xf] }
 0x177   : > { %v1275_v14 = vpop.f32.mrf.mxu2  ;;  %v5570_v41 = vpop.f32.mrf.mxu3 }
 0x178   : > { %v2389_v46 = vrot.slane %v2388_v25, 4  ;;  %v2239_v45 = vrot.slane %v1275_v14, 2  ;;  %v1100_v47 = vpop.f32.mrf.mxu0  ;;  %v1189_v60 = vpop.f32.mrf.mxu1  ;;  %v4898_v14 = vld [vmem:[#allocation2 + $0x2ec] sm:$0xf0] }
 0x179   : > { %v2141_v2 = vrot.slane %v1189_v60, 1  ;;  %v4315_v60 = vld [vmem:[#allocation2 + $0x2f8] sm:$0xf0] }
 0x17a   : > { %v2390_v52 = vmax.f32 %v2388_v25, %v2389_v46  ;;  %v2281_v50 = vsel %vm7150_vm3, %v2238_v1, %v2239_v45  ;;  %v4314_v25 = vor.u32 %v4899_v24, %v4313_v23  ;;  %v4893_v46 = vld [vmem:[#allocation2 + $0x2cc] sm:$0xf] }
 0x17b   : > { %v2303_v59 = vadd.f32 %v2281_v50, %v2206_v20  ;;  %v2183_v55 = vsel %vm7151_vm0, %v2140_v10, %v2141_v2  ;;  %4348 = vmatmul.msk.bf16.gmra.mxu0 %vm5573_vm12, %v7072_v18  ;;  %4380 = vmatmul.msk.bf16.gmra.mxu1 %vm5573_vm12, %v7072_v18  ;;  %vm7152_vm0 = vmmov %vm7150_vm3  ;;  %v369_v50 = vpop.permute.xlu0 %368  ;;  %vm7154_vm3 = vcmp.lt.s32.totalorder %v5427_v4, 14 }
 0x17c   : > { %v2391_v61 = vrot.slane %v2390_v52, 2  ;;  %v2207_v0 = vadd.f32 %v2183_v55, %v1097_v3  ;;  %4412 = vmatmul.msk.bf16.gmra.mxu2 %vm5573_vm12, %v7072_v18  ;;  %4444 = vmatmul.msk.bf16.gmra.mxu3 %vm5573_vm12, %v7072_v18  ;;  %vm7158_vm12 = vcmp.lt.s32.totalorder %v5386_v34, 7 }
 0x17d   : > { %1951 = vmatpush.bf16.msra.mxu2 %v4314_v25 }
 0x17e   : > { %v2392_v1 = vmax.f32 %v2390_v52, %v2391_v61  ;;  %v372_v52 = vpop.permute.xlu1 %371 }
 0x17f   : > { %v1278_v6 = vpop.f32.mrf.mxu2  ;;  %v5593_v10 = vpop.f32.mrf.mxu3 }
 0x180   : > { %v2393_v11 = vrot.slane %v2392_v1, 1  ;;  %v2240_v56 = vrot.slane %v1278_v6, 2  ;;  %v1102_v12 = vpop.f32.mrf.mxu0  ;;  %v1191_v13 = vpop.f32.mrf.mxu1  ;;  %v4318_v6 = vor.u32 %v4893_v46, %v4315_v60 }
 0x181   : > { %v2142_v16 = vrot.slane %v1191_v13, 1 }
 0x182   : > { %v2394_v20 = vmax.f32 %v2392_v1, %v2393_v11  ;;  %v2280_v3 = vsel %vm7152_vm0, %v2239_v45, %v2240_v56  ;;  %v4306_v1 = vor.u32 %v4898_v14, %v4305_v28  ;;  %2040 = vmatpush.bf16.msra.mxu3 %v4318_v6  ;;  %vm404_vm0 = vcmp.eq.s32.totalorder %v372_v52, %v5219_v15  ;;  %v4307_v6 = vld [vmem:[#allocation2 + $0x2f0] sm:$0xf0] }
 0x183   : > { %v2304_v26 = vadd.f32 %v2280_v3, %v2207_v0  ;;  %v2182_v9 = vsel %vm7153_vm13, %v2141_v2, %v2142_v16  ;;  %vm403_vm13 = vcmp.eq.s32.totalorder %v369_v50, %v5219_v15 }
 0x184   : > { %v3461_v55 = vsel %vm7066_vm7, %v2394_v20, %v3459_v19  ;;  %v2208_v61 = vadd.f32 %v2182_v9, %v1100_v47  ;;  %1773 = vmatpush.bf16.msra.mxu0 %v4306_v1  ;;  %vm5606_vm7 = vmpackc.low %vm404_vm0, %vm403_vm13  ;;  %v4892_v1 = vld [vmem:[#allocation2 + $0x2c4] sm:$0xf]  ;;  %vm7160_vm13 = vcmp.lt.s32.totalorder %v5386_v34, 7 }
 0x185   : > { %v2339_v45 = vsel %vm7154_vm3, %v2304_v26, -inf  ;;  %vm7157_vm3 = vcmp.lt.s32.totalorder %v5386_v34, 6 }
 0x186   : > { %v2395_v11 = vmax.f32 %v2303_v59, %v2339_v45  ;;  %vm7159_vm0 = vmmov %vm7157_vm3 }
 0x187   : > { %v1280_v2 = vpop.f32.mrf.mxu2  ;;  %v5604_v0 = vpop.f32.mrf.mxu3 }
 0x188   : > { %v2396_v13 = vrot.slane %v2395_v11, 4  ;;  %v2241_v3 = vrot.slane %v1280_v2, 2  ;;  %v1105_v19 = vpop.f32.mrf.mxu0  ;;  %v1194_v47 = vpop.f32.mrf.mxu1  ;;  %v4310_v2 = vor.u32 %v4892_v1, %v4307_v6 }
 0x189   : > { %v2143_v20 = vrot.slane %v1194_v47, 1 }
 0x18a   : > { %v2397_v24 = vmax.f32 %v2395_v11, %v2396_v13  ;;  %v2279_v59 = vsel %vm7157_vm3, %v2240_v56, %v2241_v3  ;;  %vm7161_vm3 = vcmp.lt.s32.totalorder %v5427_v4, 14  ;;  %1862 = vmatpush.bf16.msra.mxu1 %v4310_v2 }
 0x18b   : > { %v2305_v28 = vadd.f32 %v2279_v59, %v2208_v61  ;;  %v2181_v15 = vsel %vm7158_vm12, %v2142_v16, %v2143_v20  ;;  %4350 = vmatmul.msk.bf16.gmra.mxu0 %vm5606_vm7, %v7072_v18  ;;  %4382 = vmatmul.msk.bf16.gmra.mxu1 %vm5606_vm7, %v7072_v18  ;;  %vm7071_vm12 = vcmask 1045509  }
 0x18c   : > { %v2398_v26 = vrot.slane %v2397_v24, 2  ;;  %v2209_v9 = vadd.f32 %v2181_v15, %v1102_v12  ;;  %4414 = vmatmul.msk.bf16.gmra.mxu2 %vm5606_vm7, %v7072_v18  ;;  %4446 = vmatmul.msk.bf16.gmra.mxu3 %vm5606_vm7, %v7072_v18 }
 0x18e   : > { %v2399_v56 = vmax.f32 %v2397_v24, %v2398_v26 }
 0x18f   : > { %v1283_v16 = vpop.f32.mrf.mxu2  ;;  %v5626_v25 = vpop.f32.mrf.mxu3 }
 0x190   : > { %v2400_v14 = vrot.slane %v2399_v56, 1  ;;  %v2242_v46 = vrot.slane %v1283_v16, 2  ;;  %v1107_v60 = vpop.f32.mrf.mxu0  ;;  %v1196_v52 = vpop.f32.mrf.mxu1 }
 0x191   : > { %v2144_v50 = vrot.slane %v1196_v52, 1 }
 0x192   : > { %v2401_v61 = vmax.f32 %v2399_v56, %v2400_v14  ;;  %v2278_v12 = vsel %vm7159_vm0, %v2241_v3, %v2242_v46 }
 0x193   : > { %v2306_v45 = vadd.f32 %v2278_v12, %v2209_v9  ;;  %v2180_v11 = vsel %vm7160_vm13, %v2143_v20, %v2144_v50 }
 0x194   : > { %v3463_v13 = vsel %vm7071_vm12, %v2401_v61, %v3461_v55  ;;  %v2210_v47 = vadd.f32 %v2180_v11, %v1105_v19  ;;  %vm7162_vm12 = vcmp.lt.s32.totalorder %v5427_v4, 14 }
 0x195   : > { %v2341_v24 = vsel %vm7161_vm3, %v2306_v45, -inf  ;;  %vm7074_vm3 = vcmask 1046534  }
 0x196   : > { %v2402_v59 = vmax.f32 %v2305_v28, %v2341_v24  ;;  %v4265_v24 = vld [vmem:[#allocation2 + $0x268] sm:$0xf] }
 0x197   : > { %v1285_v15 = vpop.f32.mrf.mxu2  ;;  %v5635_v26 = vpop.f32.mrf.mxu3 }
 0x198   : > { %v2403_v56 = vrot.slane %v2402_v59, 4  ;;  %v2243_v3 = vrot.slane %v1285_v15, 2  ;;  %v1110_v16 = vpop.f32.mrf.mxu0  ;;  %v1199_v14 = vpop.f32.mrf.mxu1  ;;  %v4257_v15 = vld [vmem:[#allocation2 + $0x260] sm:$0xf] }
 0x199   : > { %v2145_v9 = vrot.slane %v1199_v14, 1 }
 0x19a   : > { %v2404_v52 = vmax.f32 %v2402_v59, %v2403_v56  ;;  %v2277_v20 = vsel %vm7159_vm0, %v2242_v46, %v2243_v3  ;;  %v4887_v59 = vld [vmem:[#allocation2 + $0x294] sm:$0xf0] }
 0x19b   : > { %v2307_v12 = vadd.f32 %v2277_v20, %v2210_v47  ;;  %v2179_v55 = vsel %vm7160_vm13, %v2144_v50, %v2145_v9  ;;  %4448 = vmatmul.msk.bf16.vlgmr.msrb.gmra.mxu0 %vm5223_vm2, %v7072_v18  ;;  %4480 = vmatmul.msk.bf16.vlgmr.msrb.gmra.mxu1 %vm5223_vm2, %v7072_v18  ;;  %v4886_v20 = vld [vmem:[#allocation2 + $0x28c] sm:$0xf0] }
 0x19c   : > { %v2405_v19 = vrot.slane %v2404_v52, 2  ;;  %v2211_v28 = vadd.f32 %v2179_v55, %v1107_v60  ;;  %4512 = vmatmul.msk.bf16.vlgmr.msrb.gmra.mxu2 %vm5223_vm2, %v7072_v18  ;;  %4544 = vmatmul.msk.bf16.vlgmr.msrb.gmra.mxu3 %vm5223_vm2, %v7072_v18  ;;  %v4881_v55 = vld [vmem:[#allocation2 + $0x26c] sm:$0xf]  ;;  %v4258_v58 = vor.u32 %v4886_v20, %v4257_v15 }
 0x19e   : > { %v2406_v46 = vmax.f32 %v2404_v52, %v2405_v19  ;;  %v4266_v52 = vor.u32 %v4887_v59, %v4265_v24  ;;  %v4267_v19 = vld [vmem:[#allocation2 + $0x298] sm:$0xf0]  ;;  %1774 = vmatpush.bf16.msra.mxu0 %v4258_v58 }
 0x19f   : > { %v1288_v50 = vpop.f32.mrf.mxu2  ;;  %v5653_v61 = vpop.f32.mrf.mxu3  ;;  %v4270_v40 = vor.u32 %v4881_v55, %v4267_v19 }
 0x1a0   : > { %v2407_v1 = vrot.slane %v2406_v46, 1  ;;  %v2244_v6 = vrot.slane %v1288_v50, 2  ;;  %v1112_v45 = vpop.f32.mrf.mxu0  ;;  %v1201_v11 = vpop.f32.mrf.mxu1  ;;  %1952 = vmatpush.bf16.msra.mxu2 %v4266_v52 }
 0x1a1   : > { %v2146_v2 = vrot.slane %v1201_v11, 1  ;;  %2041 = vmatpush.bf16.msra.mxu3 %v4270_v40 }
 0x1a2   : > { %v2408_v47 = vmax.f32 %v2406_v46, %v2407_v1  ;;  %v2276_v60 = vsel %vm7159_vm0, %v2243_v3, %v2244_v6 }
 0x1a3   : > { %v2308_v56 = vadd.f32 %v2276_v60, %v2211_v28  ;;  %v2178_v14 = vsel %vm7160_vm13, %v2145_v9, %v2146_v2 }
 0x1a4   : > { %v2212_v50 = vadd.f32 %v2178_v14, %v1110_v16  ;;  %v3465_v11 = vsel %vm7074_vm3, %v2408_v47, %v3463_v13  ;;  %vm7166_vm3 = vcmp.lt.s32.totalorder %v5427_v4, 14 }
 0x1a5   : > { %v2343_v46 = vsel %vm7162_vm12, %v2308_v56, -inf  ;;  %v7164_v56 = vmov 1.0|1.0   ;;  %vm7077_vm12 = vcmask 1047559  }
 0x1a6   : > { %v2409_v3 = vmax.f32 %v2307_v12, %v2343_v46 }
 0x1a7   : > { %v1290_v28 = vpop.f32.mrf.mxu2  ;;  %v5662_v1 = vpop.f32.mrf.mxu3 }
 0x1a8   : > { %7163 = vst [vmem:[#allocation13_spill] sm:$0xff] %v5662_v1  ;;  %v2410_v9 = vrot.slane %v2409_v3, 4  ;;  %v2245_v60 = vrot.slane %v1290_v28, 2  ;;  %v1115_v24 = vpop.f32.mrf.mxu0  ;;  %v1204_v59 = vpop.f32.mrf.mxu1 }
 0x1a9   : > { %v2147_v18 = vrot.slane %v1204_v59, 1  ;;  %v4259_v59 = vld [vmem:[#allocation2 + $0x290] sm:$0xf0] }
 0x1aa   : > { %v2411_v16 = vmax.f32 %v2409_v3, %v2410_v9  ;;  %v2275_v15 = vsel %vm7159_vm0, %v2244_v6, %v2245_v60  ;;  %v4880_v9 = vld [vmem:[#allocation2 + $0x264] sm:$0xf] }
 0x1ab   : > { %v2309_v13 = vadd.f32 %v2275_v15, %v2212_v50  ;;  %v2177_v47 = vsel %vm7160_vm13, %v2146_v2, %v2147_v18  ;;  %4450 = vmatmul.msk.bf16.gmra.mxu0 %vm5241_vm5, %v7164_v56  ;;  %4482 = vmatmul.msk.bf16.gmra.mxu1 %vm5241_vm5, %v7164_v56 }
 0x1ac   : > { %v2412_v40 = vrot.slane %v2411_v16, 2  ;;  %v2213_v58 = vadd.f32 %v2177_v47, %v1112_v45  ;;  %4514 = vmatmul.msk.bf16.gmra.mxu2 %vm5241_vm5, %v7164_v56  ;;  %4546 = vmatmul.msk.bf16.gmra.mxu3 %vm5241_vm5, %v7164_v56  ;;  %v4262_v47 = vor.u32 %v4880_v9, %v4259_v59 }
 0x1ae   : > { %v2413_v12 = vmax.f32 %v2411_v16, %v2412_v40  ;;  %1863 = vmatpush.bf16.msra.mxu1 %v4262_v47 }
 0x1af   : > { %v1293_v6 = vpop.f32.mrf.mxu2  ;;  %v5680_v2 = vpop.f32.mrf.mxu3 }
 0x1b0   : > { %7165 = vst [vmem:[#allocation14_spill] sm:$0xff] %v5680_v2  ;;  %v2414_v14 = vrot.slane %v2413_v12, 1  ;;  %v2246_v52 = vrot.slane %v1293_v6, 2  ;;  %v1117_v20 = vpop.f32.mrf.mxu0  ;;  %v1206_v55 = vpop.f32.mrf.mxu1 }
 0x1b1   : > { %v2148_v19 = vrot.slane %v1206_v55, 1 }
 0x1b2   : > { %v2415_v50 = vmax.f32 %v2413_v12, %v2414_v14  ;;  %v2274_v45 = vsel %vm7159_vm0, %v2245_v60, %v2246_v52 }
 0x1b3   : > { %v2310_v46 = vadd.f32 %v2274_v45, %v2213_v58  ;;  %v2176_v3 = vsel %vm7160_vm13, %v2147_v18, %v2148_v19 }
 0x1b4   : > { %v2214_v28 = vadd.f32 %v2176_v3, %v1115_v24  ;;  %v5687_v16 = vsel %vm7077_vm12, %v2415_v50, %v3465_v11  ;;  %vm7176_vm12 = vcmp.lt.s32.totalorder %v5427_v4, 14 }
 0x1b5   : > { %v2345_v15 = vsel %vm7166_vm3, %v2310_v46, -inf  ;;  %vm7169_vm3 = vmmov %vm7159_vm0 }
 0x1b6   : > { %v2416_v40 = vmax.f32 %v2309_v13, %v2345_v15 }
 0x1b7   : > { %v1295_v6 = vpop.f32.mrf.mxu2  ;;  %v5691_v12 = vpop.f32.mrf.mxu3 }
 0x1b8   : > { %7167 = vst [vmem:[#allocation15_spill] sm:$0xff] %v5691_v12  ;;  %v2247_v60 = vrot.slane %v1295_v6, 2  ;;  %v1120_v58 = vpop.f32.mrf.mxu0  ;;  %v1209_v14 = vpop.f32.mrf.mxu1  ;;  %v4217_v6 = vld [vmem:[#allocation2 + $0x208] sm:$0xf]  ;;  %v4869_v12 = vld [vmem:[#allocation2 + $0x20c] sm:$0xf] }
 0x1b9   : > { %v2149_v55 = vrot.slane %v1209_v14, 1  ;;  %v4875_v14 = vld [vmem:[#allocation2 + $0x234] sm:$0xf0] }
 0x1ba   : > { %v2273_v18 = vsel %vm7159_vm0, %v2246_v52, %v2247_v60  ;;  %v2417_v52 = vrot.slane %v2416_v40, 4  ;;  %vm7170_vm0 = vmmov %vm7160_vm13 }
 0x1bb   : > { %v2311_v24 = vadd.f32 %v2273_v18, %v2214_v28  ;;  %v2175_v11 = vsel %vm7160_vm13, %v2148_v19, %v2149_v55  ;;  %4452 = vmatmul.msk.bf16.gmra.mxu0 %vm5259_vm8, %v7164_v56  ;;  %4484 = vmatmul.msk.bf16.gmra.mxu1 %vm5259_vm8, %v7164_v56  ;;  %v4209_v18 = vld [vmem:[#allocation2 + $0x200] sm:$0xf]  ;;  %vm7171_vm13 = vcmp.lt.s32.totalorder %v5427_v4, 14 }
 0x1bc   : > { %v2215_v13 = vadd.f32 %v2175_v11, %v1117_v20  ;;  %4516 = vmatmul.msk.bf16.gmra.mxu2 %vm5259_vm8, %v7164_v56  ;;  %4548 = vmatmul.msk.bf16.gmra.mxu3 %vm5259_vm8, %v7164_v56  ;;  %v2418_v9 = vmax.f32 %v2416_v40, %v2417_v52  ;;  %v4219_v52 = vld [vmem:[#allocation2 + $0x238] sm:$0xf0] }
 0x1be   : > { %v2419_v36 = vrot.slane %v2418_v9, 2 }
 0x1bf   : > { %v1298_v50 = vpop.f32.mrf.mxu2  ;;  %v5709_v19 = vpop.f32.mrf.mxu3 }
 0x1c0   : > { %7168 = vst [vmem:[#allocation16_spill] sm:$0xff] %v5709_v19  ;;  %v2248_v45 = vrot.slane %v1298_v50, 2  ;;  %v1122_v46 = vpop.f32.mrf.mxu0  ;;  %v1211_v3 = vpop.f32.mrf.mxu1  ;;  %v4218_v19 = vor.u32 %v4875_v14, %v4217_v6  ;;  %v4874_v50 = vld [vmem:[#allocation2 + $0x22c] sm:$0xf0] }
 0x1c1   : > { %v2150_v28 = vrot.slane %v1211_v3, 1  ;;  %v4210_v40 = vor.u32 %v4874_v50, %v4209_v18 }
 0x1c2   : > { %v2272_v20 = vsel %vm7169_vm3, %v2247_v60, %v2248_v45  ;;  %1953 = vmatpush.bf16.msra.mxu2 %v4218_v19 }
 0x1c3   : > { %v2312_v59 = vadd.f32 %v2272_v20, %v2215_v13  ;;  %v2174_v15 = vsel %vm7170_vm0, %v2149_v55, %v2150_v28  ;;  %v4222_v13 = vor.u32 %v4869_v12, %v4219_v52  ;;  %1775 = vmatpush.bf16.msra.mxu0 %v4210_v40 }
 0x1c4   : > { %v2216_v47 = vadd.f32 %v2174_v15, %v1120_v58 }
 0x1c5   : > { %v2347_v11 = vsel %vm7171_vm13, %v2312_v59, -inf  ;;  %2042 = vmatpush.bf16.msra.mxu3 %v4222_v13  ;;  %v2420_v59 = vmax.f32 %v2418_v9, %v2419_v36  ;;  %vm7173_vm13 = vmmov %vm7169_vm3 }
 0x1c6   : > { %v2423_v3 = vmax.f32 %v2311_v24, %v2347_v11 }
 0x1c7   : > { %v1300_v2 = vpop.f32.mrf.mxu2  ;;  %v5717_v60 = vpop.f32.mrf.mxu3  ;;  %v2421_v36 = vrot.slane %v2420_v59, 1 }
 0x1c8   : > { %v2424_v55 = vrot.slane %v2423_v3, 4  ;;  %v2249_v58 = vrot.slane %v1300_v2, 2  ;;  %v1125_v20 = vpop.f32.mrf.mxu0  ;;  %v1214_v15 = vpop.f32.mrf.mxu1 }
 0x1c9   : > { %v2151_v1 = vrot.slane %v1214_v15, 1  ;;  %v2422_v40 = vmax.f32 %v2420_v59, %v2421_v36 }
 0x1ca   : > { %v2425_v6 = vmax.f32 %v2423_v3, %v2424_v55  ;;  %v2271_v14 = vsel %vm7169_vm3, %v2248_v45, %v2249_v58  ;;  %vm7174_vm3 = vmmov %vm7170_vm0 }
 0x1cb   : > { %v2313_v24 = vadd.f32 %v2271_v14, %v2216_v47  ;;  %v2173_v18 = vsel %vm7170_vm0, %v2150_v28, %v2151_v1  ;;  %4454 = vmatmul.msk.bf16.gmra.mxu0 %vm5277_vm11, %v7164_v56  ;;  %4486 = vmatmul.msk.bf16.gmra.mxu1 %vm5277_vm11, %v7164_v56  ;;  %vm7175_vm0 = vcmask 1041409   ;;  %v4868_v14 = vld [vmem:[#allocation2 + $0x204] sm:$0xf] }
 0x1cc   : > { %v2426_v2 = vrot.slane %v2425_v6, 2  ;;  %v2217_v12 = vadd.f32 %v2173_v18, %v1122_v46  ;;  %4518 = vmatmul.msk.bf16.gmra.mxu2 %vm5277_vm11, %v7164_v56  ;;  %4550 = vmatmul.msk.bf16.gmra.mxu3 %vm5277_vm11, %v7164_v56  ;;  %v4211_v18 = vld [vmem:[#allocation2 + $0x230] sm:$0xf0] }
 0x1ce   : > { %v2427_v19 = vmax.f32 %v2425_v6, %v2426_v2 }
 0x1cf   : > { %v1303_v45 = vpop.f32.mrf.mxu2  ;;  %v5735_v28 = vpop.f32.mrf.mxu3 }
 0x1d0   : > { %7172 = vst [vmem:[#allocation17_spill] sm:$0xff] %v5735_v28  ;;  %v2428_v9 = vrot.slane %v2427_v19, 1  ;;  %v2250_v47 = vrot.slane %v1303_v45, 2  ;;  %v1127_v11 = vpop.f32.mrf.mxu0  ;;  %v1216_v50 = vpop.f32.mrf.mxu1  ;;  %v4214_v45 = vor.u32 %v4868_v14, %v4211_v18 }
 0x1d1   : > { %v2152_v3 = vrot.slane %v1216_v50, 1 }
 0x1d2   : > { %v2429_v46 = vmax.f32 %v2427_v19, %v2428_v9  ;;  %v2270_v52 = vsel %vm7173_vm13, %v2249_v58, %v2250_v47  ;;  %1864 = vmatpush.bf16.msra.mxu1 %v4214_v45 }
 0x1d3   : > { %v2314_v13 = vadd.f32 %v2270_v52, %v2217_v12  ;;  %v2172_v55 = vsel %vm7174_vm3, %v2151_v1, %v2152_v3 }
 0x1d4   : > { %v3468_v15 = vsel %vm7175_vm0, %v2429_v46, %v2422_v40  ;;  %v2218_v6 = vadd.f32 %v2172_v55, %v1125_v20  ;;  %vm7180_vm0 = vmmov %vm7174_vm3 }
 0x1d5   : > { %v2349_v2 = vsel %vm7176_vm12, %v2314_v13, -inf  ;;  %vm7179_vm12 = vmmov %vm7173_vm13 }
 0x1d6   : > { %v2430_v28 = vmax.f32 %v2313_v24, %v2349_v2 }
 0x1d7   : > { %v1305_v50 = vpop.f32.mrf.mxu2  ;;  %v5744_v59 = vpop.f32.mrf.mxu3 }
 0x1d8   : > { %7177 = vst [vmem:[#allocation18_spill] sm:$0xff] %v5744_v59  ;;  %v2431_v36 = vrot.slane %v2430_v28, 4  ;;  %v2251_v58 = vrot.slane %v1305_v50, 2  ;;  %v1130_v12 = vpop.f32.mrf.mxu0  ;;  %v1219_v19 = vpop.f32.mrf.mxu1  ;;  %v4171_v59 = vld [vmem:[#allocation2 + $0x1d8] sm:$0xf0] }
 0x1d9   : > { %v2153_v9 = vrot.slane %v1219_v19, 1 }
 0x1da   : > { %v2432_v1 = vmax.f32 %v2430_v28, %v2431_v36  ;;  %v2269_v20 = vsel %vm7173_vm13, %v2250_v47, %v2251_v58  ;;  %vm7181_vm13 = vcmask 1042434  }
 0x1db   : > { %v2315_v40 = vadd.f32 %v2269_v20, %v2218_v6  ;;  %v2171_v46 = vsel %vm7174_vm3, %v2152_v3, %v2153_v9  ;;  %4456 = vmatmul.msk.bf16.gmra.mxu0 %vm5295_vm14, %v7164_v56  ;;  %4488 = vmatmul.msk.bf16.gmra.mxu1 %vm5295_vm14, %v7164_v56  ;;  %v4863_v20 = vld [vmem:[#allocation2 + $0x1d4] sm:$0xf0]  ;;  %vm7182_vm3 = vcmp.lt.s32.totalorder %v5427_v4, 14 }
 0x1dc   : > { %v2433_v24 = vrot.slane %v2432_v1, 2  ;;  %v2219_v52 = vadd.f32 %v2171_v46, %v1127_v11  ;;  %4520 = vmatmul.msk.bf16.gmra.mxu2 %vm5295_vm14, %v7164_v56  ;;  %4552 = vmatmul.msk.bf16.gmra.mxu3 %vm5295_vm14, %v7164_v56  ;;  %v4161_v46 = vld [vmem:[#allocation2 + $0x1a0] sm:$0xf] }
 0x1de   : > { %v2434_v28 = vmax.f32 %v2432_v1, %v2433_v24  ;;  %v4169_v1 = vld [vmem:[#allocation2 + $0x1a8] sm:$0xf] }
 0x1df   : > { %v1308_v47 = vpop.f32.mrf.mxu2  ;;  %v5762_v3 = vpop.f32.mrf.mxu3 }
 0x1e0   : > { %7178 = vst [vmem:[#allocation19_spill] sm:$0xff] %v5762_v3  ;;  %v2435_v13 = vrot.slane %v2434_v28, 1  ;;  %v2252_v55 = vrot.slane %v1308_v47, 2  ;;  %v1132_v6 = vpop.f32.mrf.mxu0  ;;  %v1221_v14 = vpop.f32.mrf.mxu1  ;;  %v4170_v47 = vor.u32 %v4863_v20, %v4169_v1  ;;  %v4862_v3 = vld [vmem:[#allocation2 + $0x1cc] sm:$0xf0] }
 0x1e1   : > { %v2154_v18 = vrot.slane %v1221_v14, 1  ;;  %v4857_v14 = vld [vmem:[#allocation2 + $0x1ac] sm:$0xf] }
 0x1e2   : > { %v2436_v2 = vmax.f32 %v2434_v28, %v2435_v13  ;;  %v2268_v11 = vsel %vm7179_vm12, %v2251_v58, %v2252_v55  ;;  %v4162_v13 = vor.u32 %v4862_v3, %v4161_v46  ;;  %1954 = vmatpush.bf16.msra.mxu2 %v4170_v47 }
 0x1e3   : > { %v2316_v45 = vadd.f32 %v2268_v11, %v2219_v52  ;;  %v2170_v50 = vsel %vm7180_vm0, %v2153_v9, %v2154_v18  ;;  %v4174_v9 = vor.u32 %v4857_v14, %v4171_v59 }
 0x1e4   : > { %v3469_v36 = vsel %vm7181_vm13, %v2436_v2, %v3468_v15  ;;  %v2220_v19 = vadd.f32 %v2170_v50, %v1130_v12  ;;  %1776 = vmatpush.bf16.msra.mxu0 %v4162_v13  ;;  %vm7184_vm13 = vmmov %vm7179_vm12 }
 0x1e5   : > { %v2351_v24 = vsel %vm7182_vm3, %v2316_v45, -inf  ;;  %2043 = vmatpush.bf16.msra.mxu3 %v4174_v9  ;;  %vm7185_vm3 = vmmov %vm7180_vm0 }
 0x1e6   : > { %v2437_v28 = vmax.f32 %v2315_v40, %v2351_v24 }
 0x1e7   : > { %v1310_v58 = vpop.f32.mrf.mxu2  ;;  %v5771_v52 = vpop.f32.mrf.mxu3 }
 0x1e8   : > { %v2438_v11 = vrot.slane %v2437_v28, 4  ;;  %v2253_v15 = vrot.slane %v1310_v58, 2  ;;  %v1135_v12 = vpop.f32.mrf.mxu0  ;;  %v1224_v2 = vpop.f32.mrf.mxu1 }
 0x1e9   : > { %v2155_v50 = vrot.slane %v1224_v2, 1  ;;  %v4163_v2 = vld [vmem:[#allocation2 + $0x1d0] sm:$0xf0] }
 0x1ea   : > { %v2439_v54 = vmax.f32 %v2437_v28, %v2438_v11  ;;  %v2267_v45 = vsel %vm7179_vm12, %v2252_v55, %v2253_v15  ;;  %vm7186_vm12 = vcmask 1043459  }
 0x1eb   : > { %v2317_v1 = vadd.f32 %v2267_v45, %v2220_v19  ;;  %v2169_v40 = vsel %vm7180_vm0, %v2154_v18, %v2155_v50  ;;  %4458 = vmatmul.msk.bf16.gmra.mxu0 %vm5313_vm1, %v7164_v56  ;;  %4490 = vmatmul.msk.bf16.gmra.mxu1 %vm5313_vm1, %v7164_v56  ;;  %vm7187_vm0 = vcmp.lt.s32.totalorder %v5427_v4, 14 }
 0x1ec   : > { %v2440_v59 = vrot.slane %v2439_v54, 2  ;;  %v2221_v3 = vadd.f32 %v2169_v40, %v1132_v6  ;;  %4522 = vmatmul.msk.bf16.gmra.mxu2 %vm5313_vm1, %v7164_v56  ;;  %4554 = vmatmul.msk.bf16.gmra.mxu3 %vm5313_vm1, %v7164_v56 }
 0x1ee   : > { %v2441_v55 = vmax.f32 %v2439_v54, %v2440_v59  ;;  %v4856_v54 = vld [vmem:[#allocation2 + $0x1a4] sm:$0xf] }
 0x1ef   : > { %v1313_v18 = vpop.f32.mrf.mxu2  ;;  %v5789_v19 = vpop.f32.mrf.mxu3  ;;  %v4166_v40 = vor.u32 %v4856_v54, %v4163_v2 }
 0x1f0   : > { %7183 = vst [vmem:[#allocation20_spill] sm:$0xff] %v5789_v19  ;;  %v2442_v20 = vrot.slane %v2441_v55, 1  ;;  %v2254_v46 = vrot.slane %v1313_v18, 2  ;;  %v1137_v24 = vpop.f32.mrf.mxu0  ;;  %v1226_v47 = vpop.f32.mrf.mxu1 }
 0x1f1   : > { %v2156_v14 = vrot.slane %v1226_v47, 1  ;;  %1865 = vmatpush.bf16.msra.mxu1 %v4166_v40 }
 0x1f2   : > { %v2443_v28 = vmax.f32 %v2441_v55, %v2442_v20  ;;  %v2266_v6 = vsel %vm7184_vm13, %v2253_v15, %v2254_v46 }
 0x1f3   : > { %v2318_v13 = vadd.f32 %v2266_v6, %v2221_v3  ;;  %v2168_v58 = vsel %vm7185_vm3, %v2155_v50, %v2156_v14 }
 0x1f4   : > { %v3470_v9 = vsel %vm7186_vm12, %v2443_v28, %v3469_v36  ;;  %v2222_v11 = vadd.f32 %v2168_v58, %v1135_v12  ;;  %vm7190_vm12 = vmmov %vm7184_vm13 }
 0x1f5   : > { %v2353_v45 = vsel %vm7187_vm0, %v2318_v13, -inf  ;;  %vm7191_vm0 = vmmov %vm7185_vm3 }
 0x1f6   : > { %v2444_v59 = vmax.f32 %v2317_v1, %v2353_v45 }
 0x1f7   : > { %v1315_v18 = vpop.f32.mrf.mxu2  ;;  %v5798_v47 = vpop.f32.mrf.mxu3 }
 0x1f8   : > { %7188 = vst [vmem:[#allocation21_spill] sm:$0xff] %v5798_v47  ;;  %v2445_v55 = vrot.slane %v2444_v59, 4  ;;  %v2255_v15 = vrot.slane %v1315_v18, 2  ;;  %v1140_v3 = vpop.f32.mrf.mxu0  ;;  %v1229_v20 = vpop.f32.mrf.mxu1 }
 0x1f9   : > { %v2157_v6 = vrot.slane %v1229_v20, 1 }
 0x1fa   : > { %v2446_v50 = vmax.f32 %v2444_v59, %v2445_v55  ;;  %v2265_v36 = vsel %vm7184_vm13, %v2254_v46, %v2255_v15  ;;  %vm7192_vm13 = vcmask 1044484  }
 0x1fb   : > { %v2319_v12 = vadd.f32 %v2265_v36, %v2222_v11  ;;  %v2167_v28 = vsel %vm7185_vm3, %v2156_v14, %v2157_v6  ;;  %4460 = vmatmul.msk.bf16.gmra.mxu0 %vm5331_vm6, %v7164_v56  ;;  %4492 = vmatmul.msk.bf16.gmra.mxu1 %vm5331_vm6, %v7164_v56  ;;  %vm7193_vm3 = vcmp.lt.s32.totalorder %v5427_v4, 14 }
 0x1fc   : > { %v2447_v1 = vrot.slane %v2446_v50, 2  ;;  %v2223_v13 = vadd.f32 %v2167_v28, %v1137_v24  ;;  %4524 = vmatmul.msk.bf16.gmra.mxu2 %vm5331_vm6, %v7164_v56  ;;  %4556 = vmatmul.msk.bf16.gmra.mxu3 %vm5331_vm6, %v7164_v56 }
 0x1fe   : > { %v2448_v46 = vmax.f32 %v2446_v50, %v2447_v1 }
 0x1ff   : > { %v1318_v14 = vpop.f32.mrf.mxu2  ;;  %v5816_v58 = vpop.f32.mrf.mxu3 }
 0x200   : > { %7189 = vst [vmem:[#allocation22_spill] sm:$0xff] %v5816_v58  ;;  %v2449_v11 = vrot.slane %v2448_v46, 1  ;;  %v2256_v54 = vrot.slane %v1318_v14, 2  ;;  %v1142_v2 = vpop.f32.mrf.mxu0  ;;  %v1231_v45 = vpop.f32.mrf.mxu1 }
 0x201   : > { %v2158_v40 = vrot.slane %v1231_v45, 1 }
 0x202   : > { %v2450_v59 = vmax.f32 %v2448_v46, %v2449_v11  ;;  %v2264_v24 = vsel %vm7190_vm12, %v2255_v15, %v2256_v54 }
 0x203   : > { %v2320_v18 = vadd.f32 %v2264_v24, %v2223_v13  ;;  %v2166_v55 = vsel %vm7191_vm0, %v2157_v6, %v2158_v40  ;;  %v4121_v6 = vld [vmem:[#allocation2 + $0x148] sm:$0xf]  ;;  %v4851_v24 = vld [vmem:[#allocation2 + $0x174] sm:$0xf0] }
 0x204   : > { %v3471_v20 = vsel %vm7192_vm13, %v2450_v59, %v3470_v9  ;;  %v2224_v36 = vadd.f32 %v2166_v55, %v1140_v3  ;;  %v4113_v9 = vld [vmem:[#allocation2 + $0x140] sm:$0xf]  ;;  %v4123_v55 = vld [vmem:[#allocation2 + $0x178] sm:$0xf0]  ;;  %vm7195_vm13 = vmmov %vm7190_vm12 }
 0x205   : > { %v2355_v50 = vsel %vm7193_vm3, %v2320_v18, -inf  ;;  %v4845_v18 = vld [vmem:[#allocation2 + $0x14c] sm:$0xf]  ;;  %vm7196_vm3 = vmmov %vm7191_vm0 }
 0x206   : > { %v2451_v28 = vmax.f32 %v2319_v12, %v2355_v50  ;;  %v4122_v12 = vor.u32 %v4851_v24, %v4121_v6 }
 0x207   : > { %v1320_v1 = vpop.f32.mrf.mxu2  ;;  %v5825_v14 = vpop.f32.mrf.mxu3 }
 0x208   : > { %7194 = vst [vmem:[#allocation23_spill] sm:$0xff] %v5825_v14  ;;  %v2452_v58 = vrot.slane %v2451_v28, 4  ;;  %v2257_v45 = vrot.slane %v1320_v1, 2  ;;  %v1145_v46 = vpop.f32.mrf.mxu0  ;;  %v1234_v11 = vpop.f32.mrf.mxu1  ;;  %v4115_v1 = vld [vmem:[#allocation2 + $0x170] sm:$0xf0]  ;;  %1955 = vmatpush.bf16.msra.mxu2 %v4122_v12 }
 0x209   : > { %v2159_v47 = vrot.slane %v1234_v11, 1 }
 0x20a   : > { %v2453_v15 = vmax.f32 %v2451_v28, %v2452_v58  ;;  %v2263_v13 = vsel %vm7190_vm12, %v2256_v54, %v2257_v45  ;;  %v4850_v58 = vld [vmem:[#allocation2 + $0x16c] sm:$0xf0]  ;;  %v4844_v28 = vld [vmem:[#allocation2 + $0x144] sm:$0xf]  ;;  %vm7198_vm12 = vmmov %vm7191_vm0 }
 0x20b   : > { %v2321_v3 = vadd.f32 %v2263_v13, %v2224_v36  ;;  %v2165_v59 = vsel %vm7191_vm0, %v2158_v40, %v2159_v47  ;;  %4462 = vmatmul.msk.bf16.gmra.mxu0 %vm5349_vm10, %v7164_v56  ;;  %4494 = vmatmul.msk.bf16.gmra.mxu1 %vm5349_vm10, %v7164_v56  ;;  %v4114_v40 = vor.u32 %v4850_v58, %v4113_v9  ;;  %vm7199_vm0 = vcmask 1045509  }
 0x20c   : > { %v2454_v54 = vrot.slane %v2453_v15, 2  ;;  %v2225_v50 = vadd.f32 %v2165_v59, %v1142_v2  ;;  %4526 = vmatmul.msk.bf16.gmra.mxu2 %vm5349_vm10, %v7164_v56  ;;  %4558 = vmatmul.msk.bf16.gmra.mxu3 %vm5349_vm10, %v7164_v56  ;;  %v4126_v36 = vor.u32 %v4845_v18, %v4123_v55  ;;  %v4118_v11 = vor.u32 %v4844_v28, %v4115_v1 }
 0x20d   : > { %1777 = vmatpush.bf16.msra.mxu0 %v4114_v40  ;;  %vm7200_vm10 = vcmp.lt.s32.totalorder %v5427_v4, 14 }
 0x20e   : > { %v2455_v13 = vmax.f32 %v2453_v15, %v2454_v54  ;;  %2044 = vmatpush.bf16.msra.mxu3 %v4126_v36  ;;  %1866 = vmatpush.bf16.msra.mxu1 %v4118_v11  ;;  %v7197_v15 = vrot.slane %v5366_v31, 1 }
 0x20f   : > { %v1323_v6 = vpop.f32.mrf.mxu2  ;;  %v5843_v24 = vpop.f32.mrf.mxu3 }
 0x210   : > { %v2456_v2 = vrot.slane %v2455_v13, 1  ;;  %v2258_v59 = vrot.slane %v1323_v6, 2  ;;  %v1147_v14 = vpop.f32.mrf.mxu0  ;;  %v1236_v8 = vpop.f32.mrf.mxu1 }
 0x211   : > { %v2160_v19 = vrot.slane %v1236_v8, 1 }
 0x212   : > { %v2457_v27 = vmax.f32 %v2455_v13, %v2456_v2  ;;  %v2262_v9 = vsel %vm7195_vm13, %v2257_v45, %v2258_v59 }
 0x213   : > { %v2322_v58 = vadd.f32 %v2262_v9, %v2225_v50  ;;  %v2164_v12 = vsel %vm7196_vm3, %v2159_v47, %v2160_v19  ;;  %v2195_v18 = vsel %vm7198_vm12, %v2160_v19, %v7197_v15  ;;  %vm7203_vm3 = vmmov %vm7195_vm13 }
 0x214   : > { %v3472_v55 = vsel %vm7199_vm0, %v2457_v27, %v3471_v20  ;;  %v2226_v54 = vadd.f32 %v2164_v12, %v1145_v46  ;;  %v2227_v40 = vadd.f32 %v2195_v18, %v1147_v14  ;;  %v7202_v27 = vrot.slane %v5388_v35, 2  ;;  %vm7205_vm0 = vmmov %vm7203_vm3 }
 0x215   : > { %v2357_v8 = vsel %vm7200_vm10, %v2322_v58, -inf }
 0x216   : > { %v2458_v36 = vmax.f32 %v2321_v3, %v2357_v8 }
 0x217   : > { %v1325_v28 = vpop.f32.mrf.mxu2  ;;  %v5856_v1 = vpop.f32.mrf.mxu3 }
 0x218   : > { %v2459_v45 = vrot.slane %v2458_v36, 4  ;;  %v2259_v50 = vrot.slane %v1325_v28, 2  ;;  %v5858_v11 = vpop.f32.mrf.mxu0  ;;  %v5860_v47 = vpop.f32.mrf.mxu1 }
 0x219   : > { %7201 = vst [vmem:[#allocation24_spill] sm:$0xff] %v5860_v47  ;;  %v7086_v18 = vrot.slane %v5858_v11, 1 }
 0x21a   : > { %v2460_v31 = vmax.f32 %v2458_v36, %v2459_v45  ;;  %v2261_v19 = vsel %vm7195_vm13, %v2258_v59, %v2259_v50  ;;  %v2292_v20 = vsel %vm7203_vm3, %v2259_v50, %v7202_v27  ;;  %v3541_v36 = vld [vmem:[%s7050_s2] sm:$0x7]  ;;  %v4073_v50 = vld [vmem:[#allocation2 + $0xe8] sm:$0xf]  ;;  %vm7206_vm13 = vcmask 1046534  }
 0x21b   : > { %v2323_v14 = vadd.f32 %v2261_v19, %v2226_v54  ;;  %v2324_v46 = vadd.f32 %v2292_v20, %v2227_v40  ;;  %4464 = vmatmul.msk.bf16.gmra.mxu0 %vm5369_vm15, %v7164_v56  ;;  %4496 = vmatmul.msk.bf16.gmra.mxu1 %vm5369_vm15, %v7164_v56  ;;  %v7089_v54 = vrot.slane %v5860_v47, 2  ;;  %v4065_v19 = vld [vmem:[#allocation2 + $0xe0] sm:$0xf]  ;;  %vm2696_vm3 = vcmp.lt.s32.totalorder %v5386_v34, 5 }
 0x21c   : > { %v2461_v3 = vrot.slane %v2460_v31, 2  ;;  %4528 = vmatmul.msk.bf16.gmra.mxu2 %vm5369_vm15, %v7164_v56  ;;  %4560 = vmatmul.msk.bf16.gmra.mxu3 %vm5369_vm15, %v7164_v56 }
 0x21d   : > { %v2359_v35 = vsel %vm7200_vm10, %v2324_v46, -inf  ;;  %v4838_v46 = vld [vmem:[#allocation2 + $0x10c] sm:$0xf0]  ;;  %vm7207_vm10 = vmmov %vm7198_vm12 }
 0x21e   : > { %v2462_v13 = vmax.f32 %v2460_v31, %v2461_v3  ;;  %v2465_v6 = vmax.f32 %v2323_v14, %v2359_v35  ;;  %v4839_v31 = vld [vmem:[#allocation2 + $0x114] sm:$0xf0]  ;;  %v4833_v3 = vld [vmem:[#allocation2 + $0xec] sm:$0xf]  ;;  %v4075_v35 = vld [vmem:[#allocation2 + $0x118] sm:$0xf0] }
 0x21f   : > { %v5882_v2 = vpop.f32.mrf.mxu2  ;;  %v5884_v59 = vpop.f32.mrf.mxu3  ;;  %v4074_v14 = vor.u32 %v4839_v31, %v4073_v50 }
 0x220   : > { %7204 = vst [vmem:[#allocation25_spill] sm:$0xff] %v5884_v59  ;;  %v2463_v9 = vrot.slane %v2462_v13, 1  ;;  %v2466_v58 = vrot.slane %v2465_v6, 4  ;;  %v1428_v12 = vpop.f32.mrf.mxu0  ;;  %v1517_v15 = vpop.f32.mrf.mxu1 }
 0x221   : > { %v2473_v40 = vrot.slane %v1428_v12, 1  ;;  %v2569_v8 = vrot.slane %v1517_v15, 2  ;;  %1956 = vmatpush.bf16.msra.mxu2 %v4074_v14 }
 0x222   : > { %v2464_v28 = vmax.f32 %v2462_v13, %v2463_v9  ;;  %v2467_v45 = vmax.f32 %v2465_v6, %v2466_v58  ;;  %v4066_v6 = vor.u32 %v4838_v46, %v4065_v19  ;;  %v4078_v9 = vor.u32 %v4833_v3, %v4075_v35 }
 0x223   : > { %v2534_v27 = vsel %vm7198_vm12, %v7086_v18, %v2473_v40  ;;  %v2630_v20 = vsel %vm7205_vm0, %v7089_v54, %v2569_v8  ;;  %v3543_v18 = vperm.slane %v3541_v36, 0  ;;  %v7091_v54 = vrot.slane %v5882_v2, 3  ;;  %vm7208_vm12 = vmmov %vm7205_vm0 }
 0x224   : > { %v2468_v12 = vrot.slane %v2467_v45, 2  ;;  %v2536_v13 = vadd.f32 %v2534_v27, %v5390_v37  ;;  %v3473_v58 = vsel %vm7206_vm13, %v2464_v28, %v3472_v55  ;;  %1778 = vmatpush.bf16.msra.mxu0 %v4066_v6  ;;  %2045 = vmatpush.bf16.msra.mxu3 %v4078_v9  ;;  %vm7209_vm0 = vcmask 1047559  }
 0x225   : > { %v3549_v36 = vadd.f32 %v3543_v18, %v5687_v16  ;;  %vm7092_vm13 = vcmp.lt.s32.totalorder %v5427_v4, 13 }
 0x226   : > { %v2469_v15 = vmax.f32 %v2467_v45, %v2468_v12  ;;  %v2632_v59 = vadd.f32 %v2630_v20, %v2536_v13 }
 0x227   : > { %v1606_v32 = vpop.f32.mrf.mxu2  ;;  %v5902_v50 = vpop.f32.mrf.mxu3  ;;  %v3555_v35 = vmax.f32 %v3549_v36, 0.0  ;;  %v4067_v36 = vld [vmem:[#allocation2 + $0x110] sm:$0xf0] }
 0x228   : > { %v2470_v31 = vrot.slane %v2469_v15, 1  ;;  %v2665_v47 = vrot.slane %v1606_v32, 3  ;;  %v1431_v37 = vpop.f32.mrf.mxu0  ;;  %v1520_v19 = vpop.f32.mrf.mxu1 }
 0x229   : > { %v2474_v27 = vrot.slane %v1431_v37, 1  ;;  %v2570_v14 = vrot.slane %v1520_v19, 2 }
 0x22a   : > { %v2471_v46 = vmax.f32 %v2469_v15, %v2470_v31  ;;  %v2727_v55 = vsel %vm2696_vm3, %v7091_v54, %v2665_v47 }
 0x22b   : > { %v2729_v28 = vadd.f32 %v2727_v55, %v2632_v59  ;;  %v2533_v45 = vsel %vm7207_vm10, %v2473_v40, %v2474_v27  ;;  %v2629_v20 = vsel %vm7208_vm12, %v2569_v8, %v2570_v14  ;;  %4466 = vmatmul.msk.bf16.gmra.mxu0 %vm5404_vm9, %v7164_v56  ;;  %4498 = vmatmul.msk.bf16.gmra.mxu1 %vm5404_vm9, %v7164_v56  ;;  %v4832_v55 = vld [vmem:[#allocation2 + $0xe4] sm:$0xf] }
 0x22c   : > { %v2537_v32 = vadd.f32 %v2533_v45, %v5401_v57  ;;  %4530 = vmatmul.msk.bf16.gmra.mxu2 %vm5404_vm9, %v7164_v56  ;;  %4562 = vmatmul.msk.bf16.gmra.mxu3 %vm5404_vm9, %v7164_v56  ;;  %v3474_v16 = vsel %vm7209_vm0, %v2471_v46, %v3473_v58  ;;  %vm7211_vm0 = vmmov %vm7207_vm10 }
 0x22d   : > { %v3552_v59 = vadd.f32 %v3543_v18, %v3474_v16 }
 0x22e   : > { %v2633_v40 = vadd.f32 %v2629_v20, %v2537_v32  ;;  %v4070_v20 = vor.u32 %v4832_v55, %v4067_v36 }
 0x22f   : > { %v1609_v8 = vpop.f32.mrf.mxu2  ;;  %v5928_v3 = vpop.f32.mrf.mxu3  ;;  %v3558_v12 = vmax.f32 %v3552_v59, 0.0 }
 0x230   : > { %v2666_v13 = vrot.slane %v1609_v8, 3  ;;  %v1433_v6 = vpop.f32.mrf.mxu0  ;;  %v1522_v57 = vpop.f32.mrf.mxu1  ;;  %1867 = vmatpush.bf16.msra.mxu1 %v4070_v20 }
 0x231   : > { %v2475_v9 = vrot.slane %v1433_v6, 1  ;;  %v2571_v15 = vrot.slane %v1522_v57, 2  ;;  %v5930_v31 = vpack.c.bf16 %v3558_v12, %v3555_v35 }
 0x232   : > { %v2726_v37 = vsel %vm2696_vm3, %v2665_v47, %v2666_v13 }
 0x233   : > { %7210 = vst [vmem:[#allocation26_spill] sm:$0xff] %v5930_v31  ;;  %v2730_v58 = vadd.f32 %v2726_v37, %v2633_v40  ;;  %v2532_v18 = vsel %vm7207_vm10, %v2474_v27, %v2475_v9  ;;  %v2628_v19 = vsel %vm7208_vm12, %v2570_v14, %v2571_v15  ;;  %vm7212_vm10 = vmmov %vm7208_vm12 }
 0x234   : > { %v2538_v46 = vadd.f32 %v2532_v18, %v5429_v7  ;;  %vm7213_vm12 = vmmov %vm7211_vm0 }
 0x235   : > { %v2764_v45 = vsel %vm7092_vm13, %v2730_v58, -inf }
 0x236   : > { %v2795_v32 = vmax.f32 %v2729_v28, %v2764_v45  ;;  %v2634_v16 = vadd.f32 %v2628_v19, %v2538_v46 }
 0x237   : > { %v1611_v47 = vpop.f32.mrf.mxu2  ;;  %v5942_v59 = vpop.f32.mrf.mxu3 }
 0x238   : > { %v2667_v40 = vrot.slane %v1611_v47, 3  ;;  %v1436_v8 = vpop.f32.mrf.mxu0  ;;  %v1525_v27 = vpop.f32.mrf.mxu1 }
 0x239   : > { %v2476_v35 = vrot.slane %v1436_v8, 1  ;;  %v2572_v12 = vrot.slane %v1525_v27, 2  ;;  %v4025_v8 = vld [vmem:[#allocation2 + $0x88] sm:$0xf]  ;;  %v4827_v27 = vld [vmem:[#allocation2 + $0xb4] sm:$0xf0] }
 0x23a   : > { %v2725_v7 = vsel %vm2696_vm3, %v2666_v13, %v2667_v40  ;;  %v2796_v13 = vrot.slane %v2795_v32, 4 }
 0x23b   : > { %v2731_v14 = vadd.f32 %v2725_v7, %v2634_v16  ;;  %v2531_v6 = vsel %vm7211_vm0, %v2475_v9, %v2476_v35  ;;  %v2627_v28 = vsel %vm7212_vm10, %v2571_v15, %v2572_v12  ;;  %4468 = vmatmul.msk.bf16.gmra.mxu0 %vm5442_vm4, %v7164_v56  ;;  %4500 = vmatmul.msk.bf16.gmra.mxu1 %vm5442_vm4, %v7164_v56  ;;  %vm7214_vm0 = vmmov %vm7212_vm10  ;;  %v4017_v7 = vld [vmem:[#allocation2 + $0x80] sm:$0xf] }
 0x23c   : > { %v2539_v57 = vadd.f32 %v2531_v6, %v5439_v30  ;;  %4532 = vmatmul.msk.bf16.gmra.mxu2 %vm5442_vm4, %v7164_v56  ;;  %4564 = vmatmul.msk.bf16.gmra.mxu3 %vm5442_vm4, %v7164_v56  ;;  %v2797_v36 = vmax.f32 %v2795_v32, %v2796_v13  ;;  %v4826_v32 = vld [vmem:[#allocation2 + $0xac] sm:$0xf0]  ;;  %vm7215_vm10 = vmmov %vm7213_vm12 }
 0x23e   : > { %v2635_v9 = vadd.f32 %v2627_v28, %v2539_v57  ;;  %v4026_v28 = vor.u32 %v4827_v27, %v4025_v8  ;;  %v4821_v57 = vld [vmem:[#allocation2 + $0x8c] sm:$0xf]  ;;  %v2798_v13 = vrot.slane %v2797_v36, 2 }
 0x23f   : > { %v1614_v15 = vpop.f32.mrf.mxu2  ;;  %v5963_v37 = vpop.f32.mrf.mxu3 }
 0x240   : > { %v2668_v58 = vrot.slane %v1614_v15, 3  ;;  %v1438_v18 = vpop.f32.mrf.mxu0  ;;  %v1527_v19 = vpop.f32.mrf.mxu1  ;;  %v4018_v15 = vor.u32 %v4826_v32, %v4017_v7  ;;  %1957 = vmatpush.bf16.msra.mxu2 %v4026_v28  ;;  %v2799_v8 = vmax.f32 %v2797_v36, %v2798_v13 }
 0x241   : > { %v2477_v46 = vrot.slane %v1438_v18, 1  ;;  %v2573_v55 = vrot.slane %v1527_v19, 2  ;;  %v4027_v18 = vld [vmem:[#allocation2 + $0xb8] sm:$0xf0] }
 0x242   : > { %v2724_v30 = vsel %vm2696_vm3, %v2667_v40, %v2668_v58  ;;  %1779 = vmatpush.bf16.msra.mxu0 %v4018_v15 }
 0x243   : > { %v2732_v45 = vadd.f32 %v2724_v30, %v2635_v9  ;;  %v2530_v20 = vsel %vm7213_vm12, %v2476_v35, %v2477_v46  ;;  %v2626_v16 = vsel %vm7214_vm0, %v2572_v12, %v2573_v55  ;;  %v4030_v12 = vor.u32 %v4821_v57, %v4027_v18  ;;  %vm7216_vm12 = vmmov %vm7214_vm0 }
 0x244   : > { %v2540_v47 = vadd.f32 %v2530_v20, %v5462_v49  ;;  %vm7217_vm0 = vnez %v7134_v38 }
 0x245   : > { %v2766_v6 = vsel %vm7092_vm13, %v2732_v45, -inf  ;;  %2046 = vmatpush.bf16.msra.mxu3 %v4030_v12  ;;  %vm7218_vm13 = vcmask 1041409  }
 0x246   : > { %v2802_v40 = vmax.f32 %v2731_v14, %v2766_v6  ;;  %v2636_v9 = vadd.f32 %v2626_v16, %v2540_v47 }
 0x247   : > { %v1616_v35 = vpop.f32.mrf.mxu2  ;;  %v5974_v19 = vpop.f32.mrf.mxu3 }
 0x248   : > { %v2803_v49 = vrot.slane %v2802_v40, 4  ;;  %v2669_v30 = vrot.slane %v1616_v35, 3  ;;  %v1441_v20 = vpop.f32.mrf.mxu0  ;;  %v1530_v54 = vpop.f32.mrf.mxu1 }
 0x249   : > { %v2478_v31 = vrot.slane %v1441_v20, 1  ;;  %v2574_v45 = vrot.slane %v1530_v54, 2 }
 0x24a   : > { %v2804_v27 = vmax.f32 %v2802_v40, %v2803_v49  ;;  %v2723_v14 = vsel %vm2696_vm3, %v2668_v58, %v2669_v30  ;;  %v2800_v58 = vrot.slane %v2799_v8, 1 }
 0x24b   : > { %v2733_v16 = vadd.f32 %v2723_v14, %v2636_v9  ;;  %v2529_v47 = vsel %vm7215_vm10, %v2477_v46, %v2478_v31  ;;  %v2625_v7 = vsel %vm7216_vm12, %v2573_v55, %v2574_v45  ;;  %4470 = vmatmul.msk.bf16.gmra.mxu0 %vm7217_vm0, %v7164_v56  ;;  %4502 = vmatmul.msk.bf16.gmra.mxu1 %vm7217_vm0, %v7164_v56 }
 0x24c   : > { %v2805_v54 = vrot.slane %v2804_v27, 2  ;;  %v2541_v36 = vadd.f32 %v2529_v47, %v5471_v22  ;;  %4534 = vmatmul.msk.bf16.gmra.mxu2 %vm7217_vm0, %v7164_v56  ;;  %4566 = vmatmul.msk.bf16.gmra.mxu3 %vm7217_vm0, %v7164_v56  ;;  %v2801_v15 = vmax.f32 %v2799_v8, %v2800_v58  ;;  %v4820_v47 = vld [vmem:[#allocation2 + $0x84] sm:$0xf]  ;;  %vm7219_vm0 = vcmp.lt.s32.totalorder %v5427_v4, 13 }
 0x24e   : > { %v2806_v46 = vmax.f32 %v2804_v27, %v2805_v54  ;;  %v2637_v55 = vadd.f32 %v2625_v7, %v2541_v36  ;;  %v4019_v7 = vld [vmem:[#allocation2 + $0xb0] sm:$0xf0] }
 0x24f   : > { %v1619_v6 = vpop.f32.mrf.mxu2  ;;  %v5995_v28 = vpop.f32.mrf.mxu3  ;;  %v4022_v54 = vor.u32 %v4820_v47, %v4019_v7 }
 0x250   : > { %v2807_v32 = vrot.slane %v2806_v46, 1  ;;  %v2670_v57 = vrot.slane %v1619_v6, 3  ;;  %v1443_v13 = vpop.f32.mrf.mxu0  ;;  %v1532_v40 = vpop.f32.mrf.mxu1 }
 0x251   : > { %v2479_v9 = vrot.slane %v1443_v13, 1  ;;  %v2575_v22 = vrot.slane %v1532_v40, 2  ;;  %1868 = vmatpush.bf16.msra.mxu1 %v4022_v54 }
 0x252   : > { %v2808_v18 = vmax.f32 %v2806_v46, %v2807_v32  ;;  %v2722_v35 = vsel %vm2696_vm3, %v2669_v30, %v2670_v57 }
 0x253   : > { %v2734_v12 = vadd.f32 %v2722_v35, %v2637_v55  ;;  %v2528_v49 = vsel %vm7215_vm10, %v2478_v31, %v2479_v9  ;;  %v2624_v20 = vsel %vm7216_vm12, %v2574_v45, %v2575_v22 }
 0x254   : > { %v3493_v27 = vsel %vm7218_vm13, %v2808_v18, %v2801_v15  ;;  %v2542_v14 = vadd.f32 %v2528_v49, %v5494_v53  ;;  %vm7220_vm13 = vmmov %vm7215_vm10  ;;  %vm7222_vm10 = vnez %v7137_v29 }
 0x255   : > { %v2768_v8 = vsel %vm7219_vm0, %v2734_v12, -inf  ;;  %vm7221_vm0 = vmmov %vm7216_vm12 }
 0x256   : > { %v2809_v36 = vmax.f32 %v2733_v16, %v2768_v8  ;;  %v2638_v58 = vadd.f32 %v2624_v20, %v2542_v14  ;;  %vm7223_vm12 = vmmov %vm7220_vm13 }
 0x257   : > { %v1621_v30 = vpop.f32.mrf.mxu2  ;;  %v6007_v46 = vpop.f32.mrf.mxu3 }
 0x258   : > { %v2810_v31 = vrot.slane %v2809_v36, 4  ;;  %v2671_v55 = vrot.slane %v1621_v30, 3  ;;  %v1446_v6 = vpop.f32.mrf.mxu0  ;;  %v1535_v45 = vpop.f32.mrf.mxu1 }
 0x259   : > { %v2480_v32 = vrot.slane %v1446_v6, 1  ;;  %v2576_v13 = vrot.slane %v1535_v45, 2 }
 0x25a   : > { %v2811_v40 = vmax.f32 %v2809_v36, %v2810_v31  ;;  %v2721_v53 = vsel %vm2696_vm3, %v2670_v57, %v2671_v55 }
 0x25b   : > { %v2735_v15 = vadd.f32 %v2721_v53, %v2638_v58  ;;  %v2527_v18 = vsel %vm7220_vm13, %v2479_v9, %v2480_v32  ;;  %v2623_v16 = vsel %vm7221_vm0, %v2575_v22, %v2576_v13  ;;  %4472 = vmatmul.msk.bf16.gmra.mxu0 %vm7222_vm10, %v7164_v56  ;;  %4504 = vmatmul.msk.bf16.gmra.mxu1 %vm7222_vm10, %v7164_v56  ;;  %vm7224_vm13 = vmmov %vm7221_vm0  ;;  %vm7225_vm0 = vcmask 1042434   ;;  %v4815_v53 = vld [vmem:[#allocation2 + $0x54] sm:$0xf0] }
 0x25c   : > { %v2812_v35 = vrot.slane %v2811_v40, 2  ;;  %v2543_v12 = vadd.f32 %v2527_v18, %v5505_v21  ;;  %4536 = vmatmul.msk.bf16.gmra.mxu2 %vm7222_vm10, %v7164_v56  ;;  %4568 = vmatmul.msk.bf16.gmra.mxu3 %vm7222_vm10, %v7164_v56  ;;  %v3969_v18 = vld [vmem:[#allocation2 + $0x20] sm:$0xf]  ;;  %vm7226_vm10 = vcmp.lt.s32.totalorder %v5427_v4, 13 }
 0x25e   : > { %v2813_v57 = vmax.f32 %v2811_v40, %v2812_v35  ;;  %v2639_v9 = vadd.f32 %v2623_v16, %v2543_v12  ;;  %v3977_v40 = vld [vmem:[#allocation2 + $0x28] sm:$0xf]  ;;  %v4814_v12 = vld [vmem:[#allocation2 + $0x4c] sm:$0xf0] }
 0x25f   : > { %v1624_v22 = vpop.f32.mrf.mxu2  ;;  %v6028_v49 = vpop.f32.mrf.mxu3  ;;  %v3978_v35 = vor.u32 %v4815_v53, %v3977_v40 }
 0x260   : > { %v2814_v20 = vrot.slane %v2813_v57, 1  ;;  %v2672_v14 = vrot.slane %v1624_v22, 3  ;;  %v1448_v47 = vpop.f32.mrf.mxu0  ;;  %v1537_v7 = vpop.f32.mrf.mxu1  ;;  %v3970_v22 = vor.u32 %v4814_v12, %v3969_v18 }
 0x261   : > { %v2481_v8 = vrot.slane %v1448_v47, 1  ;;  %v2577_v54 = vrot.slane %v1537_v7, 2  ;;  %1958 = vmatpush.bf16.msra.mxu2 %v3978_v35 }
 0x262   : > { %v2815_v21 = vmax.f32 %v2813_v57, %v2814_v20  ;;  %v2720_v36 = vsel %vm2696_vm3, %v2671_v55, %v2672_v14  ;;  %v4809_v55 = vld [vmem:[#allocation2 + $0x2c] sm:$0xf]  ;;  %1780 = vmatpush.bf16.msra.mxu0 %v3970_v22 }
 0x263   : > { %v2736_v58 = vadd.f32 %v2720_v36, %v2639_v9  ;;  %v2526_v30 = vsel %vm7223_vm12, %v2480_v32, %v2481_v8  ;;  %v2622_v31 = vsel %vm7224_vm13, %v2576_v13, %v2577_v54  ;;  %v3979_v32 = vld [vmem:[#allocation2 + $0x58] sm:$0xf0] }
 0x264   : > { %v3494_v6 = vsel %vm7225_vm0, %v2815_v21, %v3493_v27  ;;  %v2544_v45 = vadd.f32 %v2526_v30, %v5527_v48  ;;  %v3982_v27 = vor.u32 %v4809_v55, %v3979_v32 }
 0x265   : > { %v2770_v16 = vsel %vm7226_vm10, %v2736_v58, -inf  ;;  %vm7227_vm10 = vmmov %vm7223_vm12 }
 0x266   : > { %v2816_v57 = vmax.f32 %v2735_v15, %v2770_v16  ;;  %v2640_v9 = vadd.f32 %v2622_v31, %v2544_v45  ;;  %2047 = vmatpush.bf16.msra.mxu3 %v3982_v27  ;;  %vm7228_vm12 = vmmov %vm7224_vm13  ;;  %vm7229_vm13 = vnez %v7142_v42 }
 0x267   : > { %v1626_v20 = vpop.f32.mrf.mxu2  ;;  %v6040_v47 = vpop.f32.mrf.mxu3  ;;  %vm7230_vm0 = vmmov %vm7227_vm10 }
 0x268   : > { %v2817_v13 = vrot.slane %v2816_v57, 4  ;;  %v2673_v48 = vrot.slane %v1626_v20, 3  ;;  %v1451_v7 = vpop.f32.mrf.mxu0  ;;  %v1540_v21 = vpop.f32.mrf.mxu1 }
 0x269   : > { %v2482_v36 = vrot.slane %v1451_v7, 1  ;;  %v2578_v30 = vrot.slane %v1540_v21, 2 }
 0x26a   : > { %v2818_v58 = vmax.f32 %v2816_v57, %v2817_v13  ;;  %v2719_v15 = vsel %vm2696_vm3, %v2672_v14, %v2673_v48 }
 0x26b   : > { %v2737_v31 = vadd.f32 %v2719_v15, %v2640_v9  ;;  %v2525_v45 = vsel %vm7227_vm10, %v2481_v8, %v2482_v36  ;;  %v2621_v40 = vsel %vm7228_vm12, %v2577_v54, %v2578_v30  ;;  %4474 = vmatmul.msk.bf16.gmra.mxu0 %vm7229_vm13, %v7164_v56  ;;  %4506 = vmatmul.msk.bf16.gmra.mxu1 %vm7229_vm13, %v7164_v56  ;;  %vm7231_vm10 = vmmov %vm7228_vm12  ;;  %vm7232_vm12 = vcmask 1043459   ;;  %v3971_v15 = vld [vmem:[#allocation2 + $0x50] sm:$0xf0] }
 0x26c   : > { %v2819_v53 = vrot.slane %v2818_v58, 2  ;;  %v2545_v18 = vadd.f32 %v2525_v45, %v5537_v39  ;;  %4538 = vmatmul.msk.bf16.gmra.mxu2 %vm7229_vm13, %v7164_v56  ;;  %4570 = vmatmul.msk.bf16.gmra.mxu3 %vm7229_vm13, %v7164_v56  ;;  %vm7233_vm13 = vcmp.lt.s32.totalorder %v5427_v4, 13 }
 0x26e   : > { %v2820_v14 = vmax.f32 %v2818_v58, %v2819_v53  ;;  %v2641_v8 = vadd.f32 %v2621_v40, %v2545_v18  ;;  %v4808_v58 = vld [vmem:[#allocation2 + $0x24] sm:$0xf] }
 0x26f   : > { %v1629_v54 = vpop.f32.mrf.mxu2  ;;  %v6061_v16 = vpop.f32.mrf.mxu3  ;;  %v3974_v40 = vor.u32 %v4808_v58, %v3971_v15 }
 0x270   : > { %v2821_v35 = vrot.slane %v2820_v14, 1  ;;  %v2674_v12 = vrot.slane %v1629_v54, 3  ;;  %v1453_v55 = vpop.f32.mrf.mxu0  ;;  %v1542_v57 = vpop.f32.mrf.mxu1 }
 0x271   : > { %v2483_v9 = vrot.slane %v1453_v55, 1  ;;  %v2579_v22 = vrot.slane %v1542_v57, 2  ;;  %1869 = vmatpush.bf16.msra.mxu1 %v3974_v40 }
 0x272   : > { %v2822_v39 = vmax.f32 %v2820_v14, %v2821_v35  ;;  %v2718_v32 = vsel %vm2696_vm3, %v2673_v48, %v2674_v12 }
 0x273   : > { %v2738_v20 = vadd.f32 %v2718_v32, %v2641_v8  ;;  %v2524_v27 = vsel %vm7230_vm0, %v2482_v36, %v2483_v9  ;;  %v2620_v13 = vsel %vm7231_vm10, %v2578_v30, %v2579_v22 }
 0x274   : > { %v3495_v7 = vsel %vm7232_vm12, %v2822_v39, %v3494_v6  ;;  %v2546_v21 = vadd.f32 %v2524_v27, %v5560_v62 }
 0x275   : > { %v2772_v45 = vsel %vm7233_vm13, %v2738_v20, -inf  ;;  %vm7234_vm13 = vmmov %vm7230_vm0 }
 0x276   : > { %v2823_v53 = vmax.f32 %v2737_v31, %v2772_v45  ;;  %v2642_v18 = vadd.f32 %v2620_v13, %v2546_v21  ;;  %vm7235_vm0 = vmmov %vm7231_vm10  ;;  %vm7236_vm10 = vnez %v7149_v44 }
 0x277   : > { %v1631_v48 = vpop.f32.mrf.mxu2  ;;  %v6073_v14 = vpop.f32.mrf.mxu3  ;;  %vm7237_vm12 = vmmov %vm7234_vm13 }
 0x278   : > { %v2824_v36 = vrot.slane %v2823_v53, 4  ;;  %v2675_v8 = vrot.slane %v1631_v48, 3  ;;  %v1456_v54 = vpop.f32.mrf.mxu0  ;;  %v1545_v30 = vpop.f32.mrf.mxu1 }
 0x279   : > { %v2484_v35 = vrot.slane %v1456_v54, 1  ;;  %v2580_v6 = vrot.slane %v1545_v30, 2 }
 0x27a   : > { %v2825_v55 = vmax.f32 %v2823_v53, %v2824_v36  ;;  %v2717_v62 = vsel %vm2696_vm3, %v2674_v12, %v2675_v8 }
 0x27b   : > { %v2739_v57 = vadd.f32 %v2717_v62, %v2642_v18  ;;  %v2523_v39 = vsel %vm7234_vm13, %v2483_v9, %v2484_v35  ;;  %v2619_v31 = vsel %vm7235_vm0, %v2579_v22, %v2580_v6  ;;  %4476 = vmatmul.msk.bf16.gmra.mxu0 %vm7236_vm10, %v7164_v56  ;;  %4508 = vmatmul.msk.bf16.gmra.mxu1 %vm7236_vm10, %v7164_v56  ;;  %vm7238_vm13 = vmmov %vm7235_vm0  ;;  %vm7239_vm0 = vcmask 1044484  }
 0x27c   : > { %v2826_v32 = vrot.slane %v2825_v55, 2  ;;  %v2547_v20 = vadd.f32 %v2523_v39, %v5570_v41  ;;  %4540 = vmatmul.msk.bf16.gmra.mxu2 %vm7236_vm10, %v7164_v56  ;;  %4572 = vmatmul.msk.bf16.gmra.mxu3 %vm7236_vm10, %v7164_v56  ;;  %vm7240_vm10 = vcmp.lt.s32.totalorder %v5427_v4, 13 }
 0x27e   : > { %v2827_v12 = vmax.f32 %v2825_v55, %v2826_v32  ;;  %v2643_v9 = vadd.f32 %v2619_v31, %v2547_v20 }
 0x27f   : > { %v1634_v22 = vpop.f32.mrf.mxu2  ;;  %v6094_v27 = vpop.f32.mrf.mxu3 }
 0x280   : > { %v2828_v13 = vrot.slane %v2827_v12, 1  ;;  %v2676_v21 = vrot.slane %v1634_v22, 3  ;;  %v1458_v58 = vpop.f32.mrf.mxu0  ;;  %v1547_v15 = vpop.f32.mrf.mxu1 }
 0x281   : > { %v2485_v45 = vrot.slane %v1458_v58, 1  ;;  %v2581_v40 = vrot.slane %v1547_v15, 2 }
 0x282   : > { %v2829_v41 = vmax.f32 %v2827_v12, %v2828_v13  ;;  %v2716_v53 = vsel %vm2696_vm3, %v2675_v8, %v2676_v21 }
 0x283   : > { %v2740_v18 = vadd.f32 %v2716_v53, %v2643_v9  ;;  %v2522_v48 = vsel %vm7237_vm12, %v2484_v35, %v2485_v45  ;;  %v2618_v36 = vsel %vm7238_vm13, %v2580_v6, %v2581_v40 }
 0x284   : > { %v3496_v54 = vsel %vm7239_vm0, %v2829_v41, %v3495_v7  ;;  %v2548_v30 = vadd.f32 %v2522_v48, %v5593_v10 }
 0x285   : > { %v2774_v55 = vsel %vm7240_vm10, %v2740_v18, -inf  ;;  %vm7241_vm10 = vmmov %vm7238_vm13 }
 0x286   : > { %v2830_v62 = vmax.f32 %v2739_v57, %v2774_v55  ;;  %v2644_v39 = vadd.f32 %v2618_v36, %v2548_v30  ;;  %vm7242_vm13 = vmmov %vm7237_vm12 }
 0x287   : > { %v1636_v31 = vpop.f32.mrf.mxu2  ;;  %v6106_v32 = vpop.f32.mrf.mxu3  ;;  %vm7243_vm0 = vmmov %vm7241_vm10 }
 0x288   : > { %v2831_v8 = vrot.slane %v2830_v62, 4  ;;  %v2677_v20 = vrot.slane %v1636_v31, 3  ;;  %v1461_v12 = vpop.f32.mrf.mxu0  ;;  %v1550_v9 = vpop.f32.mrf.mxu1 }
 0x289   : > { %v2486_v35 = vrot.slane %v1461_v12, 1  ;;  %v2582_v22 = vrot.slane %v1550_v9, 2 }
 0x28a   : > { %v2832_v13 = vmax.f32 %v2830_v62, %v2831_v8  ;;  %v2715_v7 = vsel %vm2696_vm3, %v2676_v21, %v2677_v20 }
 0x28b   : > { %v2741_v6 = vadd.f32 %v2715_v7, %v2644_v39  ;;  %v2521_v10 = vsel %vm7237_vm12, %v2485_v45, %v2486_v35  ;;  %v2617_v57 = vsel %vm7241_vm10, %v2581_v40, %v2582_v22  ;;  %4478 = vmatmul.msk.bf16.gmra.mxu0 %vm5606_vm7, %v7164_v56  ;;  %4510 = vmatmul.msk.bf16.gmra.mxu1 %vm5606_vm7, %v7164_v56  ;;  %vm7244_vm12 = vcmask 1045509  }
 0x28c   : > { %v2833_v58 = vrot.slane %v2832_v13, 2  ;;  %v2549_v15 = vadd.f32 %v2521_v10, %v5604_v0  ;;  %4542 = vmatmul.msk.bf16.gmra.mxu2 %vm5606_vm7, %v7164_v56  ;;  %4574 = vmatmul.msk.bf16.gmra.mxu3 %vm5606_vm7, %v7164_v56  ;;  %vm7245_vm10 = vcmp.lt.s32.totalorder %v5427_v4, 13 }
 0x28e   : > { %v2834_v21 = vmax.f32 %v2832_v13, %v2833_v58  ;;  %v2645_v45 = vadd.f32 %v2617_v57, %v2549_v15 }
 0x28f   : > { %v1639_v40 = vpop.f32.mrf.mxu2  ;;  %v6127_v41 = vpop.f32.mrf.mxu3 }
 0x290   : > { %v2835_v53 = vrot.slane %v2834_v21, 1  ;;  %v2678_v18 = vrot.slane %v1639_v40, 3  ;;  %v1463_v48 = vpop.f32.mrf.mxu0  ;;  %v1552_v36 = vpop.f32.mrf.mxu1 }
 0x291   : > { %v2487_v30 = vrot.slane %v1463_v48, 1  ;;  %v2583_v55 = vrot.slane %v1552_v36, 2 }
 0x292   : > { %v2836_v0 = vmax.f32 %v2834_v21, %v2835_v53  ;;  %v2714_v62 = vsel %vm2696_vm3, %v2677_v20, %v2678_v18 }
 0x293   : > { %v2742_v39 = vadd.f32 %v2714_v62, %v2645_v45  ;;  %v2520_v31 = vsel %vm7242_vm13, %v2486_v35, %v2487_v30  ;;  %v2616_v8 = vsel %vm7243_vm0, %v2582_v22, %v2583_v55 }
 0x294   : > { %v3497_v12 = vsel %vm7244_vm12, %v2836_v0, %v3496_v54  ;;  %v2550_v9 = vadd.f32 %v2520_v31, %v5626_v25  ;;  %vm7246_vm12 = vmmov %vm7242_vm13 }
 0x295   : > { %v2776_v13 = vsel %vm7245_vm10, %v2742_v39, -inf  ;;  %vm7248_vm10 = vcmask 1046534  }
 0x296   : > { %v2837_v7 = vmax.f32 %v2741_v6, %v2776_v13  ;;  %v2646_v10 = vadd.f32 %v2616_v8, %v2550_v9 }
 0x297   : > { %v1641_v57 = vpop.f32.mrf.mxu2  ;;  %v6139_v58 = vpop.f32.mrf.mxu3 }
 0x298   : > { %v2838_v20 = vrot.slane %v2837_v7, 4  ;;  %v2679_v15 = vrot.slane %v1641_v57, 3  ;;  %v1466_v21 = vpop.f32.mrf.mxu0  ;;  %v1555_v45 = vpop.f32.mrf.mxu1 }
 0x299   : > { %v2488_v35 = vrot.slane %v1466_v21, 1  ;;  %v2584_v40 = vrot.slane %v1555_v45, 2 }
 0x29a   : > { %v2839_v53 = vmax.f32 %v2837_v7, %v2838_v20  ;;  %v2713_v54 = vsel %vm2696_vm3, %v2678_v18, %v2679_v15 }
 0x29b   : > { %v2743_v22 = vadd.f32 %v2713_v54, %v2646_v10  ;;  %v2519_v25 = vsel %vm7242_vm13, %v2487_v30, %v2488_v35  ;;  %v2615_v6 = vsel %vm7243_vm0, %v2583_v55, %v2584_v40  ;;  %4576 = vmatmul.msk.bf16.vlgmr.msra.gmra.mxu0 %vm5223_vm2, %v7164_v56  ;;  %4608 = vmatmul.msk.bf16.vlgmr.msra.gmra.mxu1 %vm5223_vm2, %v7164_v56  ;;  %vm7249_vm13 = vcmp.lt.s32.totalorder %v5427_v4, 13 }
 0x29c   : > { %v2840_v48 = vrot.slane %v2839_v53, 2  ;;  %v2551_v36 = vadd.f32 %v2519_v25, %v5635_v26  ;;  %4640 = vmatmul.msk.bf16.vlgmr.msra.gmra.mxu2 %vm5223_vm2, %v7164_v56  ;;  %4672 = vmatmul.msk.bf16.vlgmr.msra.gmra.mxu3 %vm5223_vm2, %v7164_v56  ;;  %vm7247_vm2 = vmmov %vm7243_vm0 }
 0x29d   : > { %vm7250_vm0 = vmmov %vm7246_vm12 }
 0x29e   : > { %v2841_v18 = vmax.f32 %v2839_v53, %v2840_v48  ;;  %v2647_v30 = vadd.f32 %v2615_v6, %v2551_v36 }
 0x29f   : > { %v1644_v55 = vpop.f32.mrf.mxu2  ;;  %v6160_v0 = vpop.f32.mrf.mxu3 }
 0x2a0   : > { %v2842_v62 = vrot.slane %v2841_v18, 1  ;;  %v2680_v39 = vrot.slane %v1644_v55, 3  ;;  %v1468_v31 = vpop.f32.mrf.mxu0  ;;  %v1557_v8 = vpop.f32.mrf.mxu1 }
 0x2a1   : > { %v2489_v9 = vrot.slane %v1468_v31, 1  ;;  %v2585_v13 = vrot.slane %v1557_v8, 2  ;;  %v7252_v31 = vld [vmem:[#allocation13_spill] sm:$0xff] }
 0x2a2   : > { %v2843_v26 = vmax.f32 %v2841_v18, %v2842_v62  ;;  %v2712_v7 = vsel %vm2696_vm3, %v2679_v15, %v2680_v39 }
 0x2a3   : > { %v2744_v10 = vadd.f32 %v2712_v7, %v2647_v30  ;;  %v2518_v17 = vsel %vm7246_vm12, %v2488_v35, %v2489_v9  ;;  %v2614_v57 = vsel %vm7247_vm2, %v2584_v40, %v2585_v13  ;;  %vm7251_vm12 = vmmov %vm7247_vm2 }
 0x2a4   : > { %v2552_v20 = vadd.f32 %v2518_v17, %v5653_v61  ;;  %v3498_v21 = vsel %vm7248_vm10, %v2843_v26, %v3497_v12  ;;  %vm7253_vm2 = vmmov %vm7250_vm0  ;;  %vm7256_vm10 = vcmask 1047559  }
 0x2a5   : > { %v2778_v45 = vsel %vm7249_vm13, %v2744_v10, -inf }
 0x2a6   : > { %v2844_v53 = vmax.f32 %v2743_v22, %v2778_v45  ;;  %v2648_v54 = vadd.f32 %v2614_v57, %v2552_v20 }
 0x2a7   : > { %v1646_v25 = vpop.f32.mrf.mxu2  ;;  %v6172_v6 = vpop.f32.mrf.mxu3 }
 0x2a8   : > { %v2845_v15 = vrot.slane %v2844_v53, 4  ;;  %v2681_v48 = vrot.slane %v1646_v25, 3  ;;  %v1471_v36 = vpop.f32.mrf.mxu0  ;;  %v1560_v18 = vpop.f32.mrf.mxu1 }
 0x2a9   : > { %v2490_v35 = vrot.slane %v1471_v36, 1  ;;  %v2586_v30 = vrot.slane %v1560_v18, 2  ;;  %v7255_v36 = vld [vmem:[#allocation14_spill] sm:$0xff] }
 0x2aa   : > { %v2846_v55 = vmax.f32 %v2844_v53, %v2845_v15  ;;  %v2711_v61 = vsel %vm2696_vm3, %v2680_v39, %v2681_v48 }
 0x2ab   : > { %v2745_v40 = vadd.f32 %v2711_v61, %v2648_v54  ;;  %v2517_v12 = vsel %vm7250_vm0, %v2489_v9, %v2490_v35  ;;  %v2613_v22 = vsel %vm7251_vm12, %v2585_v13, %v2586_v30  ;;  %4578 = vmatmul.msk.bf16.gmra.mxu0 %vm5241_vm5, %v7164_v56  ;;  %4610 = vmatmul.msk.bf16.gmra.mxu1 %vm5241_vm5, %v7164_v56 }
 0x2ac   : > { %v2847_v62 = vrot.slane %v2846_v55, 2  ;;  %v2553_v8 = vadd.f32 %v2517_v12, %v7252_v31  ;;  %4642 = vmatmul.msk.bf16.gmra.mxu2 %vm5241_vm5, %v7164_v56  ;;  %4674 = vmatmul.msk.bf16.gmra.mxu3 %vm5241_vm5, %v7164_v56  ;;  %vm7254_vm5 = vmmov %vm7251_vm12 }
 0x2ad   : > { %vm7257_vm12 = vmmov %vm7254_vm5 }
 0x2ae   : > { %v2848_v39 = vmax.f32 %v2846_v55, %v2847_v62  ;;  %v2649_v9 = vadd.f32 %v2613_v22, %v2553_v8 }
 0x2af   : > { %v1649_v13 = vpop.f32.mrf.mxu2  ;;  %v6193_v26 = vpop.f32.mrf.mxu3 }
 0x2b0   : > { %v2849_v7 = vrot.slane %v2848_v39, 1  ;;  %v2682_v10 = vrot.slane %v1649_v13, 3  ;;  %v1473_v17 = vpop.f32.mrf.mxu0  ;;  %v1562_v57 = vpop.f32.mrf.mxu1 }
 0x2b1   : > { %v2491_v20 = vrot.slane %v1473_v17, 1  ;;  %v2587_v45 = vrot.slane %v1562_v57, 2  ;;  %v7259_v17 = vld [vmem:[#allocation15_spill] sm:$0xff] }
 0x2b2   : > { %v2850_v53 = vmax.f32 %v2848_v39, %v2849_v7  ;;  %v2710_v54 = vsel %vm2696_vm3, %v2681_v48, %v2682_v10 }
 0x2b3   : > { %v2746_v25 = vadd.f32 %v2710_v54, %v2649_v9  ;;  %v2516_v33 = vsel %vm7253_vm2, %v2490_v35, %v2491_v20  ;;  %v2612_v15 = vsel %vm7254_vm5, %v2586_v30, %v2587_v45  ;;  %vm7260_vm2 = vmmov %vm7250_vm0 }
 0x2b4   : > { %v2554_v18 = vadd.f32 %v2516_v33, %v7255_v36  ;;  %v6203_v55 = vsel %vm7256_vm10, %v2850_v53, %v3498_v21  ;;  %vm7264_vm10 = vmmov %vm7250_vm0 }
 0x2b5   : > { %v2780_v61 = vsel %vm7249_vm13, %v2746_v25, -inf }
 0x2b6   : > { %v2851_v12 = vmax.f32 %v2745_v40, %v2780_v61  ;;  %v2650_v22 = vadd.f32 %v2612_v15, %v2554_v18 }
 0x2b7   : > { %v1651_v62 = vpop.f32.mrf.mxu2  ;;  %v6207_v31 = vpop.f32.mrf.mxu3 }
 0x2b8   : > { %v2683_v48 = vrot.slane %v1651_v62, 3  ;;  %v1476_v8 = vpop.f32.mrf.mxu0  ;;  %v1565_v39 = vpop.f32.mrf.mxu1 }
 0x2b9   : > { %v2492_v35 = vrot.slane %v1476_v8, 1  ;;  %v2588_v9 = vrot.slane %v1565_v39, 2  ;;  %v7262_v39 = vld [vmem:[#allocation16_spill] sm:$0xff] }
 0x2ba   : > { %v2709_v30 = vsel %vm2696_vm3, %v2682_v10, %v2683_v48  ;;  %v2852_v10 = vrot.slane %v2851_v12, 4 }
 0x2bb   : > { %v2747_v13 = vadd.f32 %v2709_v30, %v2650_v22  ;;  %v2515_v21 = vsel %vm7250_vm0, %v2491_v20, %v2492_v35  ;;  %v2611_v7 = vsel %vm7257_vm12, %v2587_v45, %v2588_v9  ;;  %4580 = vmatmul.msk.bf16.gmra.mxu0 %vm5259_vm8, %v7164_v56  ;;  %4612 = vmatmul.msk.bf16.gmra.mxu1 %vm5259_vm8, %v7164_v56  ;;  %vm7268_vm12 = vcmask 1041409  }
 0x2bc   : > { %v2555_v57 = vadd.f32 %v2515_v21, %v7259_v17  ;;  %4644 = vmatmul.msk.bf16.gmra.mxu2 %vm5259_vm8, %v7164_v56  ;;  %4676 = vmatmul.msk.bf16.gmra.mxu3 %vm5259_vm8, %v7164_v56  ;;  %v2853_v18 = vmax.f32 %v2851_v12, %v2852_v10  ;;  %vm7261_vm8 = vmmov %vm7254_vm5 }
 0x2bd   : > { %vm7263_vm5 = vmmov %vm7249_vm13 }
 0x2be   : > { %v2651_v20 = vadd.f32 %v2611_v7, %v2555_v57  ;;  %v2854_v7 = vrot.slane %v2853_v18, 2  ;;  %vm7265_vm13 = vmmov %vm7261_vm8 }
 0x2bf   : > { %v1654_v45 = vpop.f32.mrf.mxu2  ;;  %v6228_v53 = vpop.f32.mrf.mxu3 }
 0x2c0   : > { %v2684_v54 = vrot.slane %v1654_v45, 3  ;;  %v1478_v25 = vpop.f32.mrf.mxu0  ;;  %v1567_v33 = vpop.f32.mrf.mxu1 }
 0x2c1   : > { %v2493_v15 = vrot.slane %v1478_v25, 1  ;;  %v2589_v36 = vrot.slane %v1567_v33, 2  ;;  %v2855_v33 = vmax.f32 %v2853_v18, %v2854_v7 }
 0x2c2   : > { %v2708_v61 = vsel %vm2696_vm3, %v2683_v48, %v2684_v54 }
 0x2c3   : > { %v2748_v22 = vadd.f32 %v2708_v61, %v2651_v20  ;;  %v2514_v62 = vsel %vm7260_vm2, %v2492_v35, %v2493_v15  ;;  %v2610_v8 = vsel %vm7261_vm8, %v2588_v9, %v2589_v36  ;;  %vm7270_vm2 = vmmov %vm7263_vm5 }
 0x2c4   : > { %v2556_v30 = vadd.f32 %v2514_v62, %v7262_v39 }
 0x2c5   : > { %v2782_v21 = vsel %vm7263_vm5, %v2748_v22, -inf }
 0x2c6   : > { %v2858_v40 = vmax.f32 %v2747_v13, %v2782_v21  ;;  %v2652_v17 = vadd.f32 %v2610_v8, %v2556_v30 }
 0x2c7   : > { %v1656_v57 = vpop.f32.mrf.mxu2  ;;  %v6239_v12 = vpop.f32.mrf.mxu3 }
 0x2c8   : > { %v2859_v10 = vrot.slane %v2858_v40, 4  ;;  %v2685_v48 = vrot.slane %v1656_v57, 3  ;;  %v1481_v20 = vpop.f32.mrf.mxu0  ;;  %v1570_v45 = vpop.f32.mrf.mxu1 }
 0x2c9   : > { %v2494_v25 = vrot.slane %v1481_v20, 1  ;;  %v2590_v35 = vrot.slane %v1570_v45, 2 }
 0x2ca   : > { %v2860_v61 = vmax.f32 %v2858_v40, %v2859_v10  ;;  %v2707_v9 = vsel %vm2696_vm3, %v2684_v54, %v2685_v48  ;;  %v2856_v54 = vrot.slane %v2855_v33, 1 }
 0x2cb   : > { %v2749_v62 = vadd.f32 %v2707_v9, %v2652_v17  ;;  %v2513_v22 = vsel %vm7264_vm10, %v2493_v15, %v2494_v25  ;;  %v2609_v13 = vsel %vm7265_vm13, %v2589_v36, %v2590_v35  ;;  %4582 = vmatmul.msk.bf16.gmra.mxu0 %vm5277_vm11, %v7164_v56  ;;  %4614 = vmatmul.msk.bf16.gmra.mxu1 %vm5277_vm11, %v7164_v56  ;;  %vm7279_vm13 = vcmask 1042434  }
 0x2cc   : > { %v2861_v18 = vrot.slane %v2860_v61, 2  ;;  %v2557_v8 = vadd.f32 %v2513_v22, %v5717_v60  ;;  %4646 = vmatmul.msk.bf16.gmra.mxu2 %vm5277_vm11, %v7164_v56  ;;  %4678 = vmatmul.msk.bf16.gmra.mxu3 %vm5277_vm11, %v7164_v56  ;;  %v2857_v10 = vmax.f32 %v2855_v33, %v2856_v54  ;;  %vm7266_vm11 = vmmov %vm7250_vm0 }
 0x2cd   : > { %vm7267_vm0 = vmmov %vm7261_vm8 }
 0x2ce   : > { %v2862_v15 = vmax.f32 %v2860_v61, %v2861_v18  ;;  %v2653_v36 = vadd.f32 %v2609_v13, %v2557_v8  ;;  %v7269_v13 = vld [vmem:[#allocation17_spill] sm:$0xff]  ;;  %vm7272_vm8 = vmmov %vm7264_vm10 }
 0x2cf   : > { %v1659_v39 = vpop.f32.mrf.mxu2  ;;  %v6260_v30 = vpop.f32.mrf.mxu3  ;;  %vm7273_vm5 = vmmov %vm7267_vm0 }
 0x2d0   : > { %v2863_v21 = vrot.slane %v2862_v15, 1  ;;  %v2686_v7 = vrot.slane %v1659_v39, 3  ;;  %v1483_v40 = vpop.f32.mrf.mxu0  ;;  %v1572_v17 = vpop.f32.mrf.mxu1  ;;  %vm7277_vm10 = vmmov %vm7272_vm8 }
 0x2d1   : > { %v2495_v57 = vrot.slane %v1483_v40, 1  ;;  %v2591_v60 = vrot.slane %v1572_v17, 2 }
 0x2d2   : > { %v2864_v20 = vmax.f32 %v2862_v15, %v2863_v21  ;;  %v2706_v45 = vsel %vm2696_vm3, %v2685_v48, %v2686_v7 }
 0x2d3   : > { %v2750_v9 = vadd.f32 %v2706_v45, %v2653_v36  ;;  %v2512_v51 = vsel %vm7266_vm11, %v2494_v25, %v2495_v57  ;;  %v2608_v61 = vsel %vm7267_vm0, %v2590_v35, %v2591_v60  ;;  %vm7281_vm11 = vmmov %vm7270_vm2 }
 0x2d4   : > { %v3500_v22 = vsel %vm7268_vm12, %v2864_v20, %v2857_v10  ;;  %v2558_v18 = vadd.f32 %v2512_v51, %v7269_v13  ;;  %vm7283_vm12 = vmmov %vm7273_vm5 }
 0x2d5   : > { %v2784_v8 = vsel %vm7270_vm2, %v2750_v9, -inf }
 0x2d6   : > { %v2865_v39 = vmax.f32 %v2749_v62, %v2784_v8  ;;  %v2654_v33 = vadd.f32 %v2608_v61, %v2558_v18  ;;  %v7275_v61 = vld [vmem:[#allocation18_spill] sm:$0xff] }
 0x2d7   : > { %v1661_v54 = vpop.f32.mrf.mxu2  ;;  %v6272_v15 = vpop.f32.mrf.mxu3 }
 0x2d8   : > { %7271 = vst [vmem:[#allocation13_spill] sm:$0xff] %v6272_v15  ;;  %v2866_v48 = vrot.slane %v2865_v39, 4  ;;  %v2687_v36 = vrot.slane %v1661_v54, 3  ;;  %v1486_v21 = vpop.f32.mrf.mxu0  ;;  %v1575_v40 = vpop.f32.mrf.mxu1 }
 0x2d9   : > { %v2496_v25 = vrot.slane %v1486_v21, 1  ;;  %v2592_v17 = vrot.slane %v1575_v40, 2 }
 0x2da   : > { %v2867_v45 = vmax.f32 %v2865_v39, %v2866_v48  ;;  %v2705_v35 = vsel %vm2696_vm3, %v2686_v7, %v2687_v36 }
 0x2db   : > { %v2751_v10 = vadd.f32 %v2705_v35, %v2654_v33  ;;  %v2511_v20 = vsel %vm7272_vm8, %v2495_v57, %v2496_v25  ;;  %v2607_v62 = vsel %vm7273_vm5, %v2591_v60, %v2592_v17  ;;  %4584 = vmatmul.msk.bf16.gmra.mxu0 %vm5295_vm14, %v7164_v56  ;;  %4616 = vmatmul.msk.bf16.gmra.mxu1 %vm5295_vm14, %v7164_v56 }
 0x2dc   : > { %v2868_v51 = vrot.slane %v2867_v45, 2  ;;  %v2559_v13 = vadd.f32 %v2511_v20, %v7275_v61  ;;  %4648 = vmatmul.msk.bf16.gmra.mxu2 %vm5295_vm14, %v7164_v56  ;;  %4680 = vmatmul.msk.bf16.gmra.mxu3 %vm5295_vm14, %v7164_v56  ;;  %vm7278_vm14 = vmmov %vm7267_vm0 }
 0x2dd   : > { %vm7282_vm0 = vmmov %vm7272_vm8  ;;  %vm7287_vm8 = vcmask 1043459  }
 0x2de   : > { %v2869_v7 = vmax.f32 %v2867_v45, %v2868_v51  ;;  %v2655_v57 = vadd.f32 %v2607_v62, %v2559_v13  ;;  %v7280_v51 = vld [vmem:[#allocation19_spill] sm:$0xff]  ;;  %vm7285_vm2 = vmmov %vm7282_vm0 }
 0x2df   : > { %v1664_v60 = vpop.f32.mrf.mxu2  ;;  %v6293_v18 = vpop.f32.mrf.mxu3 }
 0x2e0   : > { %7276 = vst [vmem:[#allocation14_spill] sm:$0xff] %v6293_v18  ;;  %v2870_v8 = vrot.slane %v2869_v7, 1  ;;  %v2688_v39 = vrot.slane %v1664_v60, 3  ;;  %v1488_v33 = vpop.f32.mrf.mxu0  ;;  %v1577_v54 = vpop.f32.mrf.mxu1 }
 0x2e1   : > { %v2497_v48 = vrot.slane %v1488_v33, 1  ;;  %v2593_v21 = vrot.slane %v1577_v54, 2 }
 0x2e2   : > { %v2871_v40 = vmax.f32 %v2869_v7, %v2870_v8  ;;  %v2704_v35 = vsel %vm2696_vm3, %v2687_v36, %v2688_v39 }
 0x2e3   : > { %v2752_v20 = vadd.f32 %v2704_v35, %v2655_v57  ;;  %v2510_v9 = vsel %vm7277_vm10, %v2496_v25, %v2497_v48  ;;  %v2606_v45 = vsel %vm7278_vm14, %v2592_v17, %v2593_v21  ;;  %vm7290_vm10 = vmmov %vm7282_vm0 }
 0x2e4   : > { %v3501_v62 = vsel %vm7279_vm13, %v2871_v40, %v3500_v22  ;;  %v2560_v61 = vadd.f32 %v2510_v9, %v7280_v51  ;;  %vm7295_vm13 = vmmov %vm7282_vm0 }
 0x2e5   : > { %v2786_v13 = vsel %vm7281_vm11, %v2752_v20, -inf }
 0x2e6   : > { %v2872_v60 = vmax.f32 %v2751_v10, %v2786_v13  ;;  %v2656_v33 = vadd.f32 %v2606_v45, %v2560_v61 }
 0x2e7   : > { %v1666_v7 = vpop.f32.mrf.mxu2  ;;  %v6305_v8 = vpop.f32.mrf.mxu3 }
 0x2e8   : > { %v2873_v36 = vrot.slane %v2872_v60, 4  ;;  %v2689_v57 = vrot.slane %v1666_v7, 3  ;;  %v1491_v54 = vpop.f32.mrf.mxu0  ;;  %v1580_v35 = vpop.f32.mrf.mxu1 }
 0x2e9   : > { %v2498_v25 = vrot.slane %v1491_v54, 1  ;;  %v2594_v18 = vrot.slane %v1580_v35, 2 }
 0x2ea   : > { %v2874_v15 = vmax.f32 %v2872_v60, %v2873_v36  ;;  %v2703_v22 = vsel %vm2696_vm3, %v2688_v39, %v2689_v57 }
 0x2eb   : > { %v2753_v17 = vadd.f32 %v2703_v22, %v2656_v33  ;;  %v2509_v40 = vsel %vm7282_vm0, %v2497_v48, %v2498_v25  ;;  %v2605_v10 = vsel %vm7283_vm12, %v2593_v21, %v2594_v18  ;;  %4586 = vmatmul.msk.bf16.gmra.mxu0 %vm5313_vm1, %v7164_v56  ;;  %4618 = vmatmul.msk.bf16.gmra.mxu1 %vm5313_vm1, %v7164_v56  ;;  %v7288_v22 = vld [vmem:[#allocation20_spill] sm:$0xff]  ;;  %vm7300_vm12 = vmmov %vm7285_vm2 }
 0x2ec   : > { %v2875_v20 = vrot.slane %v2874_v15, 2  ;;  %v2561_v9 = vadd.f32 %v2509_v40, %v5771_v52  ;;  %4650 = vmatmul.msk.bf16.gmra.mxu2 %vm5313_vm1, %v7164_v56  ;;  %4682 = vmatmul.msk.bf16.gmra.mxu3 %vm5313_vm1, %v7164_v56  ;;  %vm7286_vm1 = vmmov %vm7273_vm5 }
 0x2ed   : > { %vm7289_vm5 = vmmov %vm7281_vm11  ;;  %vm7297_vm11 = vcmask 1044484  }
 0x2ee   : > { %v2876_v39 = vmax.f32 %v2874_v15, %v2875_v20  ;;  %v2657_v48 = vadd.f32 %v2605_v10, %v2561_v9  ;;  %vm7291_vm14 = vmmov %vm7286_vm1 }
 0x2ef   : > { %v1669_v21 = vpop.f32.mrf.mxu2  ;;  %v6326_v45 = vpop.f32.mrf.mxu3  ;;  %vm7299_vm0 = vmmov %vm7289_vm5 }
 0x2f0   : > { %7284 = vst [vmem:[#allocation8_spill] sm:$0xff] %v6326_v45  ;;  %v2877_v51 = vrot.slane %v2876_v39, 1  ;;  %v2690_v61 = vrot.slane %v1669_v21, 3  ;;  %v1493_v13 = vpop.f32.mrf.mxu0  ;;  %v1582_v60 = vpop.f32.mrf.mxu1 }
 0x2f1   : > { %v2499_v33 = vrot.slane %v1493_v13, 1  ;;  %v2595_v7 = vrot.slane %v1582_v60, 2 }
 0x2f2   : > { %v2878_v52 = vmax.f32 %v2876_v39, %v2877_v51  ;;  %v2702_v36 = vsel %vm2696_vm3, %v2689_v57, %v2690_v61 }
 0x2f3   : > { %v2754_v54 = vadd.f32 %v2702_v36, %v2657_v48  ;;  %v2508_v5 = vsel %vm7285_vm2, %v2498_v25, %v2499_v33  ;;  %v2604_v15 = vsel %vm7286_vm1, %v2594_v18, %v2595_v7  ;;  %vm7301_vm2 = vmmov %vm7286_vm1 }
 0x2f4   : > { %v3502_v35 = vsel %vm7287_vm8, %v2878_v52, %v3501_v62  ;;  %v2562_v40 = vadd.f32 %v2508_v5, %v7288_v22  ;;  %vm7305_vm8 = vmmov %vm7290_vm10 }
 0x2f5   : > { %v2788_v10 = vsel %vm7289_vm5, %v2754_v54, -inf  ;;  %vm7307_vm5 = vmmov %vm7305_vm8 }
 0x2f6   : > { %v2879_v20 = vmax.f32 %v2753_v17, %v2788_v10  ;;  %v2658_v9 = vadd.f32 %v2604_v15, %v2562_v40  ;;  %v7293_v15 = vld [vmem:[#allocation21_spill] sm:$0xff] }
 0x2f7   : > { %v1671_v39 = vpop.f32.mrf.mxu2  ;;  %v6338_v21 = vpop.f32.mrf.mxu3 }
 0x2f8   : > { %v2880_v57 = vrot.slane %v2879_v20, 4  ;;  %v2691_v48 = vrot.slane %v1671_v39, 3  ;;  %v1496_v51 = vpop.f32.mrf.mxu0  ;;  %v1585_v13 = vpop.f32.mrf.mxu1 }
 0x2f9   : > { %v2500_v25 = vrot.slane %v1496_v51, 1  ;;  %v2596_v60 = vrot.slane %v1585_v13, 2 }
 0x2fa   : > { %v2881_v36 = vmax.f32 %v2879_v20, %v2880_v57  ;;  %v2701_v18 = vsel %vm2696_vm3, %v2690_v61, %v2691_v48 }
 0x2fb   : > { %v2755_v62 = vadd.f32 %v2701_v18, %v2658_v9  ;;  %v2507_v52 = vsel %vm7290_vm10, %v2499_v33, %v2500_v25  ;;  %v2603_v17 = vsel %vm7291_vm14, %v2595_v7, %v2596_v60  ;;  %4588 = vmatmul.msk.bf16.gmra.mxu0 %vm5331_vm6, %v7164_v56  ;;  %4620 = vmatmul.msk.bf16.gmra.mxu1 %vm5331_vm6, %v7164_v56  ;;  %vm7308_vm10 = vmmov %vm7301_vm2  ;;  %vm7309_vm14 = vcmask 1045509  }
 0x2fc   : > { %v2882_v5 = vrot.slane %v2881_v36, 2  ;;  %v2563_v22 = vadd.f32 %v2507_v52, %v7293_v15  ;;  %4652 = vmatmul.msk.bf16.gmra.mxu2 %vm5331_vm6, %v7164_v56  ;;  %4684 = vmatmul.msk.bf16.gmra.mxu3 %vm5331_vm6, %v7164_v56  ;;  %vm7296_vm6 = vmmov %vm7286_vm1 }
 0x2fe   : > { %v2883_v61 = vmax.f32 %v2881_v36, %v2882_v5  ;;  %v2659_v33 = vadd.f32 %v2603_v17, %v2563_v22  ;;  %v7298_v5 = vld [vmem:[#allocation22_spill] sm:$0xff] }
 0x2ff   : > { %v1674_v7 = vpop.f32.mrf.mxu2  ;;  %v6359_v40 = vpop.f32.mrf.mxu3 }
 0x300   : > { %7294 = vst [vmem:[#allocation15_spill] sm:$0xff] %v6359_v40  ;;  %v2884_v10 = vrot.slane %v2883_v61, 1  ;;  %v2692_v20 = vrot.slane %v1674_v7, 3  ;;  %v1498_v9 = vpop.f32.mrf.mxu0  ;;  %v1587_v39 = vpop.f32.mrf.mxu1 }
 0x301   : > { %v2501_v57 = vrot.slane %v1498_v9, 1  ;;  %v2597_v51 = vrot.slane %v1587_v39, 2 }
 0x302   : > { %v2885_v13 = vmax.f32 %v2883_v61, %v2884_v10  ;;  %v2700_v18 = vsel %vm2696_vm3, %v2691_v48, %v2692_v20 }
 0x303   : > { %v2756_v52 = vadd.f32 %v2700_v18, %v2659_v33  ;;  %v2506_v54 = vsel %vm7295_vm13, %v2500_v25, %v2501_v57  ;;  %v2602_v36 = vsel %vm7296_vm6, %v2596_v60, %v2597_v51  ;;  %vm7312_vm13 = vmmov %vm7301_vm2 }
 0x304   : > { %v3503_v17 = vsel %vm7297_vm11, %v2885_v13, %v3502_v35  ;;  %v2564_v15 = vadd.f32 %v2506_v54, %v7298_v5  ;;  %vm7313_vm6 = vmmov %vm7299_vm0 }
 0x305   : > { %v2790_v22 = vsel %vm7299_vm0, %v2756_v52, -inf  ;;  %v7302_v52 = vld [vmem:[#allocation11_spill] sm:$0xff]  ;;  %vm7317_vm11 = vmmov %vm7299_vm0 }
 0x306   : > { %v2886_v7 = vmax.f32 %v2755_v62, %v2790_v22  ;;  %v2660_v9 = vadd.f32 %v2602_v36, %v2564_v15  ;;  %vm7303_vm1 = vnez %v7302_v52  ;;  %v7304_v36 = vld [vmem:[#allocation23_spill] sm:$0xff]  ;;  %vm7321_vm0 = vmmov %vm7301_vm2 }
 0x307   : > { %v1676_v61 = vpop.f32.mrf.mxu2  ;;  %v6371_v10 = vpop.f32.mrf.mxu3 }
 0x308   : > { %v2887_v48 = vrot.slane %v2886_v7, 4  ;;  %v2693_v33 = vrot.slane %v1676_v61, 3  ;;  %v1501_v39 = vpop.f32.mrf.mxu0  ;;  %v1590_v18 = vpop.f32.mrf.mxu1 }
 0x309   : > { %v2502_v25 = vrot.slane %v1501_v39, 1  ;;  %v2598_v40 = vrot.slane %v1590_v18, 2 }
 0x30a   : > { %v2888_v45 = vmax.f32 %v2886_v7, %v2887_v48  ;;  %v2699_v35 = vsel %vm2696_vm3, %v2692_v20, %v2693_v33 }
 0x30b   : > { %v2757_v60 = vadd.f32 %v2699_v35, %v2660_v9  ;;  %v2505_v13 = vsel %vm7300_vm12, %v2501_v57, %v2502_v25  ;;  %v2601_v62 = vsel %vm7301_vm2, %v2597_v51, %v2598_v40  ;;  %4590 = vmatmul.msk.bf16.gmra.mxu0 %vm7303_vm1, %v7164_v56  ;;  %4622 = vmatmul.msk.bf16.gmra.mxu1 %vm7303_vm1, %v7164_v56  ;;  %vm7323_vm12 = vcmask 1046534  }
 0x30c   : > { %v2889_v54 = vrot.slane %v2888_v45, 2  ;;  %v2565_v5 = vadd.f32 %v2505_v13, %v7304_v36  ;;  %4654 = vmatmul.msk.bf16.gmra.mxu2 %vm7303_vm1, %v7164_v56  ;;  %4686 = vmatmul.msk.bf16.gmra.mxu3 %vm7303_vm1, %v7164_v56  ;;  %vm3227_vm2 = vcmp.lt.s32.totalorder %v5386_v34, 4  ;;  %vm7324_vm1 = vmmov %vm7307_vm5 }
 0x30e   : > { %v2890_v20 = vmax.f32 %v2888_v45, %v2889_v54  ;;  %v2661_v57 = vadd.f32 %v2601_v62, %v2565_v5  ;;  %v7306_v45 = vrot.slane %v5858_v11, 1 }
 0x30f   : > { %v1679_v51 = vpop.f32.mrf.mxu2  ;;  %v6392_v15 = vpop.f32.mrf.mxu3 }
 0x310   : > { %v2891_v22 = vrot.slane %v2890_v20, 1  ;;  %v2694_v7 = vrot.slane %v1679_v51, 3  ;;  %v1503_v9 = vpop.f32.mrf.mxu0  ;;  %v1592_v61 = vpop.f32.mrf.mxu1  ;;  %v7310_v51 = vld [vmem:[#allocation24_spill] sm:$0xff] }
 0x311   : > { %v2503_v48 = vrot.slane %v1503_v9, 1  ;;  %v2599_v39 = vrot.slane %v1592_v61, 2 }
 0x312   : > { %v2892_v18 = vmax.f32 %v2890_v20, %v2891_v22  ;;  %v2698_v35 = vsel %vm2696_vm3, %v2693_v33, %v2694_v7  ;;  %v7311_v33 = vrot.slane %v7310_v51, 2 }
 0x313   : > { %v2758_v13 = vadd.f32 %v2698_v35, %v2661_v57  ;;  %v2504_v52 = vsel %vm7305_vm8, %v2502_v25, %v2503_v48  ;;  %v2535_v62 = vsel %vm7307_vm5, %v2503_v48, %v7306_v45  ;;  %v2600_v54 = vsel %vm7308_vm10, %v2598_v40, %v2599_v39  ;;  %v4907_v45 = vld [vmem:[%s7051_s3 + $0x38] sm:$0xff]  ;;  %vm7325_vm8 = vmmov %vm7321_vm0 }
 0x314   : > { %v3504_v36 = vsel %vm7309_vm14, %v2892_v18, %v3503_v17  ;;  %v2566_v5 = vadd.f32 %v2504_v52, %v5843_v24  ;;  %v2567_v20 = vadd.f32 %v2535_v62, %v5856_v1  ;;  %v2631_v57 = vsel %vm7312_vm13, %v2599_v39, %v7311_v33  ;;  %3760 = vmatpush.bf16.msrb.mxu0 %v4907_v45  ;;  %vm7328_vm10 = vmmov %vm7321_vm0 }
 0x315   : > { %v2792_v11 = vsel %vm7313_vm6, %v2758_v13, -inf  ;;  %v7315_v39 = vrot.slane %v5882_v2, 3  ;;  %vm3293_vm14 = vcmp.lt.s32.totalorder %v5427_v4, 12  ;;  %vm7329_vm13 = vmmov %vm7324_vm1 }
 0x316   : > { %v2893_v25 = vmax.f32 %v2757_v60, %v2792_v11  ;;  %v2662_v22 = vadd.f32 %v2600_v54, %v2566_v5  ;;  %v2663_v9 = vadd.f32 %v2631_v57, %v2567_v20  ;;  %vm7330_vm6 = vmmov %vm7321_vm0 }
 0x317   : > { %v1681_v61 = vpop.f32.mrf.mxu2  ;;  %v6413_v48 = vpop.f32.mrf.mxu3 }
 0x318   : > { %v2894_v40 = vrot.slane %v2893_v25, 4  ;;  %v2695_v17 = vrot.slane %v1681_v61, 3  ;;  %v6415_v18 = vpop.f32.mrf.mxu0  ;;  %v6417_v24 = vpop.f32.mrf.mxu1 }
 0x319   : > { %7314 = vst [vmem:[#allocation16_spill] sm:$0xff] %v6417_v24 }
 0x31a   : > { %v2895_v1 = vmax.f32 %v2893_v25, %v2894_v40  ;;  %v2697_v35 = vsel %vm2696_vm3, %v2694_v7, %v2695_v17  ;;  %v2728_v60 = vsel %vm2696_vm3, %v2695_v17, %v7315_v39  ;;  %v7098_v25 = vrot.slane %v6415_v18, 1 }
 0x31b   : > { %v2759_v13 = vadd.f32 %v2697_v35, %v2662_v22  ;;  %v2760_v52 = vadd.f32 %v2728_v60, %v2663_v9  ;;  %4592 = vmatmul.msk.bf16.gmra.mxu0 %vm5369_vm15, %v7164_v56  ;;  %4624 = vmatmul.msk.bf16.gmra.mxu1 %vm5369_vm15, %v7164_v56  ;;  %v7097_v22 = vrot.slane %v6417_v24, 2  ;;  %v7322_v60 = vld [vmem:[#allocation25_spill] sm:$0xff] }
 0x31c   : > { %v2896_v62 = vrot.slane %v2895_v1, 2  ;;  %4656 = vmatmul.msk.bf16.gmra.mxu2 %vm5369_vm15, %v7164_v56  ;;  %4688 = vmatmul.msk.bf16.gmra.mxu3 %vm5369_vm15, %v7164_v56  ;;  %vm7320_vm15 = vmmov %vm7307_vm5  ;;  %vm7326_vm5 = vcmask 1047559  }
 0x31d   : > { %v2794_v2 = vsel %vm7317_vm11, %v2760_v52, -inf  ;;  %v4923_v52 = vld [vmem:[%s7051_s3 + $0xb8] sm:$0xff]  ;;  %vm7332_vm11 = vmmov %vm7321_vm0 }
 0x31e   : > { %v2897_v7 = vmax.f32 %v2895_v1, %v2896_v62  ;;  %v2900_v54 = vmax.f32 %v2759_v13, %v2794_v2  ;;  %v4915_v62 = vld [vmem:[%s7051_s3 + $0x78] sm:$0xff]  ;;  %3788 = vmatpush.bf16.msrb.mxu2 %v4923_v52 }
 0x31f   : > { %v6439_v5 = vpop.f32.mrf.mxu2  ;;  %v6441_v20 = vpop.f32.mrf.mxu3  ;;  %3774 = vmatpush.bf16.msrb.mxu1 %v4915_v62 }
 0x320   : > { %7318 = vst [vmem:[#allocation17_spill] sm:$0xff] %v6439_v5  ;;  %v2898_v51 = vrot.slane %v2897_v7, 1  ;;  %v2901_v33 = vrot.slane %v2900_v54, 4  ;;  %v1784_v57 = vpop.f32.mrf.mxu0  ;;  %v1873_v11 = vpop.f32.mrf.mxu1 }
 0x321   : > { %7319 = vst [vmem:[#allocation9_spill] sm:$0xff] %v6441_v20  ;;  %v2908_v9 = vrot.slane %v1784_v57, 1  ;;  %v3004_v61 = vrot.slane %v1873_v11, 2  ;;  %v7100_v57 = vrot.slane %v6439_v5, 3 }
 0x322   : > { %v2899_v40 = vmax.f32 %v2897_v7, %v2898_v51  ;;  %v2902_v17 = vmax.f32 %v2900_v54, %v2901_v33  ;;  %v4985_v51 = vld [vmem:[%s7050_s2] sm:$0x7] }
 0x323   : > { %v2969_v1 = vsel %vm7320_vm15, %v7098_v25, %v2908_v9  ;;  %v3065_v35 = vsel %vm7321_vm0, %v7097_v22, %v3004_v61  ;;  %v3544_v33 = vperm.slane %v4985_v51, 1  ;;  %v7099_v22 = vrot.slane %v6441_v20, 4  ;;  %vm7333_vm15 = vmmov %vm7324_vm1 }
 0x324   : > { %v2903_v39 = vrot.slane %v2902_v17, 2  ;;  %v2971_v13 = vadd.f32 %v2969_v1, %v7322_v60  ;;  %v3505_v2 = vsel %vm7323_vm12, %v2899_v40, %v3504_v36  ;;  %vm7334_vm12 = vnez %v7134_v38 }
 0x325   : > { %v3550_v51 = vadd.f32 %v3544_v33, %v6203_v55 }
 0x326   : > { %v2904_v7 = vmax.f32 %v2902_v17, %v2903_v39  ;;  %v3067_v54 = vadd.f32 %v3065_v35, %v2971_v13 }
 0x327   : > { %v1962_v11 = vpop.f32.mrf.mxu2  ;;  %v2051_v1 = vpop.f32.mrf.mxu3 }
 0x328   : > { %v2905_v60 = vrot.slane %v2904_v7, 1  ;;  %v3100_v36 = vrot.slane %v1962_v11, 3  ;;  %v3196_v40 = vrot.slane %v2051_v1, 4  ;;  %v1787_v17 = vpop.f32.mrf.mxu0  ;;  %v1876_v35 = vpop.f32.mrf.mxu1 }
 0x329   : > { %v2909_v39 = vrot.slane %v1787_v17, 1  ;;  %v3005_v13 = vrot.slane %v1876_v35, 2  ;;  %v3556_v35 = vmax.f32 %v3550_v51, 0.0 }
 0x32a   : > { %v2906_v52 = vmax.f32 %v2904_v7, %v2905_v60  ;;  %v3161_v45 = vsel %vm2696_vm3, %v7100_v57, %v3100_v36  ;;  %v3258_v62 = vsel %vm3227_vm2, %v7099_v22, %v3196_v40 }
 0x32b   : > { %v3163_v25 = vadd.f32 %v3161_v45, %v3067_v54  ;;  %v2968_v11 = vsel %vm7324_vm1, %v2908_v9, %v2909_v39  ;;  %v3064_v1 = vsel %vm7325_vm8, %v3004_v61, %v3005_v13  ;;  %4594 = vmatmul.msk.bf16.gmra.mxu0 %vm5404_vm9, %v7164_v56  ;;  %4626 = vmatmul.msk.bf16.gmra.mxu1 %vm5404_vm9, %v7164_v56  ;;  %vm7335_vm8 = vmmov %vm7321_vm0 }
 0x32c   : > { %v2972_v7 = vadd.f32 %v2968_v11, %v5902_v50  ;;  %4658 = vmatmul.msk.bf16.gmra.mxu2 %vm5404_vm9, %v7164_v56  ;;  %4690 = vmatmul.msk.bf16.gmra.mxu3 %vm5404_vm9, %v7164_v56  ;;  %v3506_v55 = vsel %vm7326_vm5, %v2906_v52, %v3505_v2  ;;  %vm7327_vm9 = vmmov %vm7324_vm1  ;;  %vm7336_vm5 = vcmask 1041409  }
 0x32d   : > { %v3260_v9 = vadd.f32 %v3258_v62, %v3163_v25  ;;  %v3553_v61 = vadd.f32 %v3544_v33, %v3506_v55 }
 0x32e   : > { %v3068_v54 = vadd.f32 %v3064_v1, %v2972_v7 }
 0x32f   : > { %v1965_v60 = vpop.f32.mrf.mxu2  ;;  %v2054_v17 = vpop.f32.mrf.mxu3  ;;  %v3559_v45 = vmax.f32 %v3553_v61, 0.0 }
 0x330   : > { %v3101_v22 = vrot.slane %v1965_v60, 3  ;;  %v3197_v57 = vrot.slane %v2054_v17, 4  ;;  %v1789_v50 = vpop.f32.mrf.mxu0  ;;  %v1878_v11 = vpop.f32.mrf.mxu1 }
 0x331   : > { %v2910_v20 = vrot.slane %v1789_v50, 1  ;;  %v3006_v5 = vrot.slane %v1878_v11, 2  ;;  %v6497_v24 = vpack.c.bf16 %v3559_v45, %v3556_v35 }
 0x332   : > { %v3160_v63 = vsel %vm2696_vm3, %v3100_v36, %v3101_v22  ;;  %v3257_v25 = vsel %vm3227_vm2, %v3196_v40, %v3197_v57 }
 0x333   : > { %v3164_v2 = vadd.f32 %v3160_v63, %v3068_v54  ;;  %v2967_v33 = vsel %vm7327_vm9, %v2909_v39, %v2910_v20  ;;  %v3063_v52 = vsel %vm7328_vm10, %v3005_v13, %v3006_v5  ;;  %vm7337_vm9 = vmmov %vm7324_vm1 }
 0x334   : > { %v2973_v62 = vadd.f32 %v2967_v33, %v5928_v3  ;;  %vm7338_vm10 = vmmov %vm7321_vm0 }
 0x335   : > { %v3261_v51 = vadd.f32 %v3257_v25, %v3164_v2 }
 0x336   : > { %v3069_v1 = vadd.f32 %v3063_v52, %v2973_v62 }
 0x337   : > { %v3295_v7 = vsel %vm3293_vm14, %v3261_v51, -inf  ;;  %v1967_v36 = vpop.f32.mrf.mxu2  ;;  %v2056_v55 = vpop.f32.mrf.mxu3 }
 0x338   : > { %v3326_v61 = vmax.f32 %v3260_v9, %v3295_v7  ;;  %v3102_v40 = vrot.slane %v1967_v36, 3  ;;  %v3198_v54 = vrot.slane %v2056_v55, 4  ;;  %v1792_v60 = vpop.f32.mrf.mxu0  ;;  %v1881_v17 = vpop.f32.mrf.mxu1 }
 0x339   : > { %v2911_v39 = vrot.slane %v1792_v60, 1  ;;  %v3007_v35 = vrot.slane %v1881_v17, 2 }
 0x33a   : > { %v3159_v13 = vsel %vm2696_vm3, %v3101_v22, %v3102_v40  ;;  %v3256_v3 = vsel %vm3227_vm2, %v3197_v57, %v3198_v54  ;;  %v3327_v63 = vrot.slane %v3326_v61, 4 }
 0x33b   : > { %v3165_v45 = vadd.f32 %v3159_v13, %v3069_v1  ;;  %v2966_v50 = vsel %vm7329_vm13, %v2910_v20, %v2911_v39  ;;  %v3062_v11 = vsel %vm7330_vm6, %v3006_v5, %v3007_v35  ;;  %4596 = vmatmul.msk.bf16.gmra.mxu0 %vm5442_vm4, %v7164_v56  ;;  %4628 = vmatmul.msk.bf16.gmra.mxu1 %vm5442_vm4, %v7164_v56  ;;  %vm7340_vm6 = vmmov %vm7324_vm1 }
 0x33c   : > { %v2974_v22 = vadd.f32 %v2966_v50, %v5942_v59  ;;  %4660 = vmatmul.msk.bf16.gmra.mxu2 %vm5442_vm4, %v7164_v56  ;;  %4692 = vmatmul.msk.bf16.gmra.mxu3 %vm5442_vm4, %v7164_v56  ;;  %vm7331_vm4 = vmmov %vm7324_vm1  ;;  %v3328_v55 = vmax.f32 %v3326_v61, %v3327_v63  ;;  %vm7339_vm13 = vnez %v7137_v29 }
 0x33d   : > { %v3262_v20 = vadd.f32 %v3256_v3, %v3165_v45  ;;  %v4922_v3 = vld [vmem:[%s7051_s3 + $0xb0] sm:$0xff] }
 0x33e   : > { %v3070_v5 = vadd.f32 %v3062_v11, %v2974_v22  ;;  %3789 = vmatpush.bf16.msrb.mxu2 %v4922_v3 }
 0x33f   : > { %v1970_v57 = vpop.f32.mrf.mxu2  ;;  %v2059_v9 = vpop.f32.mrf.mxu3 }
 0x340   : > { %v3103_v25 = vrot.slane %v1970_v57, 3  ;;  %v3199_v2 = vrot.slane %v2059_v9, 4  ;;  %v1794_v33 = vpop.f32.mrf.mxu0  ;;  %v1883_v52 = vpop.f32.mrf.mxu1 }
 0x341   : > { %v2912_v62 = vrot.slane %v1794_v33, 1  ;;  %v3008_v51 = vrot.slane %v1883_v52, 2 }
 0x342   : > { %v3158_v59 = vsel %vm2696_vm3, %v3102_v40, %v3103_v25  ;;  %v3255_v1 = vsel %vm3227_vm2, %v3198_v54, %v3199_v2  ;;  %v4906_v40 = vld [vmem:[%s7051_s3 + $0x30] sm:$0xff] }
 0x343   : > { %v3166_v7 = vadd.f32 %v3158_v59, %v3070_v5  ;;  %v2965_v43 = vsel %vm7331_vm4, %v2911_v39, %v2912_v62  ;;  %v3061_v36 = vsel %vm7332_vm11, %v3007_v35, %v3008_v51  ;;  %v4914_v54 = vld [vmem:[%s7051_s3 + $0x70] sm:$0xff]  ;;  %3761 = vmatpush.bf16.msrb.mxu0 %v4906_v40  ;;  %vm7341_vm4 = vmmov %vm7321_vm0  ;;  %vm7342_vm11 = vcmask 1042434  }
 0x344   : > { %v2975_v60 = vadd.f32 %v2965_v43, %v5963_v37  ;;  %v3329_v37 = vrot.slane %v3328_v55, 2  ;;  %3775 = vmatpush.bf16.msrb.mxu1 %v4914_v54 }
 0x345   : > { %v3263_v17 = vadd.f32 %v3255_v1, %v3166_v7 }
 0x346   : > { %v3071_v13 = vadd.f32 %v3061_v36, %v2975_v60  ;;  %v3330_v7 = vmax.f32 %v3328_v55, %v3329_v37 }
 0x347   : > { %v3297_v39 = vsel %vm3293_vm14, %v3263_v17, -inf  ;;  %v1972_v61 = vpop.f32.mrf.mxu2  ;;  %v2061_v35 = vpop.f32.mrf.mxu3 }
 0x348   : > { %v3333_v45 = vmax.f32 %v3262_v20, %v3297_v39  ;;  %v3104_v50 = vrot.slane %v1972_v61, 3  ;;  %v3200_v11 = vrot.slane %v2061_v35, 4  ;;  %v1797_v22 = vpop.f32.mrf.mxu0  ;;  %v1886_v5 = vpop.f32.mrf.mxu1  ;;  %v3331_v17 = vrot.slane %v3330_v7, 1 }
 0x349   : > { %v2913_v57 = vrot.slane %v1797_v22, 1  ;;  %v3009_v9 = vrot.slane %v1886_v5, 2 }
 0x34a   : > { %v3334_v63 = vrot.slane %v3333_v45, 4  ;;  %v3157_v33 = vsel %vm2696_vm3, %v3103_v25, %v3104_v50  ;;  %v3254_v52 = vsel %vm3227_vm2, %v3199_v2, %v3200_v11  ;;  %v3332_v5 = vmax.f32 %v3330_v7, %v3331_v17 }
 0x34b   : > { %v3167_v59 = vadd.f32 %v3157_v33, %v3071_v13  ;;  %v2964_v20 = vsel %vm7333_vm15, %v2912_v62, %v2913_v57  ;;  %v3060_v1 = vsel %vm7321_vm0, %v3008_v51, %v3009_v9  ;;  %4598 = vmatmul.msk.bf16.gmra.mxu0 %vm7334_vm12, %v7164_v56  ;;  %4630 = vmatmul.msk.bf16.gmra.mxu1 %vm7334_vm12, %v7164_v56  ;;  %vm7343_vm15 = vmmov %vm7324_vm1 }
 0x34c   : > { %v3335_v25 = vmax.f32 %v3333_v45, %v3334_v63  ;;  %v2976_v43 = vadd.f32 %v2964_v20, %v5974_v19  ;;  %4662 = vmatmul.msk.bf16.gmra.mxu2 %vm7334_vm12, %v7164_v56  ;;  %4694 = vmatmul.msk.bf16.gmra.mxu3 %vm7334_vm12, %v7164_v56  ;;  %vm7344_vm12 = vnez %v7142_v42 }
 0x34d   : > { %v3264_v2 = vadd.f32 %v3254_v52, %v3167_v59 }
 0x34e   : > { %v3336_v62 = vrot.slane %v3335_v25, 2  ;;  %v3072_v51 = vadd.f32 %v3060_v1, %v2976_v43 }
 0x34f   : > { %v1975_v36 = vpop.f32.mrf.mxu2  ;;  %v2064_v60 = vpop.f32.mrf.mxu3 }
 0x350   : > { %v3337_v13 = vmax.f32 %v3335_v25, %v3336_v62  ;;  %v3105_v3 = vrot.slane %v1975_v36, 3  ;;  %v3201_v55 = vrot.slane %v2064_v60, 4  ;;  %v1799_v40 = vpop.f32.mrf.mxu0  ;;  %v1888_v54 = vpop.f32.mrf.mxu1 }
 0x351   : > { %v2914_v19 = vrot.slane %v1799_v40, 1  ;;  %v3010_v39 = vrot.slane %v1888_v54, 2 }
 0x352   : > { %v3338_v61 = vrot.slane %v3337_v13, 1  ;;  %v3156_v35 = vsel %vm2696_vm3, %v3104_v50, %v3105_v3  ;;  %v3253_v38 = vsel %vm3227_vm2, %v3200_v11, %v3201_v55 }
 0x353   : > { %v3168_v37 = vadd.f32 %v3156_v35, %v3072_v51  ;;  %v2963_v45 = vsel %vm7324_vm1, %v2913_v57, %v2914_v19  ;;  %v3059_v22 = vsel %vm7335_vm8, %v3009_v9, %v3010_v39  ;;  %vm7345_vm8 = vmmov %vm7321_vm0 }
 0x354   : > { %v3339_v63 = vmax.f32 %v3337_v13, %v3338_v61  ;;  %v2977_v33 = vadd.f32 %v2963_v45, %v5995_v28 }
 0x355   : > { %v3265_v52 = vadd.f32 %v3253_v38, %v3168_v37 }
 0x356   : > { %v3525_v59 = vsel %vm7336_vm5, %v3339_v63, %v3332_v5  ;;  %v3073_v20 = vadd.f32 %v3059_v22, %v2977_v33  ;;  %vm7346_vm5 = vcmask 1043459  }
 0x357   : > { %v3299_v50 = vsel %vm3293_vm14, %v3265_v52, -inf  ;;  %v1977_v1 = vpop.f32.mrf.mxu2  ;;  %v2066_v11 = vpop.f32.mrf.mxu3 }
 0x358   : > { %v3340_v25 = vmax.f32 %v3264_v2, %v3299_v50  ;;  %v3106_v43 = vrot.slane %v1977_v1, 3  ;;  %v3202_v62 = vrot.slane %v2066_v11, 4  ;;  %v1802_v57 = vpop.f32.mrf.mxu0  ;;  %v1891_v51 = vpop.f32.mrf.mxu1  ;;  %v4905_v1 = vld [vmem:[%s7051_s3 + $0x28] sm:$0xff] }
 0x359   : > { %v2915_v36 = vrot.slane %v1802_v57, 1  ;;  %v3011_v9 = vrot.slane %v1891_v51, 2  ;;  %v4913_v11 = vld [vmem:[%s7051_s3 + $0x68] sm:$0xff]  ;;  %3762 = vmatpush.bf16.msrb.mxu0 %v4905_v1 }
 0x35a   : > { %v3341_v7 = vrot.slane %v3340_v25, 4  ;;  %v3155_v28 = vsel %vm2696_vm3, %v3105_v3, %v3106_v43  ;;  %v3252_v60 = vsel %vm3227_vm2, %v3201_v55, %v3202_v62  ;;  %3776 = vmatpush.bf16.msrb.mxu1 %v4913_v11 }
 0x35b   : > { %v3169_v17 = vadd.f32 %v3155_v28, %v3073_v20  ;;  %v2962_v13 = vsel %vm7337_vm9, %v2914_v19, %v2915_v36  ;;  %v3058_v2 = vsel %vm7338_vm10, %v3010_v39, %v3011_v9  ;;  %4600 = vmatmul.msk.bf16.gmra.mxu0 %vm7339_vm13, %v7164_v56  ;;  %4632 = vmatmul.msk.bf16.gmra.mxu1 %vm7339_vm13, %v7164_v56  ;;  %vm7347_vm9 = vmmov %vm7324_vm1 }
 0x35c   : > { %v3342_v40 = vmax.f32 %v3340_v25, %v3341_v7  ;;  %v2978_v3 = vadd.f32 %v2962_v13, %v6007_v46  ;;  %4664 = vmatmul.msk.bf16.gmra.mxu2 %vm7339_vm13, %v7164_v56  ;;  %4696 = vmatmul.msk.bf16.gmra.mxu3 %vm7339_vm13, %v7164_v56  ;;  %vm7348_vm10 = vmmov %vm7321_vm0  ;;  %vm7349_vm13 = vnez %v7149_v44 }
 0x35d   : > { %v3266_v55 = vadd.f32 %v3252_v60, %v3169_v17  ;;  %v4912_v60 = vld [vmem:[%s7051_s3 + $0x60] sm:$0xff] }
 0x35e   : > { %v3343_v54 = vrot.slane %v3342_v40, 2  ;;  %v3074_v19 = vadd.f32 %v3058_v2, %v2978_v3  ;;  %3777 = vmatpush.bf16.msrb.mxu1 %v4912_v60  ;;  %v4901_v60 = vld [vmem:[%s7051_s3 + $0x8] sm:$0xff] }
 0x35f   : > { %v1980_v39 = vpop.f32.mrf.mxu2  ;;  %v2069_v61 = vpop.f32.mrf.mxu3 }
 0x360   : > { %v3344_v35 = vmax.f32 %v3342_v40, %v3343_v54  ;;  %v3107_v38 = vrot.slane %v1980_v39, 3  ;;  %v3203_v37 = vrot.slane %v2069_v61, 4  ;;  %v1804_v45 = vpop.f32.mrf.mxu0  ;;  %v1893_v22 = vpop.f32.mrf.mxu1 }
 0x361   : > { %v2916_v5 = vrot.slane %v1804_v45, 1  ;;  %v3012_v46 = vrot.slane %v1893_v22, 2 }
 0x362   : > { %v3345_v63 = vrot.slane %v3344_v35, 1  ;;  %v3154_v33 = vsel %vm2696_vm3, %v3106_v43, %v3107_v38  ;;  %v3251_v29 = vsel %vm3227_vm2, %v3202_v62, %v3203_v37 }
 0x363   : > { %v3170_v52 = vadd.f32 %v3154_v33, %v3074_v19  ;;  %v2961_v20 = vsel %vm7340_vm6, %v2915_v36, %v2916_v5  ;;  %v3057_v50 = vsel %vm7341_vm4, %v3011_v9, %v3012_v46  ;;  %v4921_v36 = vld [vmem:[%s7051_s3 + $0xa8] sm:$0xff]  ;;  %vm7350_vm6 = vmmov %vm7324_vm1 }
 0x364   : > { %v3346_v25 = vmax.f32 %v3344_v35, %v3345_v63  ;;  %v2979_v43 = vadd.f32 %v2961_v20, %v6028_v49  ;;  %v4904_v49 = vld [vmem:[%s7051_s3 + $0x20] sm:$0xff]  ;;  %3790 = vmatpush.bf16.msrb.mxu2 %v4921_v36  ;;  %v4902_v20 = vld [vmem:[%s7051_s3 + $0x10] sm:$0xff]  ;;  %vm7351_vm4 = vmmov %vm7321_vm0 }
 0x365   : > { %v3267_v57 = vadd.f32 %v3251_v29, %v3170_v52  ;;  %3763 = vmatpush.bf16.msrb.mxu0 %v4904_v49 }
 0x366   : > { %v6622_v62 = vsel %vm7342_vm11, %v3346_v25, %v3525_v59  ;;  %v3075_v51 = vadd.f32 %v3057_v50, %v2979_v43  ;;  %vm7352_vm11 = vcmask 1044484  }
 0x367   : > { %v3301_v9 = vsel %vm3293_vm14, %v3267_v57, -inf  ;;  %v1982_v7 = vpop.f32.mrf.mxu2  ;;  %v2071_v28 = vpop.f32.mrf.mxu3 }
 0x368   : > { %v3347_v59 = vmax.f32 %v3266_v55, %v3301_v9  ;;  %v3108_v17 = vrot.slane %v1982_v7, 3  ;;  %v3204_v13 = vrot.slane %v2071_v28, 4  ;;  %v1807_v2 = vpop.f32.mrf.mxu0  ;;  %v1896_v40 = vpop.f32.mrf.mxu1 }
 0x369   : > { %v2917_v3 = vrot.slane %v1807_v2, 1  ;;  %v3013_v54 = vrot.slane %v1896_v40, 2 }
 0x36a   : > { %v3348_v19 = vrot.slane %v3347_v59, 4  ;;  %v3153_v39 = vsel %vm2696_vm3, %v3107_v38, %v3108_v17  ;;  %v3250_v61 = vsel %vm3227_vm2, %v3203_v37, %v3204_v13  ;;  %v4903_v38 = vld [vmem:[%s7051_s3 + $0x18] sm:$0xff] }
 0x36b   : > { %v3171_v35 = vadd.f32 %v3153_v39, %v3075_v51  ;;  %v2960_v55 = vsel %vm7343_vm15, %v2916_v5, %v2917_v3  ;;  %v3056_v45 = vsel %vm7321_vm0, %v3012_v46, %v3013_v54  ;;  %4602 = vmatmul.msk.bf16.gmra.mxu0 %vm7344_vm12, %v7164_v56  ;;  %4634 = vmatmul.msk.bf16.gmra.mxu1 %vm7344_vm12, %v7164_v56  ;;  %v4911_v37 = vld [vmem:[%s7051_s3 + $0x58] sm:$0xff]  ;;  %vm7353_vm15 = vmmov %vm7324_vm1 }
 0x36c   : > { %v3349_v22 = vmax.f32 %v3347_v59, %v3348_v19  ;;  %v2980_v5 = vadd.f32 %v2960_v55, %v6040_v47  ;;  %4666 = vmatmul.msk.bf16.gmra.mxu2 %vm7344_vm12, %v7164_v56  ;;  %4698 = vmatmul.msk.bf16.gmra.mxu3 %vm7344_vm12, %v7164_v56  ;;  %v4910_v47 = vld [vmem:[%s7051_s3 + $0x50] sm:$0xff]  ;;  %v4909_v59 = vld [vmem:[%s7051_s3 + $0x48] sm:$0xff]  ;;  %vm7355_vm12 = vmmov %vm7321_vm0 }
 0x36d   : > { %v3268_v46 = vadd.f32 %v3250_v61, %v3171_v35  ;;  %3764 = vmatpush.bf16.msrb.mxu0 %v4903_v38  ;;  %3778 = vmatpush.bf16.msrb.mxu1 %v4911_v37  ;;  %v4900_v61 = vld [vmem:[%s7051_s3] sm:$0xff] }
 0x36e   : > { %v3350_v63 = vrot.slane %v3349_v22, 2  ;;  %v3076_v33 = vadd.f32 %v3056_v45, %v2980_v5 }
 0x36f   : > { %v1985_v29 = vpop.f32.mrf.mxu2  ;;  %v2074_v52 = vpop.f32.mrf.mxu3 }
 0x370   : > { %v3351_v50 = vmax.f32 %v3349_v22, %v3350_v63  ;;  %v3109_v1 = vrot.slane %v1985_v29, 3  ;;  %v3205_v11 = vrot.slane %v2074_v52, 4  ;;  %v1809_v42 = vpop.f32.mrf.mxu0  ;;  %v1898_v25 = vpop.f32.mrf.mxu1 }
 0x371   : > { %v2918_v43 = vrot.slane %v1809_v42, 1  ;;  %v3014_v57 = vrot.slane %v1898_v25, 2  ;;  %3765 = vmatpush.bf16.msrb.mxu0 %v4902_v20  ;;  %3779 = vmatpush.bf16.msrb.mxu1 %v4910_v47 }
 0x372   : > { %v3352_v51 = vrot.slane %v3351_v50, 1  ;;  %v3152_v36 = vsel %vm2696_vm3, %v3108_v17, %v3109_v1  ;;  %v3249_v9 = vsel %vm3227_vm2, %v3204_v13, %v3205_v11 }
 0x373   : > { %v3172_v7 = vadd.f32 %v3152_v36, %v3076_v33  ;;  %v2959_v28 = vsel %vm7324_vm1, %v2917_v3, %v2918_v43  ;;  %v3055_v49 = vsel %vm7345_vm8, %v3013_v54, %v3014_v57  ;;  %vm7357_vm8 = vmmov %vm7350_vm6 }
 0x374   : > { %v3353_v2 = vmax.f32 %v3351_v50, %v3352_v51  ;;  %v2981_v17 = vadd.f32 %v2959_v28, %v6061_v16  ;;  %v4908_v16 = vld [vmem:[%s7051_s3 + $0x40] sm:$0xff] }
 0x375   : > { %v3269_v40 = vadd.f32 %v3249_v9, %v3172_v7  ;;  %3766 = vmatpush.bf16.msrb.mxu0 %v4901_v60  ;;  %3780 = vmatpush.bf16.msrb.mxu1 %v4909_v59 }
 0x376   : > { %v3527_v13 = vsel %vm7346_vm5, %v3353_v2, %v6622_v62  ;;  %v3077_v3 = vadd.f32 %v3055_v49, %v2981_v17  ;;  %vm7358_vm5 = vmmov %vm7321_vm0 }
 0x377   : > { %v3303_v54 = vsel %vm3293_vm14, %v3269_v40, -inf  ;;  %v1987_v19 = vpop.f32.mrf.mxu2  ;;  %v2076_v39 = vpop.f32.mrf.mxu3 }
 0x378   : > { %v3354_v35 = vmax.f32 %v3268_v46, %v3303_v54  ;;  %v3110_v55 = vrot.slane %v1987_v19, 3  ;;  %v3206_v45 = vrot.slane %v2076_v39, 4  ;;  %v1812_v38 = vpop.f32.mrf.mxu0  ;;  %v1901_v37 = vpop.f32.mrf.mxu1 }
 0x379   : > { %v2919_v62 = vrot.slane %v1812_v38, 1  ;;  %v3015_v22 = vrot.slane %v1901_v37, 2  ;;  %3767 = vmatpush.bf16.msrb.mxu0 %v4900_v61  ;;  %3781 = vmatpush.bf16.msrb.mxu1 %v4908_v16 }
 0x37a   : > { %v3355_v5 = vrot.slane %v3354_v35, 4  ;;  %v3151_v63 = vsel %vm2696_vm3, %v3109_v1, %v3110_v55  ;;  %v3248_v33 = vsel %vm3227_vm2, %v3205_v11, %v3206_v45 }
 0x37b   : > { %v3173_v29 = vadd.f32 %v3151_v63, %v3077_v3  ;;  %v2958_v52 = vsel %vm7347_vm9, %v2918_v43, %v2919_v62  ;;  %v3054_v46 = vsel %vm7348_vm10, %v3014_v57, %v3015_v22  ;;  %4604 = vmatmul.msk.bf16.gmra.mxu0 %vm7349_vm13, %v7164_v56  ;;  %4636 = vmatmul.msk.bf16.gmra.mxu1 %vm7349_vm13, %v7164_v56  ;;  %v4920_v3 = vld [vmem:[%s7051_s3 + $0xa0] sm:$0xff]  ;;  %vm7360_vm9 = vmmov %vm7350_vm6 }
 0x37c   : > { %v3356_v20 = vmax.f32 %v3354_v35, %v3355_v5  ;;  %v2982_v47 = vadd.f32 %v2958_v52, %v6073_v14  ;;  %4668 = vmatmul.msk.bf16.gmra.mxu2 %vm7349_vm13, %v7164_v56  ;;  %4700 = vmatmul.msk.bf16.gmra.mxu3 %vm7349_vm13, %v7164_v56  ;;  %vm7361_vm10 = vmmov %vm7321_vm0  ;;  %vm7362_vm13 = vcmask 1046534  }
 0x37d   : > { %v3270_v50 = vadd.f32 %v3248_v33, %v3173_v29  ;;  %3791 = vmatpush.bf16.msrb.mxu2 %v4920_v3 }
 0x37e   : > { %v3357_v1 = vrot.slane %v3356_v20, 2  ;;  %v3078_v11 = vadd.f32 %v3054_v46, %v2982_v47 }
 0x37f   : > { %v1990_v42 = vpop.f32.mrf.mxu2  ;;  %v2079_v25 = vpop.f32.mrf.mxu3 }
 0x380   : > { %v3358_v43 = vmax.f32 %v3356_v20, %v3357_v1  ;;  %v3111_v57 = vrot.slane %v1990_v42, 3  ;;  %v3207_v51 = vrot.slane %v2079_v25, 4  ;;  %v1814_v36 = vpop.f32.mrf.mxu0  ;;  %v1903_v9 = vpop.f32.mrf.mxu1 }
 0x381   : > { %v2920_v7 = vrot.slane %v1814_v36, 1  ;;  %v3016_v14 = vrot.slane %v1903_v9, 2 }
 0x382   : > { %v3359_v28 = vrot.slane %v3358_v43, 1  ;;  %v3150_v49 = vsel %vm2696_vm3, %v3110_v55, %v3111_v57  ;;  %v3247_v44 = vsel %vm3227_vm2, %v3206_v45, %v3207_v51 }
 0x383   : > { %v3174_v60 = vadd.f32 %v3150_v49, %v3078_v11  ;;  %v2957_v59 = vsel %vm7350_vm6, %v2919_v62, %v2920_v7  ;;  %v3053_v2 = vsel %vm7351_vm4, %v3015_v22, %v3016_v14  ;;  %vm7363_vm4 = vmmov %vm7321_vm0 }
 0x384   : > { %v3360_v17 = vmax.f32 %v3358_v43, %v3359_v28  ;;  %v2983_v40 = vadd.f32 %v2957_v59, %v6094_v27 }
 0x385   : > { %v3271_v54 = vadd.f32 %v3247_v44, %v3174_v60 }
 0x386   : > { %v3528_v19 = vsel %vm7352_vm11, %v3360_v17, %v3527_v13  ;;  %v3079_v39 = vadd.f32 %v3053_v2, %v2983_v40  ;;  %vm7364_vm11 = vmmov %vm7350_vm6 }
 0x387   : > { %v3305_v61 = vsel %vm3293_vm14, %v3271_v54, -inf  ;;  %v1992_v16 = vpop.f32.mrf.mxu2  ;;  %v2081_v35 = vpop.f32.mrf.mxu3 }
 0x388   : > { %v3361_v55 = vmax.f32 %v3270_v50, %v3305_v61  ;;  %v3112_v45 = vrot.slane %v1992_v16, 3  ;;  %v3208_v38 = vrot.slane %v2081_v35, 4  ;;  %v1817_v37 = vpop.f32.mrf.mxu0  ;;  %v1906_v62 = vpop.f32.mrf.mxu1 }
 0x389   : > { %v2921_v27 = vrot.slane %v1817_v37, 1  ;;  %v3017_v22 = vrot.slane %v1906_v62, 2 }
 0x38a   : > { %v3362_v5 = vrot.slane %v3361_v55, 4  ;;  %v3149_v63 = vsel %vm2696_vm3, %v3111_v57, %v3112_v45  ;;  %v3246_v13 = vsel %vm3227_vm2, %v3207_v51, %v3208_v38 }
 0x38b   : > { %v3175_v33 = vadd.f32 %v3149_v63, %v3079_v39  ;;  %v2956_v29 = vsel %vm7353_vm15, %v2920_v7, %v2921_v27  ;;  %v3052_v52 = vsel %vm7321_vm0, %v3016_v14, %v3017_v22  ;;  %4606 = vmatmul.msk.bf16.gmra.mxu0 %vm5606_vm7, %v7164_v56  ;;  %4638 = vmatmul.msk.bf16.gmra.mxu1 %vm5606_vm7, %v7164_v56  ;;  %vm7365_vm15 = vmmov %vm7321_vm0  ;;  %vm7366_vm0 = vcmask 1047559  }
 0x38c   : > { %v3363_v46 = vmax.f32 %v3361_v55, %v3362_v5  ;;  %v2984_v20 = vadd.f32 %v2956_v29, %v6106_v32  ;;  %4670 = vmatmul.msk.bf16.gmra.mxu2 %vm5606_vm7, %v7164_v56  ;;  %4702 = vmatmul.msk.bf16.gmra.mxu3 %vm5606_vm7, %v7164_v56  ;;  %vm7354_vm7 = vmmov %vm7324_vm1  ;;  %vm7356_vm1 = vcmask 1045509   ;;  %v7359_v5 = vld [vmem:[#allocation26_spill] sm:$0xff] }
 0x38d   : > { %v3272_v47 = vadd.f32 %v3246_v13, %v3175_v33 }
 0x38e   : > { %v3364_v50 = vrot.slane %v3363_v46, 2  ;;  %v3080_v1 = vadd.f32 %v3052_v52, %v2984_v20 }
 0x38f   : > { %v1995_v11 = vpop.f32.mrf.mxu2  ;;  %v2084_v42 = vpop.f32.mrf.mxu3 }
 0x390   : > { %v3365_v25 = vmax.f32 %v3363_v46, %v3364_v50  ;;  %v3113_v43 = vrot.slane %v1995_v11, 3  ;;  %v3209_v57 = vrot.slane %v2084_v42, 4  ;;  %v1819_v51 = vpop.f32.mrf.mxu0  ;;  %v1908_v36 = vpop.f32.mrf.mxu1 }
 0x391   : > { %v2922_v9 = vrot.slane %v1819_v51, 1  ;;  %v3018_v32 = vrot.slane %v1908_v36, 2 }
 0x392   : > { %v3366_v7 = vrot.slane %v3365_v25, 1  ;;  %v3148_v14 = vsel %vm2696_vm3, %v3112_v45, %v3113_v43  ;;  %v3245_v23 = vsel %vm3227_vm2, %v3208_v38, %v3209_v57 }
 0x393   : > { %v3176_v56 = vadd.f32 %v3148_v14, %v3080_v1  ;;  %v2955_v28 = vsel %vm7354_vm7, %v2921_v27, %v2922_v9  ;;  %v3051_v49 = vsel %vm7355_vm12, %v3017_v22, %v3018_v32  ;;  %v4919_v14 = vld [vmem:[%s7051_s3 + $0x98] sm:$0xff]  ;;  %vm7367_vm7 = vmmov %vm7350_vm6 }
 0x394   : > { %v3367_v44 = vmax.f32 %v3365_v25, %v3366_v7  ;;  %v2985_v60 = vadd.f32 %v2955_v28, %v6127_v41  ;;  %3792 = vmatpush.bf16.msrb.mxu2 %v4919_v14  ;;  %vm7368_vm12 = vmmov %vm7363_vm4 }
 0x395   : > { %v3273_v59 = vadd.f32 %v3245_v23, %v3176_v56 }
 0x396   : > { %v3529_v2 = vsel %vm7356_vm1, %v3367_v44, %v3528_v19  ;;  %v3081_v17 = vadd.f32 %v3051_v49, %v2985_v60  ;;  %vm7369_vm1 = vmmov %vm7350_vm6 }
 0x397   : > { %v3307_v40 = vsel %vm3293_vm14, %v3273_v59, -inf  ;;  %v1997_v3 = vpop.f32.mrf.mxu2  ;;  %v2086_v54 = vpop.f32.mrf.mxu3 }
 0x398   : > { %v3368_v39 = vmax.f32 %v3272_v47, %v3307_v40  ;;  %v3114_v61 = vrot.slane %v1997_v3, 3  ;;  %v3210_v16 = vrot.slane %v2086_v54, 4  ;;  %v1822_v35 = vpop.f32.mrf.mxu0  ;;  %v1911_v55 = vpop.f32.mrf.mxu1 }
 0x399   : > { %v2923_v45 = vrot.slane %v1822_v35, 1  ;;  %v3019_v38 = vrot.slane %v1911_v55, 2 }
 0x39a   : > { %v3369_v37 = vrot.slane %v3368_v39, 4  ;;  %v3147_v41 = vsel %vm2696_vm3, %v3113_v43, %v3114_v61  ;;  %v3244_v19 = vsel %vm3227_vm2, %v3209_v57, %v3210_v16 }
 0x39b   : > { %v3177_v62 = vadd.f32 %v3147_v41, %v3081_v17  ;;  %v2954_v27 = vsel %vm7357_vm8, %v2922_v9, %v2923_v45  ;;  %v3050_v22 = vsel %vm7358_vm5, %v3018_v32, %v3019_v38  ;;  %3768 = vmatmul.bf16.vlgmr.msrb.gmra.mxu0 %v7359_v5  ;;  %3782 = vmatmul.bf16.vlgmr.msrb.gmra.mxu1 %v6497_v24  ;;  %vm7370_vm8 = vmmov %vm7363_vm4 }
 0x39c   : > { %v3370_v63 = vmax.f32 %v3368_v39, %v3369_v37  ;;  %v2986_v13 = vadd.f32 %v2954_v27, %v6139_v58  ;;  %vm7371_vm5 = vmmov %vm7369_vm1 }
 0x39d   : > { %v3274_v33 = vadd.f32 %v3244_v19, %v3177_v62 }
 0x39e   : > { %v3371_v29 = vrot.slane %v3370_v63, 2  ;;  %v3082_v52 = vadd.f32 %v3050_v22, %v2986_v13 }
 0x39f   : > { %v2000_v46 = vpop.f32.mrf.mxu2  ;;  %v2089_v20 = vpop.f32.mrf.mxu3 }
 0x3a0   : > { %v3372_v47 = vmax.f32 %v3370_v63, %v3371_v29  ;;  %v3115_v50 = vrot.slane %v2000_v46, 3  ;;  %v3211_v1 = vrot.slane %v2089_v20, 4  ;;  %v1824_v11 = vpop.f32.mrf.mxu0  ;;  %v1913_v42 = vpop.f32.mrf.mxu1 }
 0x3a1   : > { %v2924_v25 = vrot.slane %v1824_v11, 1  ;;  %v3020_v43 = vrot.slane %v1913_v42, 2 }
 0x3a2   : > { %v3373_v57 = vrot.slane %v3372_v47, 1  ;;  %v3146_v51 = vsel %vm2696_vm3, %v3114_v61, %v3115_v50  ;;  %v3243_v24 = vsel %vm3227_vm2, %v3210_v16, %v3211_v1 }
 0x3a3   : > { %v3178_v58 = vadd.f32 %v3146_v51, %v3082_v52  ;;  %v2953_v36 = vsel %vm7360_vm9, %v2923_v45, %v2924_v25  ;;  %v3049_v9 = vsel %vm7361_vm10, %v3019_v38, %v3020_v43  ;;  %vm7372_vm9 = vmmov %vm7363_vm4 }
 0x3a4   : > { %v3374_v32 = vmax.f32 %v3372_v47, %v3373_v57  ;;  %v2987_v7 = vadd.f32 %v2953_v36, %v6160_v0  ;;  %vm7373_vm10 = vmmov %vm7369_vm1 }
 0x3a5   : > { %v3275_v23 = vadd.f32 %v3243_v24, %v3178_v58 }
 0x3a6   : > { %v3083_v56 = vadd.f32 %v3049_v9, %v2987_v7  ;;  %v3530_v28 = vsel %vm7362_vm13, %v3374_v32, %v3529_v2  ;;  %vm7374_vm13 = vmmov %vm7363_vm4 }
 0x3a7   : > { %v3309_v49 = vsel %vm3293_vm14, %v3275_v23, -inf  ;;  %v2002_v44 = vpop.f32.mrf.mxu2  ;;  %v2091_v60 = vpop.f32.mrf.mxu3 }
 0x3a8   : > { %v3375_v59 = vmax.f32 %v3274_v33, %v3309_v49  ;;  %v3116_v17 = vrot.slane %v2002_v44, 3  ;;  %v3212_v40 = vrot.slane %v2091_v60, 4  ;;  %v1827_v3 = vpop.f32.mrf.mxu0  ;;  %v1916_v54 = vpop.f32.mrf.mxu1 }
 0x3a9   : > { %v2925_v0 = vrot.slane %v1827_v3, 1  ;;  %v3021_v39 = vrot.slane %v1916_v54, 2 }
 0x3aa   : > { %v3376_v61 = vrot.slane %v3375_v59, 4  ;;  %v3145_v16 = vsel %vm2696_vm3, %v3115_v50, %v3116_v17  ;;  %v3242_v35 = vsel %vm3227_vm2, %v3211_v1, %v3212_v40 }
 0x3ab   : > { %v3179_v2 = vadd.f32 %v3145_v16, %v3083_v56  ;;  %v2952_v55 = vsel %vm7350_vm6, %v2924_v25, %v2925_v0  ;;  %v3048_v45 = vsel %vm7363_vm4, %v3020_v43, %v3021_v39  ;;  %vm7375_vm6 = vcmask 1041409   ;;  %vm7376_vm4 = vmmov %vm7369_vm1 }
 0x3ac   : > { %v3377_v38 = vmax.f32 %v3375_v59, %v3376_v61  ;;  %v2988_v37 = vadd.f32 %v2952_v55, %v6172_v6 }
 0x3ad   : > { %v3276_v41 = vadd.f32 %v3242_v35, %v3179_v2 }
 0x3ae   : > { %v3378_v19 = vrot.slane %v3377_v38, 2  ;;  %v3084_v62 = vadd.f32 %v3048_v45, %v2988_v37 }
 0x3af   : > { %v2005_v27 = vpop.f32.mrf.mxu2  ;;  %v2094_v22 = vpop.f32.mrf.mxu3 }
 0x3b0   : > { %v3379_v5 = vmax.f32 %v3377_v38, %v3378_v19  ;;  %v3117_v63 = vrot.slane %v2005_v27, 3  ;;  %v3213_v13 = vrot.slane %v2094_v22, 4  ;;  %v1829_v33 = vpop.f32.mrf.mxu0  ;;  %v1918_v29 = vpop.f32.mrf.mxu1 }
 0x3b1   : > { %v2926_v52 = vrot.slane %v1829_v33, 1  ;;  %v3022_v46 = vrot.slane %v1918_v29, 2 }
 0x3b2   : > { %v3380_v20 = vrot.slane %v3379_v5, 1  ;;  %v3144_v47 = vsel %vm2696_vm3, %v3116_v17, %v3117_v63  ;;  %v3241_v50 = vsel %vm3227_vm2, %v3212_v40, %v3213_v13 }
 0x3b3   : > { %v3180_v6 = vadd.f32 %v3144_v47, %v3084_v62  ;;  %v2951_v1 = vsel %vm7364_vm11, %v2925_v0, %v2926_v52  ;;  %v3047_v11 = vsel %vm7365_vm15, %v3021_v39, %v3022_v46  ;;  %vm7378_vm11 = vmmov %vm7370_vm8  ;;  %vm7379_vm15 = vcmask 1042434  }
 0x3b4   : > { %v3381_v42 = vmax.f32 %v3379_v5, %v3380_v20  ;;  %v2989_v25 = vadd.f32 %v2951_v1, %v6193_v26 }
 0x3b5   : > { %v3277_v43 = vadd.f32 %v3241_v50, %v3180_v6 }
 0x3b6   : > { %v3085_v57 = vadd.f32 %v3047_v11, %v2989_v25  ;;  %v6807_v51 = vsel %vm7366_vm0, %v3381_v42, %v3530_v28  ;;  %vm7380_vm0 = vcmask 1043459  }
 0x3b7   : > { %v3311_v24 = vsel %vm3293_vm14, %v3277_v43, -inf  ;;  %v2007_v58 = vpop.f32.mrf.mxu2  ;;  %v2096_v36 = vpop.f32.mrf.mxu3 }
 0x3b8   : > { %v3382_v9 = vmax.f32 %v3276_v41, %v3311_v24  ;;  %v3118_v32 = vrot.slane %v2007_v58, 3  ;;  %v3214_v7 = vrot.slane %v2096_v36, 4  ;;  %v1832_v14 = vpop.f32.mrf.mxu0  ;;  %v1921_v23 = vpop.f32.mrf.mxu1 }
 0x3b9   : > { %v2927_v56 = vrot.slane %v1832_v14, 1  ;;  %v3023_v49 = vrot.slane %v1921_v23, 2 }
 0x3ba   : > { %v3143_v26 = vsel %vm2696_vm3, %v3117_v63, %v3118_v32  ;;  %v3240_v44 = vsel %vm3227_vm2, %v3213_v13, %v3214_v7  ;;  %v3383_v39 = vrot.slane %v3382_v9, 4  ;;  %v4918_v63 = vld [vmem:[%s7051_s3 + $0x90] sm:$0xff] }
 0x3bb   : > { %v3181_v28 = vadd.f32 %v3143_v26, %v3085_v57  ;;  %v2950_v60 = vsel %vm7367_vm7, %v2926_v52, %v2927_v56  ;;  %v3046_v59 = vsel %vm7368_vm12, %v3022_v46, %v3023_v49  ;;  %3793 = vmatpush.bf16.msrb.mxu2 %v4918_v63  ;;  %vm7381_vm7 = vmmov %vm7369_vm1 }
 0x3bc   : > { %v2990_v17 = vadd.f32 %v2950_v60, %v6207_v31  ;;  %v3384_v62 = vmax.f32 %v3382_v9, %v3383_v39  ;;  %vm7382_vm12 = vmmov %vm7369_vm1 }
 0x3bd   : > { %v3278_v40 = vadd.f32 %v3240_v44, %v3181_v28 }
 0x3be   : > { %v3086_v3 = vadd.f32 %v3046_v59, %v2990_v17  ;;  %v3385_v52 = vrot.slane %v3384_v62, 2 }
 0x3bf   : > { %v2010_v54 = vpop.f32.mrf.mxu2  ;;  %v2099_v0 = vpop.f32.mrf.mxu3 }
 0x3c0   : > { %v3119_v61 = vrot.slane %v2010_v54, 3  ;;  %v3215_v16 = vrot.slane %v2099_v0, 4  ;;  %v1834_v35 = vpop.f32.mrf.mxu0  ;;  %v1923_v2 = vpop.f32.mrf.mxu1  ;;  %v3386_v58 = vmax.f32 %v3384_v62, %v3385_v52 }
 0x3c1   : > { %v2928_v55 = vrot.slane %v1834_v35, 1  ;;  %v3024_v45 = vrot.slane %v1923_v2, 2 }
 0x3c2   : > { %v3142_v38 = vsel %vm2696_vm3, %v3118_v32, %v3119_v61  ;;  %v3239_v37 = vsel %vm3227_vm2, %v3214_v7, %v3215_v16 }
 0x3c3   : > { %v3182_v41 = vadd.f32 %v3142_v38, %v3086_v3  ;;  %v2949_v31 = vsel %vm7369_vm1, %v2927_v56, %v2928_v55  ;;  %v3045_v19 = vsel %vm7370_vm8, %v3023_v49, %v3024_v45  ;;  %v3387_v49 = vrot.slane %v3386_v58, 1 }
 0x3c4   : > { %v2991_v27 = vadd.f32 %v2949_v31, %v6228_v53 }
 0x3c5   : > { %v3279_v22 = vadd.f32 %v3239_v37, %v3182_v41 }
 0x3c6   : > { %v3087_v5 = vadd.f32 %v3045_v19, %v2991_v27 }
 0x3c7   : > { %v3313_v13 = vsel %vm3293_vm14, %v3279_v22, -inf  ;;  %v2012_v33 = vpop.f32.mrf.mxu2  ;;  %v2101_v29 = vpop.f32.mrf.mxu3 }
 0x3c8   : > { %v3389_v46 = vmax.f32 %v3278_v40, %v3313_v13  ;;  %v3120_v20 = vrot.slane %v2012_v33, 3  ;;  %v3216_v47 = vrot.slane %v2101_v29, 4  ;;  %v1837_v50 = vpop.f32.mrf.mxu0  ;;  %v1926_v6 = vpop.f32.mrf.mxu1 }
 0x3c9   : > { %v2929_v1 = vrot.slane %v1837_v50, 1  ;;  %v3025_v53 = vrot.slane %v1926_v6, 2  ;;  %v7377_v50 = vld [vmem:[#allocation13_spill] sm:$0xff] }
 0x3ca   : > { %v3390_v11 = vrot.slane %v3389_v46, 4  ;;  %v3141_v42 = vsel %vm2696_vm3, %v3119_v61, %v3120_v20  ;;  %v3238_v25 = vsel %vm3227_vm2, %v3215_v16, %v3216_v47  ;;  %v3388_v61 = vmax.f32 %v3386_v58, %v3387_v49 }
 0x3cb   : > { %v3183_v43 = vadd.f32 %v3141_v42, %v3087_v5  ;;  %v2948_v57 = vsel %vm7371_vm5, %v2928_v55, %v2929_v1  ;;  %v3044_v24 = vsel %vm7372_vm9, %v3024_v45, %v3025_v53  ;;  %vm7384_vm5 = vmmov %vm7369_vm1 }
 0x3cc   : > { %v3391_v36 = vmax.f32 %v3389_v46, %v3390_v11  ;;  %v2992_v9 = vadd.f32 %v2948_v57, %v6239_v12  ;;  %vm7385_vm9 = vmmov %vm7370_vm8 }
 0x3cd   : > { %v3280_v32 = vadd.f32 %v3238_v25, %v3183_v43 }
 0x3ce   : > { %v3392_v7 = vrot.slane %v3391_v36, 2  ;;  %v3088_v14 = vadd.f32 %v3044_v24, %v2992_v9 }
 0x3cf   : > { %v2015_v23 = vpop.f32.mrf.mxu2  ;;  %v2104_v56 = vpop.f32.mrf.mxu3 }
 0x3d0   : > { %v3393_v26 = vmax.f32 %v3391_v36, %v3392_v7  ;;  %v3121_v44 = vrot.slane %v2015_v23, 3  ;;  %v3217_v28 = vrot.slane %v2104_v56, 4  ;;  %v1839_v60 = vpop.f32.mrf.mxu0  ;;  %v1928_v59 = vpop.f32.mrf.mxu1 }
 0x3d1   : > { %v2930_v17 = vrot.slane %v1839_v60, 1  ;;  %v3026_v40 = vrot.slane %v1928_v59, 2 }
 0x3d2   : > { %v3394_v3 = vrot.slane %v3393_v26, 1  ;;  %v3140_v54 = vsel %vm2696_vm3, %v3120_v20, %v3121_v44  ;;  %v3237_v12 = vsel %vm3227_vm2, %v3216_v47, %v3217_v28 }
 0x3d3   : > { %v3184_v0 = vadd.f32 %v3140_v54, %v3088_v14  ;;  %v2947_v39 = vsel %vm7373_vm10, %v2929_v1, %v2930_v17  ;;  %v3043_v55 = vsel %vm7374_vm13, %v3025_v53, %v3026_v40  ;;  %vm7386_vm10 = vmmov %vm7370_vm8 }
 0x3d4   : > { %v3395_v16 = vmax.f32 %v3393_v26, %v3394_v3  ;;  %v2993_v35 = vadd.f32 %v2947_v39, %v6260_v30  ;;  %v4917_v26 = vld [vmem:[%s7051_s3 + $0x88] sm:$0xff]  ;;  %vm7388_vm13 = vmmov %vm7370_vm8 }
 0x3d5   : > { %v3281_v2 = vadd.f32 %v3237_v12, %v3184_v0  ;;  %3794 = vmatpush.bf16.msrb.mxu2 %v4917_v26 }
 0x3d6   : > { %v3532_v45 = vsel %vm7375_vm6, %v3395_v16, %v3388_v61  ;;  %v3089_v38 = vadd.f32 %v3043_v55, %v2993_v35  ;;  %vm7389_vm6 = vmmov %vm7369_vm1 }
 0x3d7   : > { %v3315_v37 = vsel %vm3293_vm14, %v3281_v2, -inf  ;;  %v2017_v41 = vpop.f32.mrf.mxu2  ;;  %v2106_v31 = vpop.f32.mrf.mxu3 }
 0x3d8   : > { %v3396_v19 = vmax.f32 %v3280_v32, %v3315_v37  ;;  %v3122_v62 = vrot.slane %v2017_v41, 3  ;;  %v3218_v27 = vrot.slane %v2106_v31, 4  ;;  %v1842_v22 = vpop.f32.mrf.mxu0  ;;  %v6855_v5 = vpop.f32.mrf.mxu1 }
 0x3d9   : > { %v2931_v63 = vrot.slane %v1842_v22, 1  ;;  %v3027_v20 = vrot.slane %v6855_v5, 2 }
 0x3da   : > { %v3397_v30 = vrot.slane %v3396_v19, 4  ;;  %v3139_v13 = vsel %vm2696_vm3, %v3121_v44, %v3122_v62  ;;  %v3236_v46 = vsel %vm3227_vm2, %v3217_v28, %v3218_v27 }
 0x3db   : > { %v3185_v33 = vadd.f32 %v3139_v13, %v3089_v38  ;;  %v2946_v29 = vsel %vm7376_vm4, %v2930_v17, %v2931_v63  ;;  %v3042_v25 = vsel %vm7378_vm11, %v3026_v40, %v3027_v20  ;;  %vm7390_vm4 = vmmov %vm7369_vm1 }
 0x3dc   : > { %v3398_v52 = vmax.f32 %v3396_v19, %v3397_v30  ;;  %v2994_v6 = vadd.f32 %v2946_v29, %v7377_v50  ;;  %vm7392_vm11 = vmmov %vm7370_vm8 }
 0x3dd   : > { %v3282_v47 = vadd.f32 %v3236_v46, %v3185_v33 }
 0x3de   : > { %v3399_v1 = vrot.slane %v3398_v52, 2  ;;  %v3090_v36 = vadd.f32 %v3042_v25, %v2994_v6 }
 0x3df   : > { %v6865_v53 = vpop.f32.mrf.mxu2  ;;  %v6867_v11 = vpop.f32.mrf.mxu3 }
 0x3e0   : > { %v3400_v42 = vmax.f32 %v3398_v52, %v3399_v1  ;;  %v3123_v43 = vrot.slane %v6865_v53, 3  ;;  %v3219_v57 = vrot.slane %v6867_v11, 4  ;;  %v1844_v24 = vpop.f32.mrf.mxu0  ;;  %v1933_v58 = vpop.f32.mrf.mxu1 }
 0x3e1   : > { %v2932_v31 = vrot.slane %v1844_v24, 1  ;;  %v3028_v46 = vrot.slane %v1933_v58, 2 }
 0x3e2   : > { %v3401_v9 = vrot.slane %v3400_v42, 1  ;;  %v3138_v32 = vsel %vm2696_vm3, %v3122_v62, %v3123_v43  ;;  %v3235_v23 = vsel %vm3227_vm2, %v3218_v27, %v3219_v57 }
 0x3e3   : > { %v3186_v7 = vadd.f32 %v3138_v32, %v3090_v36  ;;  %v2945_v29 = vsel %vm7369_vm1, %v2931_v63, %v2932_v31 }
 0x3e4   : > { %v3402_v14 = vmax.f32 %v3400_v42, %v3401_v9  ;;  %v7383_v42 = vld [vmem:[#allocation14_spill] sm:$0xff] }
 0x3e5   : > { %v3283_v56 = vadd.f32 %v3235_v23, %v3186_v7  ;;  %v2995_v25 = vadd.f32 %v2945_v29, %v7383_v42 }
 0x3e6   : > { %v3533_v49 = vsel %vm7379_vm15, %v3402_v14, %v3532_v45  ;;  %vm7393_vm15 = vmmov %vm7370_vm8 }
 0x3e7   : > { %v3317_v44 = vsel %vm3293_vm14, %v3283_v56, -inf  ;;  %v2022_v28 = vpop.f32.mrf.mxu2  ;;  %v6889_v60 = vpop.f32.mrf.mxu3 }
 0x3e8   : > { %v3403_v59 = vmax.f32 %v3282_v47, %v3317_v44  ;;  %v1847_v17 = vpop.f32.mrf.mxu0  ;;  %v1936_v40 = vpop.f32.mrf.mxu1  ;;  %v3124_v6 = vrot.slane %v2022_v28, 3 }
 0x3e9   : > { %v2933_v38 = vrot.slane %v1847_v17, 1  ;;  %v3029_v13 = vrot.slane %v1936_v40, 2  ;;  %v7387_v40 = vld [vmem:[#allocation8_spill] sm:$0xff] }
 0x3ea   : > { %v3404_v3 = vrot.slane %v3403_v59, 4 }
 0x3eb   : > { %v2944_v30 = vsel %vm7381_vm7, %v2932_v31, %v2933_v38  ;;  %v3040_v24 = vsel %vm7370_vm8, %v3028_v46, %v3029_v13 }
 0x3ec   : > { %v3405_v54 = vmax.f32 %v3403_v59, %v3404_v3  ;;  %v2996_v47 = vadd.f32 %v2944_v30, %v6305_v8  ;;  %v3137_v59 = vsel %vm2696_vm3, %v3123_v43, %v3124_v6 }
 0x3ee   : > { %v3406_v12 = vrot.slane %v3405_v54, 2 }
 0x3ef   : > { %v2025_v0 = vpop.f32.mrf.mxu2  ;;  %v6891_v39 = vpop.f32.mrf.mxu3 }
 0x3f0   : > { %v3407_v61 = vmax.f32 %v3405_v54, %v3406_v12  ;;  %v1849_v16 = vpop.f32.mrf.mxu0  ;;  %v1938_v35 = vpop.f32.mrf.mxu1  ;;  %v3125_v52 = vrot.slane %v2025_v0, 3  ;;  %v3221_v26 = vrot.slane %v6891_v39, 4  ;;  %v3220_v12 = vrot.slane %v6889_v60, 4  ;;  %v4916_v0 = vld [vmem:[%s7051_s3 + $0x80] sm:$0xff] }
 0x3f1   : > { %v2934_v27 = vrot.slane %v1849_v16, 1  ;;  %v3030_v36 = vrot.slane %v1938_v35, 2  ;;  %3795 = vmatpush.bf16.msrb.mxu2 %v4916_v0 }
 0x3f2   : > { %v3408_v2 = vrot.slane %v3407_v61, 1  ;;  %v3136_v63 = vsel %vm2696_vm3, %v3124_v6, %v3125_v52  ;;  %v3233_v43 = vsel %vm3227_vm2, %v3220_v12, %v3221_v26  ;;  %v7391_v6 = vld [vmem:[#allocation15_spill] sm:$0xff] }
 0x3f3   : > { %v2943_v8 = vsel %vm7384_vm5, %v2933_v38, %v2934_v27  ;;  %v3039_v16 = vsel %vm7388_vm13, %v3029_v13, %v3030_v36 }
 0x3f4   : > { %v3409_v55 = vmax.f32 %v3407_v61, %v3408_v2  ;;  %v2997_v3 = vadd.f32 %v2943_v8, %v7387_v40 }
 0x3f6   : > { %v6894_v45 = vsel %vm7380_vm0, %v3409_v55, %v3533_v49  ;;  %v3041_v49 = vsel %vm7386_vm10, %v3027_v20, %v3028_v46  ;;  %v3093_v2 = vadd.f32 %v3039_v16, %v2997_v3  ;;  %vm7394_vm0 = vmmov %vm7369_vm1 }
 0x3f7   : > { %v2027_v37 = vpop.f32.mrf.mxu2  ;;  %v6896_v41 = vpop.f32.mrf.mxu3  ;;  %v3091_v5 = vadd.f32 %v3041_v49, %v2995_v25  ;;  %vm7396_vm7 = vmmov %vm7394_vm0 }
 0x3f8   : > { %v1852_v19 = vpop.f32.mrf.mxu0  ;;  %v6898_v62 = vpop.f32.mrf.mxu1  ;;  %v3126_v58 = vrot.slane %v2027_v37, 3  ;;  %v3222_v39 = vrot.slane %v6896_v41, 4  ;;  %vm7400_vm1 = vmmov %vm7370_vm8 }
 0x3f9   : > { %v2935_v22 = vrot.slane %v1852_v19, 1  ;;  %v3031_v50 = vrot.slane %v6898_v62, 2  ;;  %v3187_v53 = vadd.f32 %v3137_v59, %v3091_v5  ;;  %v3234_v62 = vsel %vm3227_vm2, %v3219_v57, %v3220_v12 }
 0x3fa   : > { %v3135_v35 = vsel %vm2696_vm3, %v3125_v52, %v3126_v58  ;;  %v3232_v11 = vsel %vm3227_vm2, %v3221_v26, %v3222_v39  ;;  %v7395_v5 = vrot.slane %v6415_v18, 1 }
 0x3fb   : > { %v2942_v33 = vsel %vm7382_vm12, %v2934_v27, %v2935_v22  ;;  %v3038_v56 = vsel %vm7385_vm9, %v3030_v36, %v3031_v50  ;;  %v3189_v27 = vadd.f32 %v3135_v35, %v3093_v2  ;;  %vm7399_vm12 = vmmov %vm7370_vm8  ;;  %vm7408_vm8 = vcmask 1047559  }
 0x3fc   : > { %v2998_v1 = vadd.f32 %v2942_v33, %v6338_v21  ;;  %v3092_v21 = vadd.f32 %v3040_v24, %v2996_v47  ;;  %v3284_v33 = vadd.f32 %v3234_v62, %v3187_v53 }
 0x3fe   : > { %v3094_v44 = vadd.f32 %v3038_v56, %v2998_v1  ;;  %v3188_v17 = vadd.f32 %v3136_v63, %v3092_v21 }
 0x3ff   : > { %v2030_v9 = vpop.f32.mrf.mxu2  ;;  %v6912_v32 = vpop.f32.mrf.mxu3 }
 0x400   : > { %v3127_v7 = vrot.slane %v2030_v9, 3  ;;  %v1854_v14 = vpop.f32.mrf.mxu0  ;;  %v1943_v23 = vpop.f32.mrf.mxu1  ;;  %v3223_v54 = vrot.slane %v6912_v32, 4  ;;  %v3285_v60 = vadd.f32 %v3233_v43, %v3188_v17  ;;  %v7397_v43 = vld [vmem:[#allocation16_spill] sm:$0xff] }
 0x401   : > { %v2936_v61 = vrot.slane %v1854_v14, 1  ;;  %v3032_v52 = vrot.slane %v1943_v23, 2  ;;  %v7398_v16 = vrot.slane %v7397_v43, 2 }
 0x402   : > { %v3134_v28 = vsel %vm2696_vm3, %v3126_v58, %v3127_v7  ;;  %v3231_v55 = vsel %vm3227_vm2, %v3222_v39, %v3223_v54  ;;  %v3319_v29 = vsel %vm3293_vm14, %v3285_v60, -inf }
 0x403   : > { %v3190_v20 = vadd.f32 %v3134_v28, %v3094_v44  ;;  %v2941_v30 = vsel %vm7389_vm6, %v2935_v22, %v2936_v61  ;;  %v3286_v22 = vadd.f32 %v3232_v11, %v3189_v27  ;;  %v3410_v24 = vmax.f32 %v3284_v33, %v3319_v29 }
 0x404   : > { %v2999_v1 = vadd.f32 %v2941_v30, %v7391_v6  ;;  %v3037_v9 = vsel %vm7392_vm11, %v3031_v50, %v3032_v52  ;;  %v7401_v30 = vld [vmem:[#allocation17_spill] sm:$0xff] }
 0x405   : > { %v3287_v41 = vadd.f32 %v3231_v55, %v3190_v20  ;;  %v3411_v59 = vrot.slane %v3410_v24, 4  ;;  %v7403_v6 = vld [vmem:[#allocation9_spill] sm:$0xff] }
 0x406   : > { %v3095_v58 = vadd.f32 %v3037_v9, %v2999_v1  ;;  %v7404_v1 = vrot.slane %v7403_v6, 4 }
 0x407   : > { %v2032_v38 = vpop.f32.mrf.mxu2  ;;  %v2121_v37 = vpop.f32.mrf.mxu3  ;;  %v3321_v57 = vsel %vm3293_vm14, %v3287_v41, -inf  ;;  %v3412_v2 = vmax.f32 %v3410_v24, %v3411_v59 }
 0x408   : > { %v1857_v31 = vpop.f32.mrf.mxu0  ;;  %v1946_v19 = vpop.f32.mrf.mxu1  ;;  %v3128_v46 = vrot.slane %v2032_v38, 3  ;;  %v3417_v36 = vmax.f32 %v3286_v22, %v3321_v57  ;;  %v3224_v26 = vrot.slane %v2121_v37, 4 }
 0x409   : > { %v2937_v13 = vrot.slane %v1857_v31, 1  ;;  %v3033_v42 = vrot.slane %v1946_v19, 2  ;;  %v3413_v29 = vrot.slane %v3412_v2, 2 }
 0x40a   : > { %v3133_v32 = vsel %vm2696_vm3, %v3127_v7, %v3128_v46  ;;  %v3418_v7 = vrot.slane %v3417_v36, 4  ;;  %v3230_v39 = vsel %vm3227_vm2, %v3223_v54, %v3224_v26 }
 0x40b   : > { %v2940_v47 = vsel %vm7390_vm4, %v2936_v61, %v2937_v13  ;;  %v3036_v14 = vsel %vm7393_vm15, %v3032_v52, %v3033_v42  ;;  %v3191_v17 = vadd.f32 %v3133_v32, %v3095_v58 }
 0x40c   : > { %v3000_v25 = vadd.f32 %v2940_v47, %v6371_v10  ;;  %v3419_v55 = vmax.f32 %v3417_v36, %v3418_v7  ;;  %v3414_v36 = vmax.f32 %v3412_v2, %v3413_v29 }
 0x40d   : > { %v3288_v18 = vadd.f32 %v3230_v39, %v3191_v17 }
 0x40e   : > { %v3096_v10 = vadd.f32 %v3036_v14, %v3000_v25  ;;  %v3420_v47 = vrot.slane %v3419_v55, 2  ;;  %v3415_v14 = vrot.slane %v3414_v36, 1 }
 0x40f   : > { %v2035_v63 = vpop.f32.mrf.mxu2  ;;  %v2124_v8 = vpop.f32.mrf.mxu3 }
 0x410   : > { %v3129_v23 = vrot.slane %v2035_v63, 3  ;;  %v3225_v21 = vrot.slane %v2124_v8, 4  ;;  %v1859_v56 = vpop.f32.mrf.mxu0  ;;  %v1948_v49 = vpop.f32.mrf.mxu1  ;;  %v3421_v32 = vmax.f32 %v3419_v55, %v3420_v47 }
 0x411   : > { %v2938_v44 = vrot.slane %v1859_v56, 1  ;;  %v3034_v28 = vrot.slane %v1948_v49, 2 }
 0x412   : > { %v3132_v50 = vsel %vm2696_vm3, %v3128_v46, %v3129_v23  ;;  %v3229_v20 = vsel %vm3227_vm2, %v3224_v26, %v3225_v21  ;;  %v3416_v26 = vmax.f32 %v3414_v36, %v3415_v14 }
 0x413   : > { %v3192_v40 = vadd.f32 %v3132_v50, %v3096_v10  ;;  %v2939_v3 = vsel %vm7394_vm0, %v2937_v13, %v2938_v44  ;;  %v2970_v12 = vsel %vm7396_vm7, %v2938_v44, %v7395_v5  ;;  %v3066_v35 = vsel %vm7399_vm12, %v3034_v28, %v7398_v16 }
 0x414   : > { %v3002_v0 = vadd.f32 %v2970_v12, %v6413_v48  ;;  %v3001_v53 = vadd.f32 %v2939_v3, %v6392_v15  ;;  %v3035_v54 = vsel %vm7400_vm1, %v3033_v42, %v3034_v28  ;;  %v7402_v13 = vrot.slane %v7401_v30, 3  ;;  %v4986_v28 = vld [vmem:[%s7050_s2] sm:$0x7] }
 0x415   : > { %v3289_v61 = vadd.f32 %v3229_v20, %v3192_v40  ;;  %v3545_v4 = vperm.slane %v4986_v28, 2 }
 0x416   : > { %v3098_v60 = vadd.f32 %v3066_v35, %v3002_v0  ;;  %v3097_v19 = vadd.f32 %v3035_v54, %v3001_v53 }
 0x417   : > { %v3323_v38 = vsel %vm3293_vm14, %v3289_v61, -inf  ;;  %v2037_v37 = vpop.f32.mrf.mxu2  ;;  %v2126_v48 = vpop.f32.mrf.mxu3  ;;  %v3551_v3 = vadd.f32 %v3545_v4, %v6807_v51 }
 0x418   : > { %v3424_v41 = vmax.f32 %v3288_v18, %v3323_v38  ;;  %v3130_v31 = vrot.slane %v2037_v37, 3  ;;  %v3226_v15 = vrot.slane %v2126_v48, 4  ;;  %v3769_v61 = vpop.f32.mrf.mxu0  ;;  %v3783_v43 = vpop.f32.mrf.mxu1 }
 0x419   : > { %v3557_v20 = vmax.f32 %v3551_v3, 0.0 }
 0x41a   : > { %v3425_v62 = vrot.slane %v3424_v41, 4  ;;  %v3131_v27 = vsel %vm2696_vm3, %v3129_v23, %v3130_v31  ;;  %v3162_v33 = vsel %vm2696_vm3, %v3130_v31, %v7402_v13  ;;  %v3228_v57 = vsel %vm3227_vm2, %v3225_v21, %v3226_v15 }
 0x41b   : > { %v3193_v52 = vadd.f32 %v3131_v27, %v3097_v19  ;;  %v3194_v46 = vadd.f32 %v3162_v33, %v3098_v60  ;;  %v3259_v42 = vsel %vm3227_vm2, %v3226_v15, %v7404_v1  ;;  %v3422_v23 = vrot.slane %v3421_v32, 1 }
 0x41c   : > { %v3426_v11 = vmax.f32 %v3424_v41, %v3425_v62  ;;  %vm7405_vm3 = vcmask 1044484   ;;  %vm7406_vm2 = vcmask 1045509  }
 0x41d   : > { %v3290_v22 = vadd.f32 %v3228_v57, %v3193_v52  ;;  %v3291_v25 = vadd.f32 %v3259_v42, %v3194_v46  ;;  %v3423_v10 = vmax.f32 %v3421_v32, %v3422_v23  ;;  %v3535_v17 = vsel %vm7405_vm3, %v3416_v26, %v6894_v45  ;;  %v4984_v45 = vld [vmem:[%s7052_s4] ss:$0 sm:$0xff] }
 0x41e   : > { %v3427_v24 = vrot.slane %v3426_v11, 2  ;;  %v3770_v53 = vadd.f32 %v4984_v45, %v3769_v61 }
 0x41f   : > { %v3325_v9 = vsel %vm3293_vm14, %v3291_v25, -inf  ;;  %v3536_v50 = vsel %vm7406_vm2, %v3423_v10, %v3535_v17  ;;  %vm7407_vm14 = vcmask 1046534  }
 0x420   : > { %v3431_v63 = vmax.f32 %v3290_v22, %v3325_v9  ;;  %v3428_v8 = vmax.f32 %v3426_v11, %v3427_v24  ;;  %v3784_v16 = vadd.f32 %v3783_v43, %v3770_v53  ;;  %v3771_v35 = vpop.f32.mrf.mxu0  ;;  %v3785_v2 = vpop.f32.mrf.mxu1 }
 0x421   : > { %v3772_v60 = vadd.f32 %v4984_v45, %v3771_v35 }
 0x422   : > { %v3432_v58 = vrot.slane %v3431_v63, 4  ;;  %v3429_v21 = vrot.slane %v3428_v8, 1 }
 0x423   : > { %v3786_v55 = vadd.f32 %v3785_v2, %v3772_v60 }
 0x424   : > { %v3433_v56 = vmax.f32 %v3431_v63, %v3432_v58  ;;  %v3430_v44 = vmax.f32 %v3428_v8, %v3429_v21 }
 0x426   : > { %v3434_v49 = vrot.slane %v3433_v56, 2  ;;  %v3537_v40 = vsel %vm7407_vm14, %v3430_v44, %v3536_v50 }
 0x428   : > { %v3435_v34 = vmax.f32 %v3433_v56, %v3434_v49 }
 0x42a   : > { %v3436_v59 = vrot.slane %v3435_v34, 1 }
 0x42c   : > { %v3437_v7 = vmax.f32 %v3435_v34, %v3436_v59 }
 0x42e   : > { %v3538_v5 = vsel %vm7408_vm8, %v3437_v7, %v3537_v40 }
 0x42f   : > { %v3554_v12 = vadd.f32 %v3545_v4, %v3538_v5 }
 0x431   : > { %v3560_v0 = vmax.f32 %v3554_v12, 0.0 }
 0x433   : > { %v3563_v39 = vpack.c.bf16 %v3560_v0, %v3557_v20 }
 0x435   : > { %3796 = vmatmul.bf16.vlgmr.msrb.gmra.mxu2 %v3563_v39 }
 0x4b8   : > { %v3797_v51 = vpop.f32.mrf.mxu2 }
 0x4b9   : > { %v3798_v18 = vadd.f32 %v3797_v51, %v3784_v16 }
 0x4bb   : > { %3802 = vst [vmem:[%s235_s12] sm:$0xff] %v3798_v18 }
 0x4c0   : > { %v3799_v38 = vpop.f32.mrf.mxu2 }
 0x4c1   : > { %v3800_v37 = vadd.f32 %v3799_v38, %v3786_v55 }
 0x4c3   : > { %3803 = vst [vmem:[%s235_s12 + $0x8] sm:$0xff] %v3800_v37 }
 0x4c4   : > { %5044 = shalt.err (!%p5041_p8)
}
 0x4c5   : > { %s5090_s9 = smov 128   ;;  %s5091_s10 = smov 8  }
 0x4c6   : > { %4929 = dma.vmem_to_hbm [thread:$0]  (%p5160_p5), %s3818_s16, 256, %s3820_s17, %s3805_s23, %s5090_s9, %s5090_s9, %s5091_s10  }
 0x4c7 PF: > { %p4941_p9 = scmp.ge.s32.totalorder %s5083_s21, 2  ;;  %s3834_s11 = sand.u32 1, %s5071_s18  }
 0x4c8   : > { %s3835_s12 = scalar_lea.sflag [#allocation4], %s3834_s11 }
 0x4c9   : > { %p4936_p10 = pnand %p4941_p9, %p5164_p6 }
 0x4cb   : > { %p4937_p11 = pneg %p4936_p10 }
 0x4cd   : > { %5066 = dma.done.wait (%p4937_p11), %s3835_s12, 256  }
 0x4ce   : > { %5068 = vsyncadd (%p4937_p11), %s3835_s12, 4294967040  ;;  %p16_p12 = scmp.ge.s32.totalorder %s5147_s24, 4   ;;  %s7409_s18 = smov %s5075_s19 }
 0x4cf   : > { %s7410_s19 = smov %s5079_s20  ;;  %s7411_s20 = smov %s5158_s27 }
 0x4d0   : > { %s7412_s21 = smov %s5147_s24  ;;  %18 = sbr.rel (!%p16_p12) target bundleno = 4 (0x4), region = 80 }
 0x4d5   :  { %3841 = vsyncpa [#allocation3], 1 }
 0x4d6   :  { %3843 = vsyncpa [#allocation3 + $0x1], 1 }
 0x4d7   :  { %3844 = vsyncpa [#allocation4], 1 }
 0x4d8   :  { %3846 = vsyncpa [#allocation4 + $0x1], 1 }

</bundles_post_ra>
